<compile_context>
chip_gen: v6e
topology: v6e:2x2x1
jax: 0.10.0
libtpu: 0.0.40
codegen_flags: <defaults>
</compile_context>

<pallas_src>
import jax
import jax.numpy as jnp
from jax.experimental import pallas as pl
from jax.experimental.pallas import tpu as pltpu


BN_EPS = 0.8          # nn.BatchNorm1d(out_feat, 0.8) -> eps = 0.8 (positional)
LRELU_SLOPE = 0.2
ROW_TILE = 16         # pad batch to a multiple of the bf16 sublane tile
LANE = 128            # lane width for output-head padding


def _leaky_relu(x):
    return jnp.where(x > 0, x, LRELU_SLOPE * x)


def _generator_kernel(n_ref, inv_ref, z_ref,
                      w1_ref, b1_ref,
                      w2_ref, g2_ref, be2_ref,
                      w3_ref, g3_ref, be3_ref,
                      w4_ref, g4_ref, be4_ref,
                      w5_ref, b5_ref,
                      out_ref):
    padded_b = z_ref.shape[0]
    nvalid = n_ref[0]                      # SMEM scalar: true batch size
    inv_count = inv_ref[0]                 # SMEM scalar: 1 / true batch size

    row_ids = jax.lax.broadcasted_iota(jnp.int32, (padded_b, 1), 0)
    row_mask = (row_ids < nvalid).astype(jnp.float32)

    def linear(x_f32, w_ref):
        # bf16 operands on the MXU, f32 accumulation.
        return jnp.dot(x_f32.astype(jnp.bfloat16), w_ref[...],
                       preferred_element_type=jnp.float32)

    def bn_lrelu(x, g_ref, be_ref):
        """PyTorch BatchNorm1d (training, biased var) + LeakyReLU.
        `x` already has its padded rows zeroed, so unmasked sums over the
        padded batch divided by the true count give exact statistics."""
        mean = jnp.sum(x, axis=0, keepdims=True) * inv_count
        ex2 = jnp.sum(x * x, axis=0, keepdims=True) * inv_count
        var = ex2 - mean * mean
        scale = jax.lax.rsqrt(var + BN_EPS) * g_ref[...]     # (1, N) lane vec
        return _leaky_relu((x - mean) * scale + be_ref[...])

    # Block 1: Linear(latent, 128) -> LeakyReLU (no norm, bias kept).
    h = _leaky_relu(linear(z_ref[...], w1_ref) + b1_ref[...])

    # Blocks 2-4: Linear -> BN -> LeakyReLU.  Pre-BN biases cancel exactly in
    # the mean subtraction, so they are omitted.  Padded rows are zeroed once
    # per block so BN statistics cover only the true batch.
    h = bn_lrelu(linear(h, w2_ref) * row_mask, g2_ref, be2_ref)
    h = bn_lrelu(linear(h, w3_ref) * row_mask, g3_ref, be3_ref)
    h = bn_lrelu(linear(h, w4_ref) * row_mask, g4_ref, be4_ref)

    # Output head: Linear(1024, out_pad) -> Tanh (f32, lane-dense store).
    out_ref[...] = jnp.tanh(linear(h, w5_ref) + b5_ref[...])


def init_generator_params(key, latent_dim, img_shape):
    """Deterministic synthetic parameter init (shapes match the PyTorch module).
    Weights stored in bf16 (cast once here, not per call); biases/BN affine in
    f32.  w5/b5 are lane-padded to a multiple of 128 columns."""
    out_dim = 1
    for s in img_shape:
        out_dim *= s
    out_pad = ((out_dim + LANE - 1) // LANE) * LANE

    dims = [latent_dim, 128, 256, 512, 1024, out_dim]
    params = {}
    keys = jax.random.split(key, 2 * (len(dims) - 1))
    for i in range(len(dims) - 1):
        fan_in, fan_out = dims[i], dims[i + 1]
        bound = 1.0 / (fan_in ** 0.5)
        # Stored as (in, out) so the kernel computes x @ W + b.
        w = jax.random.uniform(keys[2 * i], (fan_in, fan_out),
                               jnp.float32, -bound, bound)
        b = jax.random.uniform(keys[2 * i + 1], (1, fan_out),
                               jnp.float32, -bound, bound)
        idx = i + 1
        if idx == 5 and out_pad != out_dim:
            w = jnp.pad(w, ((0, 0), (0, out_pad - out_dim)))
            b = jnp.pad(b, ((0, 0), (0, out_pad - out_dim)))
        params[f"w{idx}"] = w.astype(jnp.bfloat16)
        # b2/b3/b4 are kept only for the reference (they cancel under BN and
        # are never passed to the kernel).
        params[f"b{idx}"] = b
    for i, d in zip((2, 3, 4), (256, 512, 1024)):
        params[f"g{i}"] = jnp.ones((1, d), jnp.float32)
        params[f"be{i}"] = jnp.zeros((1, d), jnp.float32)
    return params, out_dim


def generator_forward(z, params, img_shape):
    B = z.shape[0]
    out_dim = 1
    for s in img_shape:
        out_dim *= s
    out_pad = params["w5"].shape[1]        # lane-padded at init

    # Pad the batch up to a full sublane tile; padded rows are masked out of
    # the BatchNorm statistics inside the kernel and sliced off afterwards.
    padded_b = ((B + ROW_TILE - 1) // ROW_TILE) * ROW_TILE
    z_p = jnp.pad(z, ((0, padded_b - B), (0, 0))) if padded_b != B else z

    nvalid = jnp.array([B], jnp.int32)
    inv_count = jnp.array([1.0 / B], jnp.float32)

    args = (
        nvalid, inv_count, z_p,
        params["w1"], params["b1"],
        params["w2"], params["g2"], params["be2"],
        params["w3"], params["g3"], params["be3"],
        params["w4"], params["g4"], params["be4"],
        params["w5"], params["b5"],
    )

    smem_spec = pl.BlockSpec(memory_space=pltpu.MemorySpace.SMEM)
    vmem_spec = pl.BlockSpec(memory_space=pltpu.MemorySpace.VMEM)

    flat = pl.pallas_call(
        _generator_kernel,
        out_shape=jax.ShapeDtypeStruct((padded_b, out_pad), jnp.float32),
        in_specs=[smem_spec, smem_spec] + [vmem_spec] * (len(args) - 2),
        out_specs=vmem_spec,
        # 32 MiB: far above the ~2 MiB actual footprint, and safe on every
        # generation (v7x physical VMEM is only 64 MiB).
        compiler_params=pltpu.CompilerParams(vmem_limit_bytes=32 * 1024 * 1024),
    )(*args)

    # glue: drop padded rows / lanes, then view(B, *img_shape)
    return flat[:B, :out_dim].reshape((B,) + tuple(img_shape))


def generator_reference(z, params, img_shape):
    """Pure-JAX f32 reference mirroring the PyTorch module (training-mode BN).
    Note it *includes* the pre-BN biases b2-b4 that the kernel drops, proving
    the cancellation."""
    f32 = lambda a: a.astype(jnp.float32)

    def bn(x, g, b):
        mean = jnp.mean(x, axis=0, keepdims=True)
        var = jnp.mean((x - mean) ** 2, axis=0, keepdims=True)
        return (x - mean) * jax.lax.rsqrt(var + BN_EPS) * g + b

    out_dim = 1
    for s in img_shape:
        out_dim *= s

    h = _leaky_relu(z @ f32(params["w1"]) + params["b1"])
    h = _leaky_relu(bn(h @ f32(params["w2"]) + params["b2"],
                       params["g2"], params["be2"]))
    h = _leaky_relu(bn(h @ f32(params["w3"]) + params["b3"],
                       params["g3"], params["be3"]))
    h = _leaky_relu(bn(h @ f32(params["w4"]) + params["b4"],
                       params["g4"], params["be4"]))
    h = jnp.tanh(h @ f32(params["w5"]) + params["b5"])
    return h[:, :out_dim].reshape((z.shape[0],) + tuple(img_shape))


if __name__ == "__main__":
    latent_dim = 32
    img_shape = (1, 16, 16)   # (C, H, W) -> output is (B, 1, 16, 16)
    batch = 2

    key = jax.random.PRNGKey(0)
    k_params, k_z = jax.random.split(key)

    params, _ = init_generator_params(k_params, latent_dim, img_shape)
    z = jax.random.normal(k_z, (batch, latent_dim), jnp.float32)

    img = generator_forward(z, params, img_shape)
    img = jax.block_until_ready(img)

    assert img.shape == (batch,) + img_shape, img.shape
    assert bool(jnp.all(jnp.isfinite(img)))
    assert bool(jnp.all(jnp.abs(img) <= 1.0))  # tanh output range

    # Numerical check vs. the f32 pure-JAX reference (bf16 matmul tolerance).
    ref = generator_reference(z, params, img_shape)
    assert bool(jnp.allclose(img, ref, atol=5e-2, rtol=5e-2)), (
        float(jnp.max(jnp.abs(img - ref))))

    print("KERNEL_OK")
</pallas_src>

<mosaic_0001>
module attributes {stable_mosaic.version = 11 : i64} {
  func.func @_generator_kernel(%arg0: memref<1xi32, #tpu.memory_space<smem>>, %arg1: memref<1xf32, #tpu.memory_space<smem>>, %arg2: memref<16x32xf32, #tpu.memory_space<vmem>>, %arg3: memref<32x128xbf16, #tpu.memory_space<vmem>>, %arg4: memref<1x128xf32, #tpu.memory_space<vmem>>, %arg5: memref<128x256xbf16, #tpu.memory_space<vmem>>, %arg6: memref<1x256xf32, #tpu.memory_space<vmem>>, %arg7: memref<1x256xf32, #tpu.memory_space<vmem>>, %arg8: memref<256x512xbf16, #tpu.memory_space<vmem>>, %arg9: memref<1x512xf32, #tpu.memory_space<vmem>>, %arg10: memref<1x512xf32, #tpu.memory_space<vmem>>, %arg11: memref<512x1024xbf16, #tpu.memory_space<vmem>>, %arg12: memref<1x1024xf32, #tpu.memory_space<vmem>>, %arg13: memref<1x1024xf32, #tpu.memory_space<vmem>>, %arg14: memref<1024x256xbf16, #tpu.memory_space<vmem>>, %arg15: memref<1x256xf32, #tpu.memory_space<vmem>>, %arg16: memref<16x256xf32, #tpu.memory_space<vmem>>) attributes {dimension_semantics = [], scalar_prefetch = 0 : i64, scratch_operands = 0 : i64, tpu.core_type = #tpu.core_type<tc>} {
    %c0 = arith.constant 0 : index
    %0 = memref.load %arg0[%c0] : memref<1xi32, #tpu.memory_space<smem>>
    %c0_0 = arith.constant 0 : index
    %1 = memref.load %arg1[%c0_0] : memref<1xf32, #tpu.memory_space<smem>>
    %2 = tpu.iota {dimensions = array<i32: 0>} : vector<16x1xi32>
    %3 = vector.broadcast %0 : i32 to vector<16x1xi32>
    %4 = arith.cmpi slt, %2, %3 : vector<16x1xi32>
    %5 = arith.extui %4 : vector<16x1xi1> to vector<16x1xi32>
    %6 = arith.sitofp %5 : vector<16x1xi32> to vector<16x1xf32>
    %c0_1 = arith.constant 0 : index
    %c0_2 = arith.constant 0 : index
    %7 = vector.load %arg2[%c0_1, %c0_2] : memref<16x32xf32, #tpu.memory_space<vmem>>, vector<16x32xf32>
    %8 = arith.truncf %7 : vector<16x32xf32> to vector<16x32xbf16>
    %c0_3 = arith.constant 0 : index
    %c0_4 = arith.constant 0 : index
    %9 = vector.load %arg3[%c0_3, %c0_4] : memref<32x128xbf16, #tpu.memory_space<vmem>>, vector<32x128xbf16>
    %cst = arith.constant dense<0.000000e+00> : vector<16x128xf32>
    %10 = tpu.matmul %8, %9, %cst {dimension_numbers = #tpu.dot_dimension_numbers<[1], [0], [0], [1], [0, 0, 1, 1], [], []>} : vector<16x32xbf16>, vector<32x128xbf16>, vector<16x128xf32> -> vector<16x128xf32>
    %c0_5 = arith.constant 0 : index
    %c0_6 = arith.constant 0 : index
    %11 = vector.load %arg4[%c0_5, %c0_6] : memref<1x128xf32, #tpu.memory_space<vmem>>, vector<1x128xf32>
    %12 = vector.broadcast %11 : vector<1x128xf32> to vector<16x128xf32>
    %13 = arith.addf %10, %12 : vector<16x128xf32>
    %cst_7 = arith.constant 0.000000e+00 : f32
    %14 = vector.broadcast %cst_7 : f32 to vector<16x128xf32>
    %15 = arith.cmpf ogt, %13, %14 : vector<16x128xf32>
    %cst_8 = arith.constant 2.000000e-01 : f32
    %16 = vector.broadcast %cst_8 : f32 to vector<16x128xf32>
    %17 = arith.mulf %16, %13 : vector<16x128xf32>
    %18 = arith.select %15, %13, %17 : vector<16x128xi1>, vector<16x128xf32>
    %19 = arith.truncf %18 : vector<16x128xf32> to vector<16x128xbf16>
    %c0_9 = arith.constant 0 : index
    %c0_10 = arith.constant 0 : index
    %20 = vector.load %arg5[%c0_9, %c0_10] : memref<128x256xbf16, #tpu.memory_space<vmem>>, vector<128x256xbf16>
    %cst_11 = arith.constant dense<0.000000e+00> : vector<16x256xf32>
    %21 = tpu.matmul %19, %20, %cst_11 {dimension_numbers = #tpu.dot_dimension_numbers<[1], [0], [0], [1], [0, 0, 1, 1], [], []>} : vector<16x128xbf16>, vector<128x256xbf16>, vector<16x256xf32> -> vector<16x256xf32>
    %22 = vector.broadcast %6 : vector<16x1xf32> to vector<16x256xf32>
    %23 = arith.mulf %21, %22 : vector<16x256xf32>
    %cst_12 = arith.constant dense<0.000000e+00> : vector<256xf32>
    %24 = vector.multi_reduction <add>, %23, %cst_12 [0] : vector<16x256xf32> to vector<256xf32>
    %25 = vector.shape_cast %24 : vector<256xf32> to vector<1x256xf32>
    %26 = vector.broadcast %1 : f32 to vector<1x256xf32>
    %27 = arith.mulf %25, %26 : vector<1x256xf32>
    %28 = arith.mulf %23, %23 : vector<16x256xf32>
    %cst_13 = arith.constant dense<0.000000e+00> : vector<256xf32>
    %29 = vector.multi_reduction <add>, %28, %cst_13 [0] : vector<16x256xf32> to vector<256xf32>
    %30 = vector.shape_cast %29 : vector<256xf32> to vector<1x256xf32>
    %31 = vector.broadcast %1 : f32 to vector<1x256xf32>
    %32 = arith.mulf %30, %31 : vector<1x256xf32>
    %33 = arith.mulf %27, %27 : vector<1x256xf32>
    %34 = arith.subf %32, %33 : vector<1x256xf32>
    %cst_14 = arith.constant 8.000000e-01 : f32
    %35 = vector.broadcast %cst_14 : f32 to vector<1x256xf32>
    %36 = arith.addf %34, %35 : vector<1x256xf32>
    %37 = math.rsqrt %36 : vector<1x256xf32>
    %c0_15 = arith.constant 0 : index
    %c0_16 = arith.constant 0 : index
    %38 = vector.load %arg6[%c0_15, %c0_16] : memref<1x256xf32, #tpu.memory_space<vmem>>, vector<1x256xf32>
    %39 = arith.mulf %37, %38 : vector<1x256xf32>
    %40 = vector.broadcast %27 : vector<1x256xf32> to vector<16x256xf32>
    %41 = arith.subf %23, %40 : vector<16x256xf32>
    %42 = vector.broadcast %39 : vector<1x256xf32> to vector<16x256xf32>
    %43 = arith.mulf %41, %42 : vector<16x256xf32>
    %c0_17 = arith.constant 0 : index
    %c0_18 = arith.constant 0 : index
    %44 = vector.load %arg7[%c0_17, %c0_18] : memref<1x256xf32, #tpu.memory_space<vmem>>, vector<1x256xf32>
    %45 = vector.broadcast %44 : vector<1x256xf32> to vector<16x256xf32>
    %46 = arith.addf %43, %45 : vector<16x256xf32>
    %cst_19 = arith.constant 0.000000e+00 : f32
    %47 = vector.broadcast %cst_19 : f32 to vector<16x256xf32>
    %48 = arith.cmpf ogt, %46, %47 : vector<16x256xf32>
    %cst_20 = arith.constant 2.000000e-01 : f32
    %49 = vector.broadcast %cst_20 : f32 to vector<16x256xf32>
    %50 = arith.mulf %49, %46 : vector<16x256xf32>
    %51 = arith.select %48, %46, %50 : vector<16x256xi1>, vector<16x256xf32>
    %52 = arith.truncf %51 : vector<16x256xf32> to vector<16x256xbf16>
    %c0_21 = arith.constant 0 : index
    %c0_22 = arith.constant 0 : index
    %53 = vector.load %arg8[%c0_21, %c0_22] : memref<256x512xbf16, #tpu.memory_space<vmem>>, vector<256x512xbf16>
    %cst_23 = arith.constant dense<0.000000e+00> : vector<16x512xf32>
    %54 = tpu.matmul %52, %53, %cst_23 {dimension_numbers = #tpu.dot_dimension_numbers<[1], [0], [0], [1], [0, 0, 1, 1], [], []>} : vector<16x256xbf16>, vector<256x512xbf16>, vector<16x512xf32> -> vector<16x512xf32>
    %55 = vector.broadcast %6 : vector<16x1xf32> to vector<16x512xf32>
    %56 = arith.mulf %54, %55 : vector<16x512xf32>
    %cst_24 = arith.constant dense<0.000000e+00> : vector<512xf32>
    %57 = vector.multi_reduction <add>, %56, %cst_24 [0] : vector<16x512xf32> to vector<512xf32>
    %58 = vector.shape_cast %57 : vector<512xf32> to vector<1x512xf32>
    %59 = vector.broadcast %1 : f32 to vector<1x512xf32>
    %60 = arith.mulf %58, %59 : vector<1x512xf32>
    %61 = arith.mulf %56, %56 : vector<16x512xf32>
    %cst_25 = arith.constant dense<0.000000e+00> : vector<512xf32>
    %62 = vector.multi_reduction <add>, %61, %cst_25 [0] : vector<16x512xf32> to vector<512xf32>
    %63 = vector.shape_cast %62 : vector<512xf32> to vector<1x512xf32>
    %64 = vector.broadcast %1 : f32 to vector<1x512xf32>
    %65 = arith.mulf %63, %64 : vector<1x512xf32>
    %66 = arith.mulf %60, %60 : vector<1x512xf32>
    %67 = arith.subf %65, %66 : vector<1x512xf32>
    %cst_26 = arith.constant 8.000000e-01 : f32
    %68 = vector.broadcast %cst_26 : f32 to vector<1x512xf32>
    %69 = arith.addf %67, %68 : vector<1x512xf32>
    %70 = math.rsqrt %69 : vector<1x512xf32>
    %c0_27 = arith.constant 0 : index
    %c0_28 = arith.constant 0 : index
    %71 = vector.load %arg9[%c0_27, %c0_28] : memref<1x512xf32, #tpu.memory_space<vmem>>, vector<1x512xf32>
    %72 = arith.mulf %70, %71 : vector<1x512xf32>
    %73 = vector.broadcast %60 : vector<1x512xf32> to vector<16x512xf32>
    %74 = arith.subf %56, %73 : vector<16x512xf32>
    %75 = vector.broadcast %72 : vector<1x512xf32> to vector<16x512xf32>
    %76 = arith.mulf %74, %75 : vector<16x512xf32>
    %c0_29 = arith.constant 0 : index
    %c0_30 = arith.constant 0 : index
    %77 = vector.load %arg10[%c0_29, %c0_30] : memref<1x512xf32, #tpu.memory_space<vmem>>, vector<1x512xf32>
    %78 = vector.broadcast %77 : vector<1x512xf32> to vector<16x512xf32>
    %79 = arith.addf %76, %78 : vector<16x512xf32>
    %cst_31 = arith.constant 0.000000e+00 : f32
    %80 = vector.broadcast %cst_31 : f32 to vector<16x512xf32>
    %81 = arith.cmpf ogt, %79, %80 : vector<16x512xf32>
    %cst_32 = arith.constant 2.000000e-01 : f32
    %82 = vector.broadcast %cst_32 : f32 to vector<16x512xf32>
    %83 = arith.mulf %82, %79 : vector<16x512xf32>
    %84 = arith.select %81, %79, %83 : vector<16x512xi1>, vector<16x512xf32>
    %85 = arith.truncf %84 : vector<16x512xf32> to vector<16x512xbf16>
    %c0_33 = arith.constant 0 : index
    %c0_34 = arith.constant 0 : index
    %86 = vector.load %arg11[%c0_33, %c0_34] : memref<512x1024xbf16, #tpu.memory_space<vmem>>, vector<512x1024xbf16>
    %cst_35 = arith.constant dense<0.000000e+00> : vector<16x1024xf32>
    %87 = tpu.matmul %85, %86, %cst_35 {dimension_numbers = #tpu.dot_dimension_numbers<[1], [0], [0], [1], [0, 0, 1, 1], [], []>} : vector<16x512xbf16>, vector<512x1024xbf16>, vector<16x1024xf32> -> vector<16x1024xf32>
    %88 = vector.broadcast %6 : vector<16x1xf32> to vector<16x1024xf32>
    %89 = arith.mulf %87, %88 : vector<16x1024xf32>
    %cst_36 = arith.constant dense<0.000000e+00> : vector<1024xf32>
    %90 = vector.multi_reduction <add>, %89, %cst_36 [0] : vector<16x1024xf32> to vector<1024xf32>
    %91 = vector.shape_cast %90 : vector<1024xf32> to vector<1x1024xf32>
    %92 = vector.broadcast %1 : f32 to vector<1x1024xf32>
    %93 = arith.mulf %91, %92 : vector<1x1024xf32>
    %94 = arith.mulf %89, %89 : vector<16x1024xf32>
    %cst_37 = arith.constant dense<0.000000e+00> : vector<1024xf32>
    %95 = vector.multi_reduction <add>, %94, %cst_37 [0] : vector<16x1024xf32> to vector<1024xf32>
    %96 = vector.shape_cast %95 : vector<1024xf32> to vector<1x1024xf32>
    %97 = vector.broadcast %1 : f32 to vector<1x1024xf32>
    %98 = arith.mulf %96, %97 : vector<1x1024xf32>
    %99 = arith.mulf %93, %93 : vector<1x1024xf32>
    %100 = arith.subf %98, %99 : vector<1x1024xf32>
    %cst_38 = arith.constant 8.000000e-01 : f32
    %101 = vector.broadcast %cst_38 : f32 to vector<1x1024xf32>
    %102 = arith.addf %100, %101 : vector<1x1024xf32>
    %103 = math.rsqrt %102 : vector<1x1024xf32>
    %c0_39 = arith.constant 0 : index
    %c0_40 = arith.constant 0 : index
    %104 = vector.load %arg12[%c0_39, %c0_40] : memref<1x1024xf32, #tpu.memory_space<vmem>>, vector<1x1024xf32>
    %105 = arith.mulf %103, %104 : vector<1x1024xf32>
    %106 = vector.broadcast %93 : vector<1x1024xf32> to vector<16x1024xf32>
    %107 = arith.subf %89, %106 : vector<16x1024xf32>
    %108 = vector.broadcast %105 : vector<1x1024xf32> to vector<16x1024xf32>
    %109 = arith.mulf %107, %108 : vector<16x1024xf32>
    %c0_41 = arith.constant 0 : index
    %c0_42 = arith.constant 0 : index
    %110 = vector.load %arg13[%c0_41, %c0_42] : memref<1x1024xf32, #tpu.memory_space<vmem>>, vector<1x1024xf32>
    %111 = vector.broadcast %110 : vector<1x1024xf32> to vector<16x1024xf32>
    %112 = arith.addf %109, %111 : vector<16x1024xf32>
    %cst_43 = arith.constant 0.000000e+00 : f32
    %113 = vector.broadcast %cst_43 : f32 to vector<16x1024xf32>
    %114 = arith.cmpf ogt, %112, %113 : vector<16x1024xf32>
    %cst_44 = arith.constant 2.000000e-01 : f32
    %115 = vector.broadcast %cst_44 : f32 to vector<16x1024xf32>
    %116 = arith.mulf %115, %112 : vector<16x1024xf32>
    %117 = arith.select %114, %112, %116 : vector<16x1024xi1>, vector<16x1024xf32>
    %118 = arith.truncf %117 : vector<16x1024xf32> to vector<16x1024xbf16>
    %c0_45 = arith.constant 0 : index
    %c0_46 = arith.constant 0 : index
    %119 = vector.load %arg14[%c0_45, %c0_46] : memref<1024x256xbf16, #tpu.memory_space<vmem>>, vector<1024x256xbf16>
    %cst_47 = arith.constant dense<0.000000e+00> : vector<16x256xf32>
    %120 = tpu.matmul %118, %119, %cst_47 {dimension_numbers = #tpu.dot_dimension_numbers<[1], [0], [0], [1], [0, 0, 1, 1], [], []>} : vector<16x1024xbf16>, vector<1024x256xbf16>, vector<16x256xf32> -> vector<16x256xf32>
    %c0_48 = arith.constant 0 : index
    %c0_49 = arith.constant 0 : index
    %121 = vector.load %arg15[%c0_48, %c0_49] : memref<1x256xf32, #tpu.memory_space<vmem>>, vector<1x256xf32>
    %122 = vector.broadcast %121 : vector<1x256xf32> to vector<16x256xf32>
    %123 = arith.addf %120, %122 : vector<16x256xf32>
    %124 = math.tanh %123 : vector<16x256xf32>
    %c0_50 = arith.constant 0 : index
    %c0_51 = arith.constant 0 : index
    %125 = vector.load %arg16[%c0_50, %c0_51] : memref<16x256xf32, #tpu.memory_space<vmem>>, vector<16x256xf32>
    tpu.vector_store %arg16[%c0_50, %c0_51], %124 {strides = array<i32>} : memref<16x256xf32, #tpu.memory_space<vmem>>, vector<16x256xf32>,
    return
  }
}

</mosaic_0001>

<bundles_post_ra>
// kernel: tpu_custom_call.1
= control target key start
LH: loop header
LB: loop body
LE: loop exit
PB: predicated region body
PF: predicated region fallthrough
CT: control target
= control target key end

     0   :  { %s6172_s0 = inlined_call_operand.<no memory space> [shape: s32[1], index: 0, kind: input, shape index: {}]   ;;  %s6173_s1 = inlined_call_operand.<no memory space> [shape: f32[1], index: 1, kind: input, shape index: {}]   ;;  %s6174_s2 = inlined_call_operand.hbm [shape: f32[16,32], index: 2, kind: input, shape index: {}]   ;;  %s6175_s3 = inlined_call_operand.hbm [shape: bf16[32,128], index: 3, kind: input, shape index: {}]   ;;  %s6176_s4 = inlined_call_operand.hbm [shape: f32[1,128], index: 4, kind: input, shape index: {}]   ;;  %s6177_s5 = inlined_call_operand.hbm [shape: bf16[128,256], index: 5, kind: input, shape index: {}]   ;;  %s6178_s6 = inlined_call_operand.hbm [shape: f32[1,256], index: 6, kind: input, shape index: {}]   ;;  %s6179_s7 = inlined_call_operand.hbm [shape: f32[1,256], index: 7, kind: input, shape index: {}]   ;;  %s6180_s8 = inlined_call_operand.hbm [shape: bf16[256,512], index: 8, kind: input, shape index: {}]   ;;  %s6181_s9 = inlined_call_operand.hbm [shape: f32[1,512], index: 9, kind: input, shape index: {}]   ;;  %s6182_s10 = inlined_call_operand.hbm [shape: f32[1,512], index: 10, kind: input, shape index: {}]   ;;  %s6183_s11 = inlined_call_operand.hbm [shape: bf16[512,1024], index: 11, kind: input, shape index: {}]   ;;  %s6184_s12 = inlined_call_operand.vmem [shape: f32[1,1024], index: 12, kind: input, shape index: {}]   ;;  %s6185_s13 = inlined_call_operand.vmem [shape: f32[1,1024], index: 13, kind: input, shape index: {}]   ;;  %s6186_s14 = inlined_call_operand.hbm [shape: bf16[1024,256], index: 14, kind: input, shape index: {}]   ;;  %s6187_s15 = inlined_call_operand.vmem [shape: f32[1,256], index: 15, kind: input, shape index: {}]   ;;  %s6188_s16 = inlined_call_operand.hbm [shape: f32[16,256], index: 16, kind: output, shape index: {}]  }
   0x1   :  { %6189 = sst [smem:[#allocation30_spill]] %s6172_s0 }
   0x2   :  { %23 = vsyncpa [#allocation5], 0 }
   0x3   :  { %24 = vsyncpa [#allocation8], 0 }
   0x4   :  { %25 = vsyncpa [#allocation11], 0 }
   0x5   :  { %26 = vsyncpa [#allocation14], 0 }
   0x6   :  { %27 = vsyncpa [#allocation17], 0 }
   0x7   :  { %28 = vsyncpa [#allocation20], 0 }
   0x8   :  { %29 = vsyncpa [#allocation6], 0  ;;  %s5606_s21 = smov [#allocation7]  }
   0x9   :  { %s51_s22 = sshll.u32 %s5606_s21, 4  ;;  %s52_s22 = int_to_ptr.vmem [resolvable:$true] %s51_s22 }
   0xa   :  { %s5360_s23 = scalar_lea.vmem %s52_s22, 256  ;;  %p5365_p1 = scmp.lt.s32.totalorder %s52_s22, %s52_s22 }
   0xb   :  { %p5361_p0 = scmp.ne.s32.totalorder %s52_s22, %s5360_s23  ;;  %p5366_p2 = scmp.lt.s32.totalorder %s5360_s23, %s5360_s23 }
   0xd   :  { %p5367_p3 = por %p5366_p2, %p5365_p1 }
   0xf   :  { %p5368_p4 = pnand %p5367_p3, %p5361_p0 }
  0x11   :  { %5371 = shalt.err (!%p5368_p4)
}
  0x12   :  { %s5607_s24 = smov 64   ;;  %s5608_s25 = smov 4  }
  0x13   :  { %57 = dma.hbm_to_vmem [thread:$0]  %s6175_s3, 256, %s52_s22, [#allocation8], %s5607_s24, %s5607_s24, %s5608_s25  }
  0x14   :  { %s5609_s28 = smov [#allocation10]   ;;  %s5610_s30 = smov [#allocation13]  }
  0x15   :  { %s73_s29 = sshll.u32 %s5609_s28, 4  ;;  %s96_s0 = sshll.u32 %s5610_s30, 4  ;;  %s74_s29 = int_to_ptr.vmem [resolvable:$true] %s73_s29  ;;  %s97_s0 = int_to_ptr.vmem [resolvable:$true] %s96_s0 }
  0x16   :  { %s5380_s17 = scalar_lea.vmem %s74_s29, 2048  ;;  %p5385_p6 = scmp.lt.s32.totalorder %s74_s29, %s74_s29 }
  0x17   :  { %p5381_p5 = scmp.ne.s32.totalorder %s74_s29, %s5380_s17  ;;  %p5386_p7 = scmp.lt.s32.totalorder %s5380_s17, %s5380_s17 }
  0x19   :  { %p5387_p8 = por %p5386_p7, %p5385_p6 }
  0x1b   :  { %p5388_p9 = pnand %p5387_p8, %p5381_p5 }
  0x1d   :  { %5391 = shalt.err (!%p5388_p9)
}
  0x1e   :  { %s5611_s18 = smov 128   ;;  %s5612_s19 = smov 8  }
  0x1f   :  { %79 = dma.hbm_to_vmem [thread:$0]  %s6177_s5, 2048, %s74_s29, [#allocation11], %s5611_s18, %s5611_s18, %s5612_s19  }
  0x20   :  { %s5400_s3 = scalar_lea.vmem %s97_s0, 32  ;;  %p5405_p11 = scmp.lt.s32.totalorder %s97_s0, %s97_s0 }
  0x21   :  { %p5401_p10 = scmp.ne.s32.totalorder %s97_s0, %s5400_s3  ;;  %p5406_p12 = scmp.lt.s32.totalorder %s5400_s3, %s5400_s3 }
  0x23   :  { %p5407_p13 = por %p5406_p12, %p5405_p11 }
  0x25   :  { %p5408_p0 = pnand %p5407_p13, %p5401_p10 }
  0x27   :  { %5411 = shalt.err (!%p5408_p0)
}
  0x28   :  { %99 = dma.hbm_to_vmem [thread:$0]  %s6179_s7, 32, %s97_s0, [#allocation14]  }
  0x29   :  { %s5613_s24 = smov [#allocation16]   ;;  %s5614_s26 = smov [#allocation19]  }
  0x2a   :  { %s118_s25 = sshll.u32 %s5613_s24, 4  ;;  %s137_s27 = sshll.u32 %s5614_s26, 4  ;;  %s119_s25 = int_to_ptr.vmem [resolvable:$true] %s118_s25  ;;  %s138_s27 = int_to_ptr.vmem [resolvable:$true] %s137_s27 }
  0x2b   :  { %s5420_s28 = scalar_lea.vmem %s119_s25, 64  ;;  %p5425_p2 = scmp.lt.s32.totalorder %s119_s25, %s119_s25 }
  0x2c   :  { %p5421_p1 = scmp.ne.s32.totalorder %s119_s25, %s5420_s28  ;;  %p5426_p3 = scmp.lt.s32.totalorder %s5420_s28, %s5420_s28 }
  0x2e   :  { %p5427_p4 = por %p5426_p3, %p5425_p2 }
  0x30   :  { %p5428_p5 = pnand %p5427_p4, %p5421_p1 }
  0x32   :  { %5431 = shalt.err (!%p5428_p5)
}
  0x33   :  { %121 = dma.hbm_to_vmem [thread:$0]  %s6181_s9, 64, %s119_s25, [#allocation17]  }
  0x34   :  { %s5440_s30 = scalar_lea.vmem %s138_s27, 32768  ;;  %p5445_p7 = scmp.lt.s32.totalorder %s138_s27, %s138_s27 }
  0x35   :  { %p5441_p6 = scmp.ne.s32.totalorder %s138_s27, %s5440_s30  ;;  %p5446_p8 = scmp.lt.s32.totalorder %s5440_s30, %s5440_s30 }
  0x37   :  { %p5447_p9 = por %p5446_p8, %p5445_p7 }
  0x39   :  { %p5448_p10 = pnand %p5447_p9, %p5441_p6 }
  0x3b   :  { %5451 = shalt.err (!%p5448_p10)
}
  0x3c   :  { %s5615_s7 = smov 512   ;;  %s5616_s0 = smov 32  }
  0x3d   :  { %143 = dma.hbm_to_vmem [thread:$0]  %s6183_s11, 32768, %s138_s27, [#allocation20], %s5615_s7, %s5615_s7, %s5616_s0  }
  0x3e   :  { %s5617_s21 = smov [#allocation4]   ;;  %s5618_s22 = smov [#allocation9]  }
  0x3f   :  { %s39_s3 = sshll.u32 %s5617_s21, 4  ;;  %s64_s23 = sshll.u32 %s5618_s22, 4  ;;  %s40_s3 = int_to_ptr.vmem [resolvable:$true] %s39_s3  ;;  %s65_s23 = int_to_ptr.vmem [resolvable:$true] %s64_s23 }
  0x40   :  { %s5460_s9 = scalar_lea.vmem %s40_s3, 256  ;;  %p5465_p12 = scmp.lt.s32.totalorder %s40_s3, %s40_s3 }
  0x41   :  { %p5461_p11 = scmp.ne.s32.totalorder %s40_s3, %s5460_s9  ;;  %p5466_p13 = scmp.lt.s32.totalorder %s5460_s9, %s5460_s9 }
  0x43   :  { %p5467_p0 = por %p5466_p13, %p5465_p12 }
  0x45   :  { %p5468_p1 = pnand %p5467_p0, %p5461_p11 }
  0x47   :  { %5471 = shalt.err (!%p5468_p1)
}
  0x48   :  { %45 = dma.hbm_to_vmem [thread:$0]  %s6174_s2, 256, %s40_s3, [#allocation5], %s5611_s18, %s5611_s18, %s5612_s19  }
  0x49   :  { %s5480_s11 = scalar_lea.vmem %s65_s23, 16  ;;  %s5484_s26 = scalar_lea.vmem %s65_s23, 32 }
  0x4a   :  { %p5481_p2 = scmp.ne.s32.totalorder %s65_s23, %s5480_s11  ;;  %p5485_p3 = scmp.lt.s32.totalorder %s65_s23, %s65_s23 }
  0x4b   :  { %p5486_p4 = scmp.lt.s32.totalorder %s5484_s26, %s5480_s11 }
  0x4d   :  { %p5487_p5 = por %p5486_p4, %p5485_p3 }
  0x4f   :  { %p5488_p6 = pnand %p5487_p5, %p5481_p2 }
  0x51   :  { %5491 = shalt.err (!%p5488_p6)
}
  0x52   :  { %67 = dma.hbm_to_vmem [thread:$0]  %s6176_s4, 16, %s65_s23, [#allocation8]  }
  0x53   :  { %s5619_s5 = smov [#allocation12]   ;;  %s5620_s30 = smov [#allocation15]  }
  0x54   :  { %s86_s29 = sshll.u32 %s5619_s5, 4  ;;  %s105_s7 = sshll.u32 %s5620_s30, 4  ;;  %s87_s29 = int_to_ptr.vmem [resolvable:$true] %s86_s29  ;;  %s106_s7 = int_to_ptr.vmem [resolvable:$true] %s105_s7 }
  0x55   :  { %s5500_s0 = scalar_lea.vmem %s87_s29, 32  ;;  %p5505_p8 = scmp.lt.s32.totalorder %s87_s29, %s87_s29 }
  0x56   :  { %p5501_p7 = scmp.ne.s32.totalorder %s87_s29, %s5500_s0  ;;  %p5506_p9 = scmp.lt.s32.totalorder %s5500_s0, %s5500_s0 }
  0x58   :  { %p5507_p10 = por %p5506_p9, %p5505_p8 }
  0x5a   :  { %p5508_p11 = pnand %p5507_p10, %p5501_p7 }
  0x5c   :  { %5511 = shalt.err (!%p5508_p11)
}
  0x5d   :  { %89 = dma.hbm_to_vmem [thread:$0]  %s6178_s6, 32, %s87_s29, [#allocation11]  }
  0x5e   :  { %s5520_s20 = scalar_lea.vmem %s106_s7, 8192  ;;  %p5525_p13 = scmp.lt.s32.totalorder %s106_s7, %s106_s7 }
  0x5f   :  { %p5521_p12 = scmp.ne.s32.totalorder %s106_s7, %s5520_s20  ;;  %p5526_p0 = scmp.lt.s32.totalorder %s5520_s20, %s5520_s20 }
  0x61   :  { %p5527_p1 = por %p5526_p0, %p5525_p13 }
  0x63   :  { %p5528_p2 = pnand %p5527_p1, %p5521_p12 }
  0x65   :  { %5531 = shalt.err (!%p5528_p2)
}
  0x66   :  { %s5621_s4 = smov 256   ;;  %s5622_s21 = smov 16  }
  0x67   :  { %111 = dma.hbm_to_vmem [thread:$0]  %s6180_s8, 8192, %s106_s7, [#allocation14], %s5621_s4, %s5621_s4, %s5622_s21  }
  0x68   :  { %s5623_s23 = smov [#allocation18]   ;;  %s5624_s6 = smov [#allocation21]  }
  0x69   :  { %s128_s9 = sshll.u32 %s5623_s23, 4  ;;  %s153_s24 = sshll.u32 %s5624_s6, 4  ;;  %s129_s9 = int_to_ptr.vmem [resolvable:$true] %s128_s9  ;;  %s154_s24 = int_to_ptr.vmem [resolvable:$true] %s153_s24 }
  0x6a   :  { %s5540_s25 = scalar_lea.vmem %s129_s9, 64  ;;  %p5545_p4 = scmp.lt.s32.totalorder %s129_s9, %s129_s9 }
  0x6b   :  { %p5541_p3 = scmp.ne.s32.totalorder %s129_s9, %s5540_s25  ;;  %p5546_p5 = scmp.lt.s32.totalorder %s5540_s25, %s5540_s25 }
  0x6d   :  { %p5547_p6 = por %p5546_p5, %p5545_p4 }
  0x6f   :  { %p5548_p7 = pnand %p5547_p6, %p5541_p3 }
  0x71   :  { %5551 = shalt.err (!%p5548_p7)
}
  0x72   :  { %131 = dma.hbm_to_vmem [thread:$0]  %s6182_s10, 64, %s129_s9, [#allocation17]  }
  0x73   :  { %s5560_s27 = scalar_lea.vmem %s154_s24, 16384  ;;  %p5565_p9 = scmp.lt.s32.totalorder %s154_s24, %s154_s24 }
  0x74   :  { %p5561_p8 = scmp.ne.s32.totalorder %s154_s24, %s5560_s27  ;;  %p5566_p10 = scmp.lt.s32.totalorder %s5560_s27, %s5560_s27 }
  0x76   :  { %p5567_p11 = por %p5566_p10, %p5565_p9 }
  0x78   :  { %p5568_p12 = pnand %p5567_p11, %p5561_p8 }
  0x7a   :  { %5571 = shalt.err (!%p5568_p12)
}
  0x7b   :  { %159 = dma.hbm_to_vmem [thread:$0]  %s6186_s14, 16384, %s154_s24, [#allocation20], %s5611_s18, %s5611_s18, %s5612_s19  }
  0x7c   :  { %5592 = dma.done.wait [#allocation5], 256  }
  0x7d   :  { %5593 = vsyncadd [#allocation5], 4294967040 }
  0x7e   :  { %5594 = dma.done.wait [#allocation8], 272  }
  0x7f   :  { %5595 = vsyncadd [#allocation8], 4294967024 }
  0x80   :  { %5596 = dma.done.wait [#allocation11], 2080  }
  0x81   :  { %5597 = vsyncadd [#allocation11], 4294965216 }
  0x82   :  { %5598 = dma.done.wait [#allocation14], 8224  }
  0x83   :  { %5599 = vsyncadd [#allocation14], 4294959072 }
  0x84   :  { %5600 = dma.done.wait [#allocation17], 128  }
  0x85   :  { %5601 = vsyncadd [#allocation17], 4294967168 }
  0x86   :  { %5602 = dma.done.wait [#allocation20], 49152  }
  0x87   :  { %5603 = vsyncadd [#allocation20], 4294918144  ;;  %v5625_v0 = vmov 0.0   ;;  %vm5626_vm0 = vmmov 0   ;;  %v5002_v1 = vld [vmem:[#allocation7 + $0x8] sm:$0xff]   ;;  %v5003_v2 = vld [vmem:[#allocation7] sm:$0xff]  }
  0x88   :  { %4971 = vmatprep.subr.bf16.mxu0 %v5625_v0  ;;  %4975 = vmatprep.mubr.msk.bf16.mxu0 %vm5626_vm0, %v5625_v0  ;;  %v208_v3 = vld [vmem:[#allocation4] sm:$0xff]  ;;  %v209_v4 = vld [vmem:[#allocation4 + $0x8] sm:$0xff]  ;;  %v5006_v6 = vld [vmem:[#allocation10 + $0x70] ss:$8 sps:$4 sm:$0xff]   ;;  %vm234_vm1 = vcmask 261120   ;;  %v5627_v22 = vmov 0  }
  0x89   :  { %4972 = vmatpush3.bf16.msra.mxu0 %v5002_v1  ;;  %v5004_v5 = vld [vmem:[#allocation10 + $0x74] ss:$8 sps:$4 sm:$0xff]   ;;  %v5007_v7 = vld [vmem:[#allocation10 + $0x64] ss:$8 sps:$4 sm:$0xff]   ;;  %v210_v8 = vpack.c.bf16 %v209_v4, %v208_v3  ;;  %v5009_v9 = vld [vmem:[#allocation10 + $0x60] ss:$8 sps:$4 sm:$0xff]   ;;  %414 = vmatprep.mubr.bf16.mxu1 %v5627_v22 }
  0x8a   :  { %4973 = vmatprep.subr.bf16.mxu0 %v5625_v0  ;;  %382 = vmatprep.subr.bf16.mxu1 %v5004_v5  ;;  %v5010_v10 = vld [vmem:[#allocation10 + $0x54] ss:$8 sps:$4 sm:$0xff]   ;;  %v5012_v11 = vld [vmem:[#allocation10 + $0x50] ss:$8 sps:$4 sm:$0xff]   ;;  %v5013_v12 = vld [vmem:[#allocation10 + $0x44] ss:$8 sps:$4 sm:$0xff]  }
  0x8b   :  { %383 = vmatpush1.bf16.msra.mxu1 %v5006_v6  ;;  %v5015_v13 = vld [vmem:[#allocation10 + $0x40] ss:$8 sps:$4 sm:$0xff]   ;;  %v5016_v14 = vld [vmem:[#allocation10 + $0x34] ss:$8 sps:$4 sm:$0xff]   ;;  %v5018_v15 = vld [vmem:[#allocation10 + $0x30] ss:$8 sps:$4 sm:$0xff]  }
  0x8c   :  { %384 = vmatprep.subr.bf16.mxu1 %v5007_v7  ;;  %v5019_v16 = vld [vmem:[#allocation10 + $0x24] ss:$8 sps:$4 sm:$0xff]   ;;  %v5021_v17 = vld [vmem:[#allocation10 + $0x20] ss:$8 sps:$4 sm:$0xff]   ;;  %v5022_v18 = vld [vmem:[#allocation10 + $0x14] ss:$8 sps:$4 sm:$0xff]  }
  0x8d   :  { %4974 = vmatpush3.bf16.msra.mxu0 %v5003_v2  ;;  %v5024_v19 = vld [vmem:[#allocation10 + $0x10] ss:$8 sps:$4 sm:$0xff]   ;;  %v5025_v20 = vld [vmem:[#allocation10 + $0x4] ss:$8 sps:$4 sm:$0xff]   ;;  %v5027_v21 = vld [vmem:[#allocation10] ss:$8 sps:$4 sm:$0xff]  }
  0x8e   :  { %v5028_v23 = vld [vmem:[#allocation15 + $0xe0] ss:$16 sps:$4 sm:$0xff]   ;;  %v5030_v24 = vld [vmem:[#allocation15 + $0xe4] ss:$16 sps:$4 sm:$0xff]   ;;  %v5033_v25 = vld [vmem:[#allocation15 + $0xec] ss:$16 sps:$4 sm:$0xff]  }
  0x8f   :  { %385 = vmatpush1.bf16.msra.mxu1 %v5009_v9  ;;  %v5036_v26 = vld [vmem:[#allocation15 + $0xc4] ss:$16 sps:$4 sm:$0xff]   ;;  %918 = vmatprep.subr.bf16.mxu0 %v5030_v24  ;;  %v5034_v27 = vld [vmem:[#allocation15 + $0xc0] ss:$16 sps:$4 sm:$0xff]   ;;  %v4500_v28 = vld [vmem:[#allocation9] ss:$0 sm:$0xff] }
  0x90   :  { %4976 = vmatmul.mubr.msk.bf16.vlgmr.msra.gmra.mxu0 %vm234_vm1, %v210_v8  ;;  %386 = vmatprep.subr.bf16.mxu1 %v5010_v10  ;;  %v5031_v39 = vld [vmem:[#allocation15 + $0xe8] ss:$16 sps:$4 sm:$0xff]   ;;  %v5039_v41 = vld [vmem:[#allocation15 + $0xcc] ss:$16 sps:$4 sm:$0xff]   ;;  %v5042_v43 = vld [vmem:[#allocation15 + $0xa4] ss:$16 sps:$4 sm:$0xff]  }
  0x91   :  { %919 = vmatpush1.bf16.msra.mxu0 %v5028_v23  ;;  %v5037_v42 = vld [vmem:[#allocation15 + $0xc8] ss:$16 sps:$4 sm:$0xff]   ;;  %v5045_v44 = vld [vmem:[#allocation15 + $0xac] ss:$16 sps:$4 sm:$0xff]   ;;  %v5040_v45 = vld [vmem:[#allocation15 + $0xa0] ss:$16 sps:$4 sm:$0xff]  }
  0x92   :  { %920 = vmatprep.subr.bf16.mxu0 %v5036_v26  ;;  %v5043_v46 = vld [vmem:[#allocation15 + $0xa8] ss:$16 sps:$4 sm:$0xff]   ;;  %v5048_v47 = vld [vmem:[#allocation15 + $0x84] ss:$16 sps:$4 sm:$0xff]   ;;  %v5051_v48 = vld [vmem:[#allocation15 + $0x8c] ss:$16 sps:$4 sm:$0xff]  }
  0x93   :  { %387 = vmatpush1.bf16.msra.mxu1 %v5012_v11  ;;  %v5046_v49 = vld [vmem:[#allocation15 + $0x80] ss:$16 sps:$4 sm:$0xff]   ;;  %v5049_v50 = vld [vmem:[#allocation15 + $0x88] ss:$16 sps:$4 sm:$0xff]   ;;  %v5054_v51 = vld [vmem:[#allocation15 + $0x64] ss:$16 sps:$4 sm:$0xff]  }
  0x94   :  { %388 = vmatprep.subr.bf16.mxu1 %v5013_v12  ;;  %v5057_v52 = vld [vmem:[#allocation15 + $0x6c] ss:$16 sps:$4 sm:$0xff]   ;;  %v5052_v53 = vld [vmem:[#allocation15 + $0x60] ss:$16 sps:$4 sm:$0xff]   ;;  %v5055_v54 = vld [vmem:[#allocation15 + $0x68] ss:$16 sps:$4 sm:$0xff]  }
  0x95   :  { %921 = vmatpush1.bf16.msra.mxu0 %v5034_v27  ;;  %v5060_v55 = vld [vmem:[#allocation15 + $0x44] ss:$16 sps:$4 sm:$0xff]   ;;  %v5063_v56 = vld [vmem:[#allocation15 + $0x4c] ss:$16 sps:$4 sm:$0xff]   ;;  %v5058_v57 = vld [vmem:[#allocation15 + $0x40] ss:$16 sps:$4 sm:$0xff]  }
  0x96   :  { %922 = vmatprep.subr.bf16.mxu0 %v5042_v43  ;;  %v5061_v58 = vld [vmem:[#allocation15 + $0x48] ss:$16 sps:$4 sm:$0xff]   ;;  %v5066_v59 = vld [vmem:[#allocation15 + $0x24] ss:$16 sps:$4 sm:$0xff]   ;;  %v5069_v60 = vld [vmem:[#allocation15 + $0x2c] ss:$16 sps:$4 sm:$0xff]  }
  0x97   :  { %389 = vmatpush1.bf16.msra.mxu1 %v5015_v13  ;;  %v5064_v61 = vld [vmem:[#allocation15 + $0x20] ss:$16 sps:$4 sm:$0xff]   ;;  %v5067_v62 = vld [vmem:[#allocation15 + $0x28] ss:$16 sps:$4 sm:$0xff]   ;;  %v5072_v63 = vld [vmem:[#allocation15 + $0x4] ss:$16 sps:$4 sm:$0xff]  }
  0x98   :  { %390 = vmatprep.subr.bf16.mxu1 %v5016_v14  ;;  %v5075_v1 = vld [vmem:[#allocation15 + $0xc] ss:$16 sps:$4 sm:$0xff]   ;;  %v5070_v2 = vld [vmem:[#allocation15] ss:$16 sps:$4 sm:$0xff]   ;;  %v5073_v3 = vld [vmem:[#allocation15 + $0x8] ss:$16 sps:$4 sm:$0xff]  }
  0x99   :  { %923 = vmatpush1.bf16.msra.mxu0 %v5040_v45  ;;  %v5078_v4 = vld [vmem:[#allocation15 + $0x1e4] ss:$16 sps:$4 sm:$0xff]   ;;  %v5081_v5 = vld [vmem:[#allocation15 + $0x1ec] ss:$16 sps:$4 sm:$0xff]   ;;  %v5076_v6 = vld [vmem:[#allocation15 + $0x1e0] ss:$16 sps:$4 sm:$0xff]  }
  0x9a   :  { %924 = vmatprep.subr.bf16.mxu0 %v5048_v47  ;;  %v5079_v7 = vld [vmem:[#allocation15 + $0x1e8] ss:$16 sps:$4 sm:$0xff]   ;;  %v5084_v8 = vld [vmem:[#allocation15 + $0x1c4] ss:$16 sps:$4 sm:$0xff]   ;;  %v5087_v9 = vld [vmem:[#allocation15 + $0x1cc] ss:$16 sps:$4 sm:$0xff]  }
  0x9b   :  { %391 = vmatpush1.bf16.msra.mxu1 %v5018_v15  ;;  %v5082_v10 = vld [vmem:[#allocation15 + $0x1c0] ss:$16 sps:$4 sm:$0xff]   ;;  %v5085_v11 = vld [vmem:[#allocation15 + $0x1c8] ss:$16 sps:$4 sm:$0xff]   ;;  %v5090_v12 = vld [vmem:[#allocation15 + $0x1a4] ss:$16 sps:$4 sm:$0xff]  }
  0x9c   :  { %392 = vmatprep.subr.bf16.mxu1 %v5019_v16  ;;  %v5093_v13 = vld [vmem:[#allocation15 + $0x1ac] ss:$16 sps:$4 sm:$0xff]   ;;  %v5088_v14 = vld [vmem:[#allocation15 + $0x1a0] ss:$16 sps:$4 sm:$0xff]   ;;  %v5091_v15 = vld [vmem:[#allocation15 + $0x1a8] ss:$16 sps:$4 sm:$0xff]  }
  0x9d   :  { %925 = vmatpush1.bf16.msra.mxu0 %v5046_v49  ;;  %v5096_v16 = vld [vmem:[#allocation15 + $0x184] ss:$16 sps:$4 sm:$0xff]   ;;  %v5100_v22 = vld [vmem:[#allocation15 + $0x160] ss:$16 sps:$4 sm:$0xff]   ;;  %v5103_v23 = vld [vmem:[#allocation15 + $0x168] ss:$16 sps:$4 sm:$0xff]  }
  0x9e   :  { %926 = vmatprep.subr.bf16.mxu0 %v5054_v51  ;;  %v5108_v24 = vld [vmem:[#allocation15 + $0x144] ss:$16 sps:$4 sm:$0xff]   ;;  %v5106_v26 = vld [vmem:[#allocation15 + $0x140] ss:$16 sps:$4 sm:$0xff]   ;;  %v5109_v27 = vld [vmem:[#allocation15 + $0x148] ss:$16 sps:$4 sm:$0xff]  }
  0x9f   :  { %393 = vmatpush1.bf16.msra.mxu1 %v5021_v17  ;;  %v5099_v17 = vld [vmem:[#allocation15 + $0x18c] ss:$16 sps:$4 sm:$0xff]   ;;  %s6190_s18 = sld [smem:[#allocation30_spill]] }
  0xa0   :  { %394 = vmatprep.subr.bf16.mxu1 %v5022_v18  ;;  %v5094_v18 = vld [vmem:[#allocation15 + $0x180] ss:$16 sps:$4 sm:$0xff]  }
  0xa1   :  { %927 = vmatpush1.bf16.msra.mxu0 %v5052_v53 }
  0xa2   :  { %928 = vmatprep.subr.bf16.mxu0 %v5060_v55 }
  0xa3   :  { %395 = vmatpush1.bf16.msra.mxu1 %v5024_v19  ;;  %v5097_v19 = vld [vmem:[#allocation15 + $0x188] ss:$16 sps:$4 sm:$0xff]  }
  0xa4   :  { %396 = vmatprep.subr.bf16.mxu1 %v5025_v20  ;;  %v5102_v20 = vld [vmem:[#allocation15 + $0x164] ss:$16 sps:$4 sm:$0xff]  }
  0xa5   :  { %929 = vmatpush1.bf16.msra.mxu0 %v5058_v57 }
  0xa6   :  { %930 = vmatprep.subr.bf16.mxu0 %v5066_v59 }
  0xa7   :  { %397 = vmatpush1.bf16.msra.mxu1 %v5027_v21  ;;  %v5105_v21 = vld [vmem:[#allocation15 + $0x16c] ss:$16 sps:$4 sm:$0xff]  }
  0xa8   :  { %961 = vmatprep.subr.bf16.mxu1 %v5033_v25  ;;  %v5111_v25 = vld [vmem:[#allocation15 + $0x14c] ss:$16 sps:$4 sm:$0xff]  }
  0xa9   :  { %931 = vmatpush1.bf16.msra.mxu0 %v5064_v61 }
  0xaa   :  { %932 = vmatprep.subr.bf16.mxu0 %v5072_v63 }
  0xad   :  { %933 = vmatpush1.bf16.msra.mxu0 %v5070_v2 }
  0xae   :  { %934 = vmatprep.subr.bf16.mxu0 %v5078_v4 }
  0xb1   :  { %935 = vmatpush2.bf16.msra.mxu0 %v5076_v6 }
  0xb2   :  { %936 = vmatprep.subr.bf16.mxu0 %v5084_v8 }
  0xb5   :  { %937 = vmatpush2.bf16.msra.mxu0 %v5082_v10 }
  0xb6   :  { %938 = vmatprep.subr.bf16.mxu0 %v5090_v12 }
  0xb9   :  { %939 = vmatpush2.bf16.msra.mxu0 %v5088_v14 }
  0xba   :  { %940 = vmatprep.subr.bf16.mxu0 %v5096_v16 }
  0xbd   :  { %941 = vmatpush2.bf16.msra.mxu0 %v5094_v18  ;;  %v5818_v18 = vstv %s6173_s1 }
  0xbe   :  { %942 = vmatprep.subr.bf16.mxu0 %v5102_v20 }
  0xc1   :  { %943 = vmatpush2.bf16.msra.mxu0 %v5100_v22 }
  0xc2   :  { %944 = vmatprep.subr.bf16.mxu0 %v5108_v24 }
  0xc5   :  { %945 = vmatpush2.bf16.msra.mxu0 %v5106_v26 }
 0x150   :  { %v272_v29 = vpop.f32.mrf.mxu0 }
 0x151   :  { %v273_v30 = vadd.f32 %v4500_v28, %v272_v29  ;;  %v5117_v29 = vld [vmem:[#allocation15 + $0x12c] ss:$16 sps:$4 sm:$0xff]  }
 0x152   :  { %v4977_v31 = vpop.f32.mrf.mxu0 }
 0x153   :  { %v281_v33 = vmul.f32 0.2, %v273_v30  ;;  %vm279_vm2 = vcmp.gt.f32.partialorder %v273_v30, 0.0  ;;  %v5115_v31 = vld [vmem:[#allocation15 + $0x128] ss:$16 sps:$4 sm:$0xff]  }
 0x154   :  { %v275_v32 = vpop.f32.mrf.mxu0 }
 0x155   :  { %v276_v34 = vadd.f32 %v4500_v28, %v275_v32  ;;  %v283_v37 = vsel %vm279_vm2, %v273_v30, %v281_v33  ;;  %v5114_v28 = vld [vmem:[#allocation15 + $0x124] ss:$16 sps:$4 sm:$0xff]   ;;  %v5112_v30 = vld [vmem:[#allocation15 + $0x120] ss:$16 sps:$4 sm:$0xff]  }
 0x156   :  { %v4978_v35 = vpop.f32.mrf.mxu0  ;;  %946 = vmatprep.subr.bf16.mxu0 %v5114_v28  ;;  %v5120_v32 = vld [vmem:[#allocation15 + $0x104] ss:$16 sps:$4 sm:$0xff]   ;;  %v5118_v33 = vld [vmem:[#allocation15 + $0x100] ss:$16 sps:$4 sm:$0xff]  }
 0x157   :  { %vm280_vm3 = vcmp.gt.f32.partialorder %v276_v34, 0.0  ;;  %v282_v36 = vmul.f32 0.2, %v276_v34  ;;  %947 = vmatpush2.bf16.msra.mxu0 %v5112_v30  ;;  %v5123_v35 = vld [vmem:[#allocation15 + $0x10c] ss:$16 sps:$4 sm:$0xff]  }
 0x158   :  { %948 = vmatprep.subr.bf16.mxu0 %v5120_v32 }
 0x159   :  { %v284_v38 = vsel %vm280_vm3, %v276_v34, %v282_v36  ;;  %v5121_v34 = vld [vmem:[#allocation15 + $0x108] ss:$16 sps:$4 sm:$0xff]  }
 0x15a   :  { %v285_v40 = vpack.c.bf16 %v284_v38, %v283_v37  ;;  %v5762_v36 = vld [vmem:[#allocation19 + $0x1c0] sm:$0xff] }
 0x15b   :  { %949 = vmatpush2.bf16.msra.mxu0 %v5118_v33  ;;  %v5764_v37 = vld [vmem:[#allocation19 + $0x1e0] sm:$0xff] }
 0x15c   :  { %415 = vmatmul.mubr.bf16.vlgmr.msra.gmra.mxu1 %v285_v40  ;;  %v5766_v38 = vld [vmem:[#allocation19 + $0x5c0] sm:$0xff]  ;;  %v4641_v40 = vcombine.high %v5762_v36, %v5764_v37 }
 0x15d   :  { %962 = vmatpush1.bf16.msra.mxu1 %v5031_v39  ;;  %v4640_v39 = vcombine.low %v5762_v36, %v5764_v37  ;;  %v1248_v36 = vld [vmem:[#allocation19 + $0x100] sm:$0xff] }
 0x15e   :  { %963 = vmatprep.subr.bf16.mxu1 %v5039_v41  ;;  %v5772_v41 = vld [vmem:[#allocation19 + $0x5e0] sm:$0xff]  ;;  %2752 = vmatprep.subr.bf16.mxu0 %v4641_v40 }
 0x15f   :  { %v4769_v43 = vcombine.high %v5766_v38, %v5772_v41  ;;  %v1252_v37 = vld [vmem:[#allocation19 + $0x120] sm:$0xff] }
 0x161   :  { %964 = vmatpush1.bf16.msra.mxu1 %v5037_v42  ;;  %v4768_v42 = vcombine.low %v5766_v38, %v5772_v41  ;;  %v1376_v38 = vld [vmem:[#allocation19 + $0x500] sm:$0xff] }
 0x162   :  { %965 = vmatprep.subr.bf16.mxu1 %v5045_v44  ;;  %v198_v44 = vlaneseq  ;;  %v1380_v41 = vld [vmem:[#allocation19 + $0x520] sm:$0xff] }
 0x164   :  { %v5778_v45 = vshrl.u32 %v198_v44, 7  ;;  %v474_v44 = vld [vmem:[#allocation12] sm:$0x3] }
 0x165   :  { %966 = vmatpush1.bf16.msra.mxu1 %v5043_v46  ;;  %v201_v46 = vstv %s6190_s18 }
 0x166   :  { %967 = vmatprep.subr.bf16.mxu1 %v5051_v48  ;;  %v200_v47 = vadd.s32 8, %v5778_v45  ;;  %vm202_vm4 = vcmp.lt.s32.totalorder %v5778_v45, %v201_v46 }
 0x167   :  { %v5786_v48 = vsel %vm202_vm4, 1.0, %v5625_v0 }
 0x168   :  { %vm203_vm5 = vcmp.lt.s32.totalorder %v200_v47, %v201_v46  ;;  %v5828_v46 = vsub.s32 1, %v5778_v45 }
 0x169   :  { %968 = vmatpush1.bf16.msra.mxu1 %v5049_v50  ;;  %v5789_v50 = vsel %vm203_vm5, 1.0, %v5625_v0 }
 0x16a   :  { %969 = vmatprep.subr.bf16.mxu1 %v5057_v52 }
 0x16d   :  { %970 = vmatpush1.bf16.msra.mxu1 %v5055_v54 }
 0x16e   :  { %971 = vmatprep.subr.bf16.mxu1 %v5063_v56 }
 0x171   :  { %972 = vmatpush1.bf16.msra.mxu1 %v5061_v58 }
 0x172   :  { %973 = vmatprep.subr.bf16.mxu1 %v5069_v60 }
 0x175   :  { %974 = vmatpush1.bf16.msra.mxu1 %v5067_v62 }
 0x176   :  { %975 = vmatprep.subr.bf16.mxu1 %v5075_v1 }
 0x179   :  { %976 = vmatpush1.bf16.msra.mxu1 %v5073_v3 }
 0x17a   :  { %977 = vmatprep.subr.bf16.mxu1 %v5081_v5 }
 0x17d   :  { %978 = vmatpush2.bf16.msra.mxu1 %v5079_v7 }
 0x17e   :  { %979 = vmatprep.subr.bf16.mxu1 %v5087_v9 }
 0x181   :  { %980 = vmatpush2.bf16.msra.mxu1 %v5085_v11 }
 0x182   :  { %981 = vmatprep.subr.bf16.mxu1 %v5093_v13 }
 0x185   :  { %982 = vmatpush2.bf16.msra.mxu1 %v5091_v15 }
 0x186   :  { %983 = vmatprep.subr.bf16.mxu1 %v5099_v17 }
 0x189   :  { %984 = vmatpush2.bf16.msra.mxu1 %v5097_v19 }
 0x18a   :  { %985 = vmatprep.subr.bf16.mxu1 %v5105_v21 }
 0x18d   :  { %986 = vmatpush2.bf16.msra.mxu1 %v5103_v23 }
 0x18e   :  { %987 = vmatprep.subr.bf16.mxu1 %v5111_v25 }
 0x191   :  { %988 = vmatpush2.bf16.msra.mxu1 %v5109_v27 }
 0x192   :  { %989 = vmatprep.subr.bf16.mxu1 %v5117_v29 }
 0x195   :  { %990 = vmatpush2.bf16.msra.mxu1 %v5115_v31 }
 0x196   :  { %991 = vmatprep.subr.bf16.mxu1 %v5123_v35 }
 0x199   :  { %992 = vmatpush2.bf16.msra.mxu1 %v5121_v34 }
 0x19a   :  { %2795 = vmatprep.subr.bf16.mxu1 %v4769_v43  ;;  %v5825_v43 = vsub.s32 0, %v5778_v45 }
 0x19c   :  { %v479_v47 = vrot.slane %v474_v44, %v5825_v43 }
 0x21c   :  { %v416_v49 = vpop.f32.mrf.mxu1 }
 0x21d   :  { %v5792_v52 = vmul.f32 %v5786_v48, %v416_v49 }
 0x21e   :  { %v418_v51 = vpop.f32.mrf.mxu1 }
 0x21f   :  { %v5795_v53 = vmul.f32 %v5786_v48, %v418_v51  ;;  %v446_v57 = vmul.f32 %v5792_v52, %v5792_v52  ;;  %v504_v51 = vld [vmem:[#allocation13] sm:$0x3] }
 0x220   :  { %v420_v54 = vpop.f32.mrf.mxu1 }
 0x221   :  { %v5798_v55 = vmul.f32 %v5789_v50, %v420_v54  ;;  %v447_v60 = vmul.f32 %v5795_v53, %v5795_v53  ;;  %v483_v54 = vrot.slane %v474_v44, %v5828_v46  ;;  %v1240_v44 = vld [vmem:[#allocation19 + $0xc0] sm:$0xff] }
 0x222   :  { %v422_v56 = vpop.f32.mrf.mxu1 }
 0x223   :  { %v429_v58 = vadd.f32 %v5798_v55, %v5792_v52  ;;  %v448_v0 = vmul.f32 %v5798_v55, %v5798_v55  ;;  %v5807_v59 = vmul.f32 %v5789_v50, %v422_v56 }
 0x225   :  { %v430_v61 = vrot.slane %v429_v58, 4  ;;  %v450_v62 = vadd.f32 %v448_v0, %v446_v57  ;;  %v436_v63 = vadd.f32 %v5807_v59, %v5795_v53  ;;  %v449_v1 = vmul.f32 %v5807_v59, %v5807_v59 }
 0x227   :  { %v431_v2 = vadd.f32 %v430_v61, %v429_v58  ;;  %v451_v3 = vrot.slane %v450_v62, 4  ;;  %v437_v4 = vrot.slane %v436_v63, 4  ;;  %v457_v5 = vadd.f32 %v449_v1, %v447_v60 }
 0x228   :  { %v509_v61 = vrot.slane %v504_v51, %v5825_v43 }
 0x229   :  { %v432_v6 = vrot.slane %v431_v2, 2  ;;  %v452_v7 = vadd.f32 %v451_v3, %v450_v62  ;;  %v438_v8 = vadd.f32 %v437_v4, %v436_v63  ;;  %v458_v9 = vrot.slane %v457_v5, 4 }
 0x22b   :  { %v433_v10 = vadd.f32 %v432_v6, %v431_v2  ;;  %v453_v11 = vrot.slane %v452_v7, 2  ;;  %v439_v12 = vrot.slane %v438_v8, 2  ;;  %v459_v13 = vadd.f32 %v458_v9, %v457_v5 }
 0x22c   :  { %v513_v5 = vrot.slane %v504_v51, %v5828_v46 }
 0x22d   :  { %v434_v14 = vrot.slane %v433_v10, 1  ;;  %v454_v15 = vadd.f32 %v453_v11, %v452_v7  ;;  %v440_v16 = vadd.f32 %v439_v12, %v438_v8  ;;  %v460_v17 = vrot.slane %v459_v13, 2  ;;  %v1264_v12 = vld [vmem:[#allocation19 + $0x180] sm:$0xff] }
 0x22f   :  { %v435_v19 = vadd.f32 %v434_v14, %v433_v10  ;;  %v455_v20 = vrot.slane %v454_v15, 1  ;;  %v441_v21 = vrot.slane %v440_v16, 1  ;;  %v461_v22 = vadd.f32 %v460_v17, %v459_v13  ;;  %v1396_v17 = vld [vmem:[#allocation19 + $0x5a0] sm:$0xff] }
 0x231   :  { %v444_v23 = vmul.f32 %v5818_v18, %v435_v19  ;;  %v456_v24 = vadd.f32 %v455_v20, %v454_v15  ;;  %v442_v25 = vadd.f32 %v441_v21, %v440_v16  ;;  %v462_v26 = vrot.slane %v461_v22, 1  ;;  %v1268_v15 = vld [vmem:[#allocation19 + $0x1a0] sm:$0xff] }
 0x232   :  { %v1392_v16 = vld [vmem:[#allocation19 + $0x580] sm:$0xff] }
 0x233   :  { %v464_v27 = vmul.f32 %v456_v24, %v5818_v18  ;;  %v466_v28 = vmul.f32 %v444_v23, %v444_v23  ;;  %v445_v29 = vmul.f32 %v5818_v18, %v442_v25  ;;  %v463_v30 = vadd.f32 %v462_v26, %v461_v22 }
 0x234   :  { %v488_v58 = vsub.f32 %v5792_v52, %v444_v23  ;;  %v490_v0 = vsub.f32 %v5798_v55, %v444_v23  ;;  %v4633_v23 = vcombine.high %v1264_v12, %v1268_v15  ;;  %v4761_v24 = vcombine.high %v1392_v16, %v1396_v17 }
 0x235   :  { %v468_v31 = vsub.f32 %v464_v27, %v466_v28  ;;  %v465_v32 = vmul.f32 %v463_v30, %v5818_v18  ;;  %v467_v33 = vmul.f32 %v445_v29, %v445_v29  ;;  %v489_v2 = vsub.f32 %v5795_v53, %v445_v29  ;;  %v1256_v27 = vld [vmem:[#allocation19 + $0x140] sm:$0xff] }
 0x236   :  { %v491_v3 = vsub.f32 %v5807_v59, %v445_v29  ;;  %v4632_v25 = vcombine.low %v1264_v12, %v1268_v15  ;;  %v4760_v26 = vcombine.low %v1392_v16, %v1396_v17  ;;  %v1260_v28 = vld [vmem:[#allocation19 + $0x160] sm:$0xff] }
 0x237   :  { %v470_v34 = vadd.f32 0.8, %v468_v31  ;;  %v469_v35 = vsub.f32 %v465_v32, %v467_v33  ;;  %v1384_v29 = vld [vmem:[#allocation19 + $0x540] sm:$0xff]  ;;  %v4625_v30 = vcombine.high %v1256_v27, %v1260_v28  ;;  %v4624_v32 = vcombine.low %v1256_v27, %v1260_v28 }
 0x238   :  { %v1388_v31 = vld [vmem:[#allocation19 + $0x560] sm:$0xff] }
 0x239   :  { %5316 = vrsqrt.f32 %v470_v34  ;;  %v471_v40 = vadd.f32 0.8, %v469_v35  ;;  %v4752_v33 = vcombine.low %v1384_v29, %v1388_v31  ;;  %v4753_v34 = vcombine.high %v1384_v29, %v1388_v31  ;;  %v1344_v12 = vld [vmem:[#allocation19 + $0x400] sm:$0xff] }
 0x23a   :  { %v4744_v35 = vcombine.low %v1376_v38, %v1380_v41  ;;  %v1336_v16 = vld [vmem:[#allocation19 + $0x3c0] sm:$0xff] }
 0x23b   :  { %5318 = vrsqrt.f32 %v471_v40  ;;  %v4745_v40 = vcombine.high %v1376_v38, %v1380_v41  ;;  %v1340_v17 = vld [vmem:[#allocation19 + $0x3e0] sm:$0xff] }
 0x23c   :  { %v1456_v27 = vld [vmem:[#allocation19 + $0x780] sm:$0xff] }
 0x23d   :  { %v1460_v29 = vld [vmem:[#allocation19 + $0x7a0] sm:$0xff] }
 0x23e   :  { %v4824_v31 = vcombine.low %v1456_v27, %v1460_v29  ;;  %v1452_v38 = vld [vmem:[#allocation19 + $0x760] sm:$0xff] }
 0x246   :  { %v5317_v49 = vpop.eup %5316 }
 0x247   :  { %v486_v56 = vmul.f32 %v5317_v49, %v479_v47  ;;  %v1244_v47 = vld [vmem:[#allocation19 + $0xe0] sm:$0xff] }
 0x248   :  { %v5319_v57 = vpop.eup %5318  ;;  %v1368_v49 = vld [vmem:[#allocation19 + $0x4c0] sm:$0xff]  ;;  %v4609_v51 = vcombine.high %v1240_v44, %v1244_v47 }
 0x249   :  { %v495_v60 = vrot.slane %v486_v56, %v5825_v43  ;;  %v487_v62 = vmul.f32 %v5319_v57, %v483_v54  ;;  %v1372_v54 = vld [vmem:[#allocation19 + $0x4e0] sm:$0xff]  ;;  %v4608_v56 = vcombine.low %v1240_v44, %v1244_v47 }
 0x24a   :  { %v4736_v57 = vcombine.low %v1368_v49, %v1372_v54  ;;  %v1440_v44 = vld [vmem:[#allocation19 + $0x700] sm:$0xff] }
 0x24b   :  { %v500_v63 = vmul.f32 %v495_v60, %v488_v58  ;;  %v502_v1 = vmul.f32 %v495_v60, %v490_v0  ;;  %v499_v4 = vrot.slane %v487_v62, %v5825_v43  ;;  %v4737_v58 = vcombine.high %v1368_v49, %v1372_v54  ;;  %v1232_v0 = vld [vmem:[#allocation19 + $0x80] sm:$0xff] }
 0x24c   :  { %v1236_v60 = vld [vmem:[#allocation19 + $0xa0] sm:$0xff] }
 0x24d   :  { %v518_v6 = vadd.f32 %v509_v61, %v502_v1  ;;  %v516_v7 = vadd.f32 %v509_v61, %v500_v63  ;;  %v501_v52 = vmul.f32 %v499_v4, %v489_v2  ;;  %v503_v8 = vmul.f32 %v499_v4, %v491_v3  ;;  %v1360_v61 = vld [vmem:[#allocation19 + $0x480] sm:$0xff] }
 0x24e   :  { %v4601_v62 = vcombine.high %v1232_v0, %v1236_v60  ;;  %v1364_v63 = vld [vmem:[#allocation19 + $0x4a0] sm:$0xff]  ;;  %v4600_v1 = vcombine.low %v1232_v0, %v1236_v60 }
 0x24f   :  { %v524_v55 = vmul.f32 0.2, %v516_v7  ;;  %v526_v9 = vmul.f32 0.2, %v518_v6  ;;  %v519_v10 = vadd.f32 %v513_v5, %v503_v8  ;;  %v517_v11 = vadd.f32 %v513_v5, %v501_v52  ;;  %v1224_v4 = vld [vmem:[#allocation19 + $0x40] sm:$0xff] }
 0x250   :  { %vm520_vm6 = vcmp.gt.f32.partialorder %v516_v7, 0.0  ;;  %vm522_vm7 = vcmp.gt.f32.partialorder %v518_v6, 0.0  ;;  %v4728_v2 = vcombine.low %v1360_v61, %v1364_v63  ;;  %v4729_v3 = vcombine.high %v1360_v61, %v1364_v63  ;;  %v1228_v5 = vld [vmem:[#allocation19 + $0x60] sm:$0xff] }
 0x251   :  { %vm521_vm8 = vcmp.gt.f32.partialorder %v517_v11, 0.0  ;;  %vm523_vm9 = vcmp.gt.f32.partialorder %v519_v10, 0.0  ;;  %v525_v53 = vmul.f32 0.2, %v517_v11  ;;  %v527_v13 = vmul.f32 0.2, %v519_v10 }
 0x252   :  { %v528_v59 = vsel %vm520_vm6, %v516_v7, %v524_v55  ;;  %v530_v14 = vsel %vm522_vm7, %v518_v6, %v526_v9  ;;  %v1352_v6 = vld [vmem:[#allocation19 + $0x440] sm:$0xff]  ;;  %v4593_v7 = vcombine.high %v1224_v4, %v1228_v5  ;;  %v4592_v8 = vcombine.low %v1224_v4, %v1228_v5 }
 0x253   :  { %v529_v19 = vsel %vm521_vm8, %v517_v11, %v525_v53  ;;  %v531_v20 = vsel %vm523_vm9, %v519_v10, %v527_v13  ;;  %v532_v22 = vpack.c.bf16 %v530_v14, %v528_v59  ;;  %v1356_v52 = vld [vmem:[#allocation19 + $0x460] sm:$0xff] }
 0x254   :  { %v533_v21 = vpack.c.bf16 %v531_v20, %v529_v19  ;;  %v4720_v55 = vcombine.low %v1352_v6, %v1356_v52  ;;  %v4721_v9 = vcombine.high %v1352_v6, %v1356_v52  ;;  %v1216_v10 = vld [vmem:[#allocation19] sm:$0xff]  ;;  %v4705_v20 = vcombine.high %v1336_v16, %v1340_v17 }
 0x255   :  { %v1220_v11 = vld [vmem:[#allocation19 + $0x20] sm:$0xff] }
 0x256   :  { %950 = vmatprep.mubr.bf16.mxu0 %v533_v21  ;;  %993 = vmatprep.mubr.bf16.mxu1 %v533_v21  ;;  %v4585_v53 = vcombine.high %v1216_v10, %v1220_v11  ;;  %v1348_v13 = vld [vmem:[#allocation19 + $0x420] sm:$0xff]  ;;  %v4584_v59 = vcombine.low %v1216_v10, %v1220_v11 }
 0x257   :  { %951 = vmatmul.mubr.bf16.vlgmr.msra.gmra.mxu0 %v532_v22  ;;  %994 = vmatmul.mubr.bf16.vlgmr.msra.gmra.mxu1 %v532_v22  ;;  %v4712_v14 = vcombine.low %v1344_v12, %v1348_v13  ;;  %v4713_v15 = vcombine.high %v1344_v12, %v1348_v13  ;;  %v1464_v19 = vld [vmem:[#allocation19 + $0x7c0] sm:$0xff]  ;;  %v4704_v22 = vcombine.low %v1336_v16, %v1340_v17 }
 0x258   :  { %2753 = vmatpush1.bf16.msra.mxu0 %v4640_v39  ;;  %2796 = vmatpush1.bf16.msra.mxu1 %v4768_v42  ;;  %v4617_v39 = vcombine.high %v1248_v36, %v1252_v37  ;;  %v4616_v42 = vcombine.low %v1248_v36, %v1252_v37  ;;  %v1468_v21 = vld [vmem:[#allocation19 + $0x7e0] sm:$0xff] }
 0x259   :  { %2754 = vmatprep.subr.bf16.mxu0 %v4633_v23  ;;  %2797 = vmatprep.subr.bf16.mxu1 %v4761_v24  ;;  %v4832_v23 = vcombine.low %v1464_v19, %v1468_v21  ;;  %v4833_v24 = vcombine.high %v1464_v19, %v1468_v21  ;;  %v1448_v36 = vld [vmem:[#allocation19 + $0x740] sm:$0xff] }
 0x25a   :  { %v4816_v41 = vcombine.low %v1448_v36, %v1452_v38  ;;  %v1444_v49 = vld [vmem:[#allocation19 + $0x720] sm:$0xff] }
 0x25b   :  { %v4808_v54 = vcombine.low %v1440_v44, %v1444_v49  ;;  %v1432_v0 = vld [vmem:[#allocation19 + $0x6c0] sm:$0xff] }
 0x25c   :  { %2755 = vmatpush1.bf16.msra.mxu0 %v4632_v25  ;;  %2798 = vmatpush1.bf16.msra.mxu1 %v4760_v26  ;;  %v1328_v25 = vld [vmem:[#allocation19 + $0x380] sm:$0xff] }
 0x25d   :  { %2756 = vmatprep.subr.bf16.mxu0 %v4625_v30  ;;  %2799 = vmatprep.subr.bf16.mxu1 %v4753_v34  ;;  %v1332_v26 = vld [vmem:[#allocation19 + $0x3a0] sm:$0xff] }
 0x25e   :  { %v4697_v28 = vcombine.high %v1328_v25, %v1332_v26  ;;  %v4696_v30 = vcombine.low %v1328_v25, %v1332_v26  ;;  %v1324_v34 = vld [vmem:[#allocation19 + $0x360] sm:$0xff]  ;;  %v5850_v25 = vld [vmem:[#allocation19 + $0x5c8] sm:$0xff] }
 0x25f   :  { %v1436_v61 = vld [vmem:[#allocation19 + $0x6e0] sm:$0xff] }
 0x260   :  { %2757 = vmatpush1.bf16.msra.mxu0 %v4624_v32  ;;  %2800 = vmatpush1.bf16.msra.mxu1 %v4752_v33  ;;  %v4825_v32 = vcombine.high %v1456_v27, %v1460_v29  ;;  %v1320_v33 = vld [vmem:[#allocation19 + $0x340] sm:$0xff]  ;;  %v4800_v63 = vcombine.low %v1432_v0, %v1436_v61  ;;  %v5854_v27 = vld [vmem:[#allocation19 + $0x5e8] sm:$0xff] }
 0x261   :  { %2758 = vmatprep.subr.bf16.mxu0 %v4617_v39  ;;  %2801 = vmatprep.subr.bf16.mxu1 %v4745_v40  ;;  %v4689_v37 = vcombine.high %v1320_v33, %v1324_v34  ;;  %v4688_v39 = vcombine.low %v1320_v33, %v1324_v34  ;;  %v1316_v40 = vld [vmem:[#allocation19 + $0x320] sm:$0xff]  ;;  %v4770_v29 = vcombine.low %v5850_v25, %v5854_v27 }
 0x262   :  { %v1424_v4 = vld [vmem:[#allocation19 + $0x680] sm:$0xff] }
 0x263   :  { %v1428_v6 = vld [vmem:[#allocation19 + $0x6a0] sm:$0xff] }
 0x264   :  { %2759 = vmatpush1.bf16.msra.mxu0 %v4616_v42  ;;  %2802 = vmatpush1.bf16.msra.mxu1 %v4744_v35  ;;  %v4817_v42 = vcombine.high %v1448_v36, %v1452_v38  ;;  %v1312_v35 = vld [vmem:[#allocation19 + $0x300] sm:$0xff]  ;;  %v4792_v52 = vcombine.low %v1424_v4, %v1428_v6 }
 0x265   :  { %2760 = vmatprep.subr.bf16.mxu0 %v4609_v51  ;;  %2803 = vmatprep.subr.bf16.mxu1 %v4737_v58  ;;  %v4681_v47 = vcombine.high %v1312_v35, %v1316_v40  ;;  %v4680_v51 = vcombine.low %v1312_v35, %v1316_v40  ;;  %v1308_v58 = vld [vmem:[#allocation19 + $0x2e0] sm:$0xff] }
 0x266   :  { %v1416_v10 = vld [vmem:[#allocation19 + $0x640] sm:$0xff] }
 0x267   :  { %v1420_v12 = vld [vmem:[#allocation19 + $0x660] sm:$0xff] }
 0x268   :  { %2761 = vmatpush1.bf16.msra.mxu0 %v4608_v56  ;;  %2804 = vmatpush1.bf16.msra.mxu1 %v4736_v57  ;;  %v4809_v56 = vcombine.high %v1440_v44, %v1444_v49  ;;  %v1304_v57 = vld [vmem:[#allocation19 + $0x2c0] sm:$0xff]  ;;  %v4784_v13 = vcombine.low %v1416_v10, %v1420_v12 }
 0x269   :  { %2762 = vmatprep.subr.bf16.mxu0 %v4601_v62  ;;  %2805 = vmatprep.subr.bf16.mxu1 %v4729_v3  ;;  %v4673_v60 = vcombine.high %v1304_v57, %v1308_v58  ;;  %v4672_v62 = vcombine.low %v1304_v57, %v1308_v58  ;;  %v1300_v3 = vld [vmem:[#allocation19 + $0x2a0] sm:$0xff] }
 0x26a   :  { %v1408_v16 = vld [vmem:[#allocation19 + $0x600] sm:$0xff] }
 0x26c   :  { %2763 = vmatpush1.bf16.msra.mxu0 %v4600_v1  ;;  %2806 = vmatpush1.bf16.msra.mxu1 %v4728_v2  ;;  %v4801_v1 = vcombine.high %v1432_v0, %v1436_v61  ;;  %v1296_v2 = vld [vmem:[#allocation19 + $0x280] sm:$0xff] }
 0x26d   :  { %2764 = vmatprep.subr.bf16.mxu0 %v4593_v7  ;;  %2807 = vmatprep.subr.bf16.mxu1 %v4721_v9  ;;  %v4665_v5 = vcombine.high %v1296_v2, %v1300_v3  ;;  %v4664_v7 = vcombine.low %v1296_v2, %v1300_v3  ;;  %v1292_v9 = vld [vmem:[#allocation19 + $0x260] sm:$0xff] }
 0x270   :  { %2765 = vmatpush1.bf16.msra.mxu0 %v4592_v8  ;;  %2808 = vmatpush1.bf16.msra.mxu1 %v4720_v55  ;;  %v4793_v8 = vcombine.high %v1424_v4, %v1428_v6  ;;  %v1288_v55 = vld [vmem:[#allocation19 + $0x240] sm:$0xff] }
 0x271   :  { %2766 = vmatprep.subr.bf16.mxu0 %v4585_v53  ;;  %2809 = vmatprep.subr.bf16.mxu1 %v4713_v15  ;;  %v4657_v11 = vcombine.high %v1288_v55, %v1292_v9  ;;  %v4656_v53 = vcombine.low %v1288_v55, %v1292_v9  ;;  %v1284_v15 = vld [vmem:[#allocation19 + $0x220] sm:$0xff] }
 0x274   :  { %2767 = vmatpush1.bf16.msra.mxu0 %v4584_v59  ;;  %2810 = vmatpush1.bf16.msra.mxu1 %v4712_v14  ;;  %v4785_v59 = vcombine.high %v1416_v10, %v1420_v12  ;;  %v1280_v14 = vld [vmem:[#allocation19 + $0x200] sm:$0xff] }
 0x275   :  { %2768 = vmatprep.subr.bf16.mxu0 %v4705_v20  ;;  %2811 = vmatprep.subr.bf16.mxu1 %v4833_v24  ;;  %v4648_v17 = vcombine.low %v1280_v14, %v1284_v15  ;;  %v4649_v19 = vcombine.high %v1280_v14, %v1284_v15  ;;  %v1412_v20 = vld [vmem:[#allocation19 + $0x620] sm:$0xff]  ;;  %v5848_v24 = vld [vmem:[#allocation19 + $0x1e8] sm:$0xff] }
 0x276   :  { %v4776_v21 = vcombine.low %v1408_v16, %v1412_v20 }
 0x278   :  { %2769 = vmatpush2.bf16.msra.mxu0 %v4704_v22  ;;  %2812 = vmatpush2.bf16.msra.mxu1 %v4832_v23  ;;  %v4777_v22 = vcombine.high %v1408_v16, %v1412_v20  ;;  %v5846_v23 = vld [vmem:[#allocation19 + $0x1c8] sm:$0xff] }
 0x279   :  { %2770 = vmatprep.subr.bf16.mxu0 %v4697_v28  ;;  %2813 = vmatprep.subr.bf16.mxu1 %v4825_v32  ;;  %v4643_v26 = vcombine.high %v5846_v23, %v5848_v24  ;;  %v4642_v28 = vcombine.low %v5846_v23, %v5848_v24 }
 0x27c   :  { %2771 = vmatpush2.bf16.msra.mxu0 %v4696_v30  ;;  %2814 = vmatpush2.bf16.msra.mxu1 %v4824_v31  ;;  %v4771_v30 = vcombine.high %v5850_v25, %v5854_v27 }
 0x27d   :  { %2772 = vmatprep.subr.bf16.mxu0 %v4689_v37  ;;  %2815 = vmatprep.subr.bf16.mxu1 %v4817_v42 }
 0x280   :  { %2773 = vmatpush2.bf16.msra.mxu0 %v4688_v39  ;;  %2816 = vmatpush2.bf16.msra.mxu1 %v4816_v41 }
 0x281   :  { %2774 = vmatprep.subr.bf16.mxu0 %v4681_v47  ;;  %2817 = vmatprep.subr.bf16.mxu1 %v4809_v56 }
 0x284   :  { %2775 = vmatpush2.bf16.msra.mxu0 %v4680_v51  ;;  %2818 = vmatpush2.bf16.msra.mxu1 %v4808_v54 }
 0x285   :  { %2776 = vmatprep.subr.bf16.mxu0 %v4673_v60  ;;  %2819 = vmatprep.subr.bf16.mxu1 %v4801_v1 }
 0x288   :  { %2777 = vmatpush2.bf16.msra.mxu0 %v4672_v62  ;;  %2820 = vmatpush2.bf16.msra.mxu1 %v4800_v63 }
 0x289   :  { %2778 = vmatprep.subr.bf16.mxu0 %v4665_v5  ;;  %2821 = vmatprep.subr.bf16.mxu1 %v4793_v8 }
 0x28c   :  { %2779 = vmatpush2.bf16.msra.mxu0 %v4664_v7  ;;  %2822 = vmatpush2.bf16.msra.mxu1 %v4792_v52 }
 0x28d   :  { %2780 = vmatprep.subr.bf16.mxu0 %v4657_v11  ;;  %2823 = vmatprep.subr.bf16.mxu1 %v4785_v59 }
 0x290   :  { %2781 = vmatpush2.bf16.msra.mxu0 %v4656_v53  ;;  %2824 = vmatpush2.bf16.msra.mxu1 %v4784_v13 }
 0x291   :  { %2782 = vmatprep.subr.bf16.mxu0 %v4649_v19  ;;  %2825 = vmatprep.subr.bf16.mxu1 %v4777_v22 }
 0x294   :  { %2783 = vmatpush2.bf16.msra.mxu0 %v4648_v17  ;;  %2826 = vmatpush2.bf16.msra.mxu1 %v4776_v21 }
 0x295   :  { %2838 = vmatprep.subr.bf16.mxu0 %v4643_v26  ;;  %2881 = vmatprep.subr.bf16.mxu1 %v4771_v30 }
 0x317   :  { %v952_v31 = vpop.f32.mrf.mxu0  ;;  %v995_v32 = vpop.f32.mrf.mxu1 }
 0x318   :  { %v5863_v33 = vmul.f32 %v5786_v48, %v952_v31  ;;  %v5866_v34 = vmul.f32 %v5786_v48, %v995_v32 }
 0x319   :  { %v954_v36 = vpop.f32.mrf.mxu0  ;;  %v997_v37 = vpop.f32.mrf.mxu1 }
 0x31a   :  { %v5869_v38 = vmul.f32 %v5786_v48, %v954_v36  ;;  %v5872_v39 = vmul.f32 %v5786_v48, %v997_v37  ;;  %v1044_v44 = vmul.f32 %v5863_v33, %v5863_v33  ;;  %v1046_v47 = vmul.f32 %v5866_v34, %v5866_v34 }
 0x31b   :  { %v956_v41 = vpop.f32.mrf.mxu0  ;;  %v999_v42 = vpop.f32.mrf.mxu1 }
 0x31c   :  { %v5875_v35 = vmul.f32 %v5789_v50, %v956_v41  ;;  %v5878_v40 = vmul.f32 %v5789_v50, %v999_v42  ;;  %v1045_v0 = vmul.f32 %v5869_v38, %v5869_v38  ;;  %v1047_v60 = vmul.f32 %v5872_v39, %v5872_v39 }
 0x31d   :  { %v958_v49 = vpop.f32.mrf.mxu0  ;;  %v1001_v51 = vpop.f32.mrf.mxu1 }
 0x31e   :  { %v1012_v54 = vadd.f32 %v5875_v35, %v5863_v33  ;;  %v1048_v56 = vmul.f32 %v5875_v35, %v5875_v35  ;;  %v1026_v57 = vadd.f32 %v5878_v40, %v5866_v34  ;;  %v1050_v58 = vmul.f32 %v5878_v40, %v5878_v40 }
 0x31f   :  { %v5897_v61 = vmul.f32 %v5789_v50, %v958_v49  ;;  %v5900_v62 = vmul.f32 %v5789_v50, %v1001_v51 }
 0x320   :  { %v1013_v63 = vrot.slane %v1012_v54, 4  ;;  %v1052_v1 = vadd.f32 %v1048_v56, %v1044_v44  ;;  %v1027_v2 = vrot.slane %v1026_v57, 4  ;;  %v1066_v3 = vadd.f32 %v1050_v58, %v1046_v47 }
 0x321   :  { %v1019_v4 = vadd.f32 %v5897_v61, %v5869_v38  ;;  %v1049_v5 = vmul.f32 %v5897_v61, %v5897_v61  ;;  %v1033_v6 = vadd.f32 %v5900_v62, %v5872_v39  ;;  %v1051_v7 = vmul.f32 %v5900_v62, %v5900_v62 }
 0x322   :  { %v1014_v52 = vadd.f32 %v1013_v63, %v1012_v54  ;;  %v1053_v8 = vrot.slane %v1052_v1, 4  ;;  %v1028_v55 = vadd.f32 %v1027_v2, %v1026_v57  ;;  %v1067_v9 = vrot.slane %v1066_v3, 4 }
 0x323   :  { %v1020_v10 = vrot.slane %v1019_v4, 4  ;;  %v1059_v11 = vadd.f32 %v1049_v5, %v1045_v0  ;;  %v1034_v12 = vrot.slane %v1033_v6, 4  ;;  %v1073_v53 = vadd.f32 %v1051_v7, %v1047_v60 }
 0x324   :  { %v1015_v13 = vrot.slane %v1014_v52, 2  ;;  %v1054_v59 = vadd.f32 %v1053_v8, %v1052_v1  ;;  %v1029_v14 = vrot.slane %v1028_v55, 2  ;;  %v1068_v15 = vadd.f32 %v1067_v9, %v1066_v3 }
 0x325   :  { %v1021_v16 = vadd.f32 %v1020_v10, %v1019_v4  ;;  %v1060_v17 = vrot.slane %v1059_v11, 4  ;;  %v1035_v19 = vadd.f32 %v1034_v12, %v1033_v6  ;;  %v1074_v20 = vrot.slane %v1073_v53, 4 }
 0x326   :  { %v1016_v21 = vadd.f32 %v1015_v13, %v1014_v52  ;;  %v1055_v22 = vrot.slane %v1054_v59, 2  ;;  %v1030_v26 = vadd.f32 %v1029_v14, %v1028_v55  ;;  %v1069_v30 = vrot.slane %v1068_v15, 2 }
 0x327   :  { %v1022_v31 = vrot.slane %v1021_v16, 2  ;;  %v1061_v32 = vadd.f32 %v1060_v17, %v1059_v11  ;;  %v1036_v36 = vrot.slane %v1035_v19, 2  ;;  %v1075_v37 = vadd.f32 %v1074_v20, %v1073_v53 }
 0x328   :  { %v1017_v41 = vrot.slane %v1016_v21, 1  ;;  %v1056_v42 = vadd.f32 %v1055_v22, %v1054_v59  ;;  %v1031_v44 = vrot.slane %v1030_v26, 1  ;;  %v1070_v47 = vadd.f32 %v1069_v30, %v1068_v15 }
 0x329   :  { %v1023_v49 = vadd.f32 %v1022_v31, %v1021_v16  ;;  %v1062_v51 = vrot.slane %v1061_v32, 2  ;;  %v1037_v54 = vadd.f32 %v1036_v36, %v1035_v19  ;;  %v1076_v56 = vrot.slane %v1075_v37, 2 }
 0x32a   :  { %v1018_v57 = vadd.f32 %v1017_v41, %v1016_v21  ;;  %v1057_v58 = vrot.slane %v1056_v42, 1  ;;  %v1032_v0 = vadd.f32 %v1031_v44, %v1030_v26  ;;  %v1071_v60 = vrot.slane %v1070_v47, 1  ;;  %v1100_v41 = vld [vmem:[#allocation16] sm:$0xf] }
 0x32b   :  { %v1024_v63 = vrot.slane %v1023_v49, 1  ;;  %v1063_v1 = vadd.f32 %v1062_v51, %v1061_v32  ;;  %v1038_v2 = vrot.slane %v1037_v54, 1  ;;  %v1077_v3 = vadd.f32 %v1076_v56, %v1075_v37  ;;  %v1158_v51 = vld [vmem:[#allocation18] sm:$0xf] }
 0x32c   :  { %v1040_v4 = vmul.f32 %v1018_v57, %v5818_v18  ;;  %v1058_v5 = vadd.f32 %v1057_v58, %v1056_v42  ;;  %v5912_v6 = vmul.f32 %v1032_v0, %v5818_v18  ;;  %v1072_v7 = vadd.f32 %v1071_v60, %v1070_v47 }
 0x32d   :  { %v1025_v52 = vadd.f32 %v1024_v63, %v1023_v49  ;;  %v1064_v8 = vrot.slane %v1063_v1, 1  ;;  %v1039_v55 = vadd.f32 %v1038_v2, %v1037_v54  ;;  %v1078_v9 = vrot.slane %v1077_v3, 1 }
 0x32e   :  { %v1080_v10 = vmul.f32 %v1058_v5, %v5818_v18  ;;  %v1084_v11 = vmul.f32 %v1040_v4, %v1040_v4  ;;  %v1082_v12 = vmul.f32 %v1072_v7, %v5818_v18  ;;  %v1086_v53 = vmul.f32 %v5912_v6, %v5912_v6 }
 0x32f   :  { %v1041_v59 = vmul.f32 %v1025_v52, %v5818_v18  ;;  %v1065_v14 = vadd.f32 %v1064_v8, %v1063_v1  ;;  %v1043_v15 = vmul.f32 %v1039_v55, %v5818_v18  ;;  %v1079_v17 = vadd.f32 %v1078_v9, %v1077_v3 }
 0x330   :  { %v1088_v13 = vsub.f32 %v1080_v10, %v1084_v11  ;;  %v1090_v16 = vsub.f32 %v1082_v12, %v1086_v53  ;;  %v5923_v42 = vsub.s32 2, %v5778_v45  ;;  %v1105_v44 = vrot.slane %v1100_v41, %v5825_v43 }
 0x331   :  { %v1081_v20 = vmul.f32 %v1065_v14, %v5818_v18  ;;  %v1085_v21 = vmul.f32 %v1041_v59, %v1041_v59  ;;  %v1083_v26 = vmul.f32 %v1079_v17, %v5818_v18  ;;  %v1087_v30 = vmul.f32 %v1043_v15, %v1043_v15 }
 0x332   :  { %v1092_v19 = vadd.f32 0.8, %v1088_v13  ;;  %v1094_v22 = vadd.f32 0.8, %v1090_v16  ;;  %v1113_v47 = vrot.slane %v1100_v41, %v5923_v42  ;;  %v5928_v49 = vsub.s32 3, %v5778_v45 }
 0x333   :  { %v1089_v31 = vsub.f32 %v1081_v20, %v1085_v21  ;;  %v1091_v32 = vsub.f32 %v1083_v26, %v1087_v30  ;;  %v1109_v58 = vrot.slane %v1100_v41, %v5828_v46  ;;  %v1163_v0 = vrot.slane %v1158_v51, %v5825_v43 }
 0x334   :  { %5320 = vrsqrt.f32 %v1092_v19  ;;  %v1117_v63 = vrot.slane %v1100_v41, %v5928_v49  ;;  %v1126_v1 = vsub.f32 %v5863_v33, %v1040_v4  ;;  %v1130_v2 = vsub.f32 %v5875_v35, %v1040_v4 }
 0x335   :  { %5322 = vrsqrt.f32 %v1094_v22  ;;  %v1093_v36 = vadd.f32 0.8, %v1089_v31  ;;  %v1095_v37 = vadd.f32 0.8, %v1091_v32  ;;  %v1171_v5 = vrot.slane %v1158_v51, %v5923_v42 }
 0x336   :  { %v1128_v52 = vsub.f32 %v5866_v34, %v5912_v6  ;;  %v1167_v55 = vrot.slane %v1158_v51, %v5828_v46  ;;  %v1175_v9 = vrot.slane %v1158_v51, %v5928_v49  ;;  %v1132_v33 = vsub.f32 %v5878_v40, %v5912_v6 }
 0x337   :  { %5324 = vrsqrt.f32 %v1093_v36  ;;  %v1127_v53 = vsub.f32 %v5869_v38, %v1041_v59  ;;  %v1131_v13 = vsub.f32 %v5897_v61, %v1041_v59  ;;  %v1129_v20 = vsub.f32 %v5872_v39, %v1043_v15 }
 0x338   :  { %5326 = vrsqrt.f32 %v1095_v37  ;;  %v1133_v21 = vsub.f32 %v5900_v62, %v1043_v15  ;;  %v1265_v62 = vld [vmem:[#allocation19 + $0x188] sm:$0xff] }
 0x339   :  { %v1269_v15 = vld [vmem:[#allocation19 + $0x1a8] sm:$0xff] }
 0x341   :  { %v5321_v54 = vpop.eup %5320 }
 0x342   :  { %v5323_v56 = vpop.eup %5322  ;;  %v1122_v57 = vmul.f32 %v5321_v54, %v1105_v44 }
 0x343   :  { %v1124_v60 = vmul.f32 %v5323_v56, %v1113_v47 }
 0x344   :  { %v1137_v3 = vrot.slane %v1122_v57, %v5825_v43  ;;  %v5325_v7 = vpop.eup %5324 }
 0x345   :  { %v1145_v8 = vrot.slane %v1124_v60, %v5825_v43  ;;  %v5327_v10 = vpop.eup %5326  ;;  %v1123_v35 = vmul.f32 %v5325_v7, %v1109_v58 }
 0x346   :  { %v1150_v11 = vmul.f32 %v1137_v3, %v1126_v1  ;;  %v1154_v12 = vmul.f32 %v1137_v3, %v1130_v2  ;;  %v1125_v14 = vmul.f32 %v5327_v10, %v1117_v63  ;;  %v1393_v3 = vld [vmem:[#allocation19 + $0x588] sm:$0xff] }
 0x347   :  { %v1152_v4 = vmul.f32 %v1145_v8, %v1128_v52  ;;  %v1156_v16 = vmul.f32 %v1145_v8, %v1132_v33  ;;  %v1141_v17 = vrot.slane %v1123_v35, %v5825_v43  ;;  %v1257_v10 = vld [vmem:[#allocation19 + $0x148] sm:$0xff]  ;;  %v4634_v35 = vcombine.low %v1265_v62, %v1269_v15 }
 0x348   :  { %v1184_v34 = vadd.f32 %v1163_v0, %v1154_v12  ;;  %v1180_v19 = vadd.f32 %v1163_v0, %v1150_v11  ;;  %v1149_v22 = vrot.slane %v1125_v14, %v5825_v43  ;;  %v1261_v11 = vld [vmem:[#allocation19 + $0x168] sm:$0xff] }
 0x349   :  { %v1182_v26 = vadd.f32 %v1171_v5, %v1152_v4  ;;  %v1151_v40 = vmul.f32 %v1141_v17, %v1127_v53  ;;  %v1155_v6 = vmul.f32 %v1141_v17, %v1131_v13  ;;  %v1186_v31 = vadd.f32 %v1171_v5, %v1156_v16  ;;  %v1397_v5 = vld [vmem:[#allocation19 + $0x5a8] sm:$0xff] }
 0x34a   :  { %vm1188_vm10 = vcmp.gt.f32.partialorder %v1180_v19, 0.0  ;;  %vm1192_vm11 = vcmp.gt.f32.partialorder %v1184_v34, 0.0  ;;  %v1153_v38 = vmul.f32 %v1149_v22, %v1129_v20  ;;  %v1157_v30 = vmul.f32 %v1149_v22, %v1133_v21  ;;  %v1385_v4 = vld [vmem:[#allocation19 + $0x548] sm:$0xff] }
 0x34b   :  { %v1196_v61 = vmul.f32 0.2, %v1180_v19  ;;  %v1200_v59 = vmul.f32 0.2, %v1184_v34  ;;  %v1185_v32 = vadd.f32 %v1167_v55, %v1155_v6  ;;  %v1181_v36 = vadd.f32 %v1167_v55, %v1151_v40  ;;  %v1389_v53 = vld [vmem:[#allocation19 + $0x568] sm:$0xff] }
 0x34c   :  { %vm1190_vm12 = vcmp.gt.f32.partialorder %v1182_v26, 0.0  ;;  %v1187_v37 = vadd.f32 %v1175_v9, %v1157_v30  ;;  %v1183_v41 = vadd.f32 %v1175_v9, %v1153_v38  ;;  %vm1194_vm1 = vcmp.gt.f32.partialorder %v1186_v31, 0.0  ;;  %v1253_v16 = vld [vmem:[#allocation19 + $0x128] sm:$0xff] }
 0x34d   :  { %v1204_v39 = vsel %vm1188_vm10, %v1180_v19, %v1196_v61  ;;  %v1208_v44 = vsel %vm1192_vm11, %v1184_v34, %v1200_v59  ;;  %vm1189_vm13 = vcmp.gt.f32.partialorder %v1181_v36, 0.0  ;;  %vm1193_vm14 = vcmp.gt.f32.partialorder %v1185_v32, 0.0  ;;  %v1249_v34 = vld [vmem:[#allocation19 + $0x108] sm:$0xff] }
 0x34e   :  { %v1197_v47 = vmul.f32 0.2, %v1181_v36  ;;  %v1201_v51 = vmul.f32 0.2, %v1185_v32  ;;  %vm1191_vm15 = vcmp.gt.f32.partialorder %v1183_v41, 0.0  ;;  %vm1195_vm0 = vcmp.gt.f32.partialorder %v1187_v37, 0.0 }
 0x34f   :  { %v1199_v54 = vmul.f32 0.2, %v1183_v41  ;;  %v1203_v56 = vmul.f32 0.2, %v1187_v37  ;;  %v1198_v0 = vmul.f32 0.2, %v1182_v26  ;;  %v5954_v52 = vpack.c.bf16 %v1208_v44, %v1204_v39 }
 0x350   :  { %v1205_v57 = vsel %vm1189_vm13, %v1181_v36, %v1197_v47  ;;  %v1209_v58 = vsel %vm1193_vm14, %v1185_v32, %v1201_v51  ;;  %v1202_v2 = vmul.f32 0.2, %v1186_v31  ;;  %v4635_v55 = vcombine.high %v1265_v62, %v1269_v15  ;;  %v1381_v17 = vld [vmem:[#allocation19 + $0x528] sm:$0xff] }
 0x351   :  { %v5950_v60 = vpack.c.bf16 %v1209_v58, %v1205_v57  ;;  %v1207_v63 = vsel %vm1191_vm15, %v1183_v41, %v1199_v54  ;;  %v1211_v1 = vsel %vm1195_vm0, %v1187_v37, %v1203_v56  ;;  %v1206_v8 = vsel %vm1190_vm12, %v1182_v26, %v1198_v0  ;;  %v1241_v21 = vld [vmem:[#allocation19 + $0xc8] sm:$0xff] }
 0x352   :  { %v5952_v7 = vpack.c.bf16 %v1211_v1, %v1207_v63  ;;  %v1210_v9 = vsel %vm1194_vm1, %v1186_v31, %v1202_v2  ;;  %v4763_v33 = vcombine.high %v1393_v3, %v1397_v5  ;;  %v4627_v13 = vcombine.high %v1257_v10, %v1261_v11  ;;  %v1245_v22 = vld [vmem:[#allocation19 + $0xe8] sm:$0xff] }
 0x353   :  { %2784 = vmatprep.mubr.bf16.mxu0 %v5950_v60  ;;  %v5960_v12 = vpack.c.bf16 %v1210_v9, %v1206_v8  ;;  %v4762_v14 = vcombine.low %v1393_v3, %v1397_v5  ;;  %v4755_v23 = vcombine.high %v1385_v4, %v1389_v53  ;;  %v4626_v24 = vcombine.low %v1257_v10, %v1261_v11  ;;  %v1373_v26 = vld [vmem:[#allocation19 + $0x4e8] sm:$0xff] }
 0x354   :  { %2827 = vmatprep.mubr.bf16.mxu1 %v5952_v7  ;;  %2785 = vmatmul.mubr.bf16.vlgmr.msra.gmra.mxu0 %v5954_v52  ;;  %v4619_v19 = vcombine.high %v1249_v34, %v1253_v16  ;;  %v4754_v20 = vcombine.low %v1385_v4, %v1389_v53  ;;  %v4618_v27 = vcombine.low %v1249_v34, %v1253_v16  ;;  %v1233_v38 = vld [vmem:[#allocation19 + $0x88] sm:$0xff] }
 0x355   :  { %2839 = vmatpush1.bf16.msra.mxu0 %v4642_v28  ;;  %2870 = vmatprep.mubr.bf16.mxu0 %v5950_v60  ;;  %v1377_v28 = vld [vmem:[#allocation19 + $0x508] sm:$0xff]  ;;  %v4611_v40 = vcombine.high %v1241_v21, %v1245_v22  ;;  %v4610_v59 = vcombine.low %v1241_v21, %v1245_v22 }
 0x356   :  { %2828 = vmatmul.mubr.bf16.vlgmr.msra.gmra.mxu1 %v5960_v12  ;;  %2840 = vmatprep.subr.bf16.mxu0 %v4635_v55  ;;  %v4747_v25 = vcombine.high %v1377_v28, %v1381_v17  ;;  %v4746_v6 = vcombine.low %v1377_v28, %v1381_v17  ;;  %v1237_v30 = vld [vmem:[#allocation19 + $0xa8] sm:$0xff] }
 0x357   :  { %2882 = vmatpush1.bf16.msra.mxu1 %v4770_v29  ;;  %2913 = vmatprep.mubr.bf16.mxu1 %v5952_v7  ;;  %v1369_v29 = vld [vmem:[#allocation19 + $0x4c8] sm:$0xff]  ;;  %v4603_v36 = vcombine.high %v1233_v38, %v1237_v30  ;;  %v4602_v62 = vcombine.low %v1233_v38, %v1237_v30 }
 0x358   :  { %2883 = vmatprep.subr.bf16.mxu1 %v4763_v33  ;;  %v4739_v61 = vcombine.high %v1369_v29, %v1373_v26  ;;  %v1361_v31 = vld [vmem:[#allocation19 + $0x488] sm:$0xff]  ;;  %v4738_v37 = vcombine.low %v1369_v29, %v1373_v26 }
 0x359   :  { %2841 = vmatpush1.bf16.msra.mxu0 %v4634_v35  ;;  %v1365_v32 = vld [vmem:[#allocation19 + $0x4a8] sm:$0xff] }
 0x35a   :  { %2842 = vmatprep.subr.bf16.mxu0 %v4627_v13  ;;  %v1225_v41 = vld [vmem:[#allocation19 + $0x48] sm:$0xff]  ;;  %v4731_v44 = vcombine.high %v1361_v31, %v1365_v32  ;;  %v4730_v54 = vcombine.low %v1361_v31, %v1365_v32 }
 0x35b   :  { %2884 = vmatpush1.bf16.msra.mxu1 %v4762_v14  ;;  %v1229_v39 = vld [vmem:[#allocation19 + $0x68] sm:$0xff] }
 0x35c   :  { %2885 = vmatprep.subr.bf16.mxu1 %v4755_v23  ;;  %v1353_v15 = vld [vmem:[#allocation19 + $0x448] sm:$0xff]  ;;  %v4595_v51 = vcombine.high %v1225_v41, %v1229_v39  ;;  %v4594_v0 = vcombine.low %v1225_v41, %v1229_v39 }
 0x35d   :  { %2843 = vmatpush1.bf16.msra.mxu0 %v4626_v24  ;;  %v1357_v47 = vld [vmem:[#allocation19 + $0x468] sm:$0xff] }
 0x35e   :  { %2844 = vmatprep.subr.bf16.mxu0 %v4619_v19  ;;  %v1217_v56 = vld [vmem:[#allocation19 + $0x8] sm:$0xff]  ;;  %v4723_v58 = vcombine.high %v1353_v15, %v1357_v47  ;;  %v4722_v3 = vcombine.low %v1353_v15, %v1357_v47 }
 0x35f   :  { %2886 = vmatpush1.bf16.msra.mxu1 %v4754_v20  ;;  %v1221_v57 = vld [vmem:[#allocation19 + $0x28] sm:$0xff] }
 0x360   :  { %2887 = vmatprep.subr.bf16.mxu1 %v4747_v25  ;;  %v1345_v63 = vld [vmem:[#allocation19 + $0x408] sm:$0xff]  ;;  %v4587_v2 = vcombine.high %v1217_v56, %v1221_v57  ;;  %v4586_v9 = vcombine.low %v1217_v56, %v1221_v57 }
 0x361   :  { %2845 = vmatpush1.bf16.msra.mxu0 %v4618_v27  ;;  %v1349_v1 = vld [vmem:[#allocation19 + $0x428] sm:$0xff] }
 0x362   :  { %2846 = vmatprep.subr.bf16.mxu0 %v4611_v40  ;;  %v1337_v5 = vld [vmem:[#allocation19 + $0x3c8] sm:$0xff]  ;;  %v4715_v55 = vcombine.high %v1345_v63, %v1349_v1  ;;  %v4714_v35 = vcombine.low %v1345_v63, %v1349_v1 }
 0x363   :  { %2888 = vmatpush1.bf16.msra.mxu1 %v4746_v6  ;;  %v1341_v8 = vld [vmem:[#allocation19 + $0x3e8] sm:$0xff] }
 0x364   :  { %2889 = vmatprep.subr.bf16.mxu1 %v4739_v61  ;;  %v1465_v10 = vld [vmem:[#allocation19 + $0x7c8] sm:$0xff]  ;;  %v4707_v33 = vcombine.high %v1337_v5, %v1341_v8  ;;  %v4706_v14 = vcombine.low %v1337_v5, %v1341_v8 }
 0x365   :  { %2847 = vmatpush1.bf16.msra.mxu0 %v4610_v59  ;;  %v1469_v11 = vld [vmem:[#allocation19 + $0x7e8] sm:$0xff] }
 0x366   :  { %2848 = vmatprep.subr.bf16.mxu0 %v4603_v36  ;;  %v1329_v4 = vld [vmem:[#allocation19 + $0x388] sm:$0xff]  ;;  %v4835_v13 = vcombine.high %v1465_v10, %v1469_v11  ;;  %v4834_v24 = vcombine.low %v1465_v10, %v1469_v11 }
 0x367   :  { %2890 = vmatpush1.bf16.msra.mxu1 %v4738_v37  ;;  %v1333_v53 = vld [vmem:[#allocation19 + $0x3a8] sm:$0xff] }
 0x368   :  { %2891 = vmatprep.subr.bf16.mxu1 %v4731_v44  ;;  %v1457_v34 = vld [vmem:[#allocation19 + $0x788] sm:$0xff]  ;;  %v4699_v23 = vcombine.high %v1329_v4, %v1333_v53  ;;  %v4698_v20 = vcombine.low %v1329_v4, %v1333_v53 }
 0x369   :  { %2849 = vmatpush1.bf16.msra.mxu0 %v4602_v62  ;;  %v1461_v16 = vld [vmem:[#allocation19 + $0x7a8] sm:$0xff] }
 0x36a   :  { %2850 = vmatprep.subr.bf16.mxu0 %v4595_v51  ;;  %v1321_v28 = vld [vmem:[#allocation19 + $0x348] sm:$0xff]  ;;  %v4827_v19 = vcombine.high %v1457_v34, %v1461_v16  ;;  %v4826_v27 = vcombine.low %v1457_v34, %v1461_v16  ;;  %v1274_v34 = vld [vmem:[#allocation19 + $0x1d0] sm:$0xff] }
 0x36b   :  { %2892 = vmatpush1.bf16.msra.mxu1 %v4730_v54  ;;  %v1325_v17 = vld [vmem:[#allocation19 + $0x368] sm:$0xff]  ;;  %v1278_v16 = vld [vmem:[#allocation19 + $0x1f0] sm:$0xff] }
 0x36c   :  { %2893 = vmatprep.subr.bf16.mxu1 %v4723_v58  ;;  %v1449_v21 = vld [vmem:[#allocation19 + $0x748] sm:$0xff]  ;;  %v4691_v25 = vcombine.high %v1321_v28, %v1325_v17  ;;  %v4690_v6 = vcombine.low %v1321_v28, %v1325_v17  ;;  %v1402_v28 = vld [vmem:[#allocation19 + $0x5d0] sm:$0xff] }
 0x36d   :  { %2851 = vmatpush1.bf16.msra.mxu0 %v4594_v0  ;;  %v1453_v22 = vld [vmem:[#allocation19 + $0x768] sm:$0xff]  ;;  %v1406_v17 = vld [vmem:[#allocation19 + $0x5f0] sm:$0xff] }
 0x36e   :  { %2852 = vmatprep.subr.bf16.mxu0 %v4587_v2  ;;  %v1313_v29 = vld [vmem:[#allocation19 + $0x308] sm:$0xff]  ;;  %v4819_v40 = vcombine.high %v1449_v21, %v1453_v22  ;;  %v4818_v59 = vcombine.low %v1449_v21, %v1453_v22  ;;  %v1266_v21 = vld [vmem:[#allocation19 + $0x190] sm:$0xff] }
 0x36f   :  { %2894 = vmatpush1.bf16.msra.mxu1 %v4722_v3  ;;  %v1317_v26 = vld [vmem:[#allocation19 + $0x328] sm:$0xff]  ;;  %v1270_v22 = vld [vmem:[#allocation19 + $0x1b0] sm:$0xff] }
 0x370   :  { %2895 = vmatprep.subr.bf16.mxu1 %v4715_v55  ;;  %v1441_v38 = vld [vmem:[#allocation19 + $0x708] sm:$0xff]  ;;  %v4683_v61 = vcombine.high %v1313_v29, %v1317_v26  ;;  %v4682_v37 = vcombine.low %v1313_v29, %v1317_v26  ;;  %v1394_v29 = vld [vmem:[#allocation19 + $0x590] sm:$0xff] }
 0x371   :  { %2853 = vmatpush1.bf16.msra.mxu0 %v4586_v9  ;;  %v1445_v30 = vld [vmem:[#allocation19 + $0x728] sm:$0xff]  ;;  %v1398_v26 = vld [vmem:[#allocation19 + $0x5b0] sm:$0xff] }
 0x372   :  { %2854 = vmatprep.subr.bf16.mxu0 %v4707_v33  ;;  %v1305_v31 = vld [vmem:[#allocation19 + $0x2c8] sm:$0xff]  ;;  %v4811_v36 = vcombine.high %v1441_v38, %v1445_v30  ;;  %v4810_v62 = vcombine.low %v1441_v38, %v1445_v30  ;;  %v1258_v38 = vld [vmem:[#allocation19 + $0x150] sm:$0xff] }
 0x373   :  { %2896 = vmatpush1.bf16.msra.mxu1 %v4714_v35  ;;  %v1309_v32 = vld [vmem:[#allocation19 + $0x2e8] sm:$0xff]  ;;  %v1262_v30 = vld [vmem:[#allocation19 + $0x170] sm:$0xff] }
 0x374   :  { %2897 = vmatprep.subr.bf16.mxu1 %v4835_v13  ;;  %v1433_v41 = vld [vmem:[#allocation19 + $0x6c8] sm:$0xff]  ;;  %v4675_v44 = vcombine.high %v1305_v31, %v1309_v32  ;;  %v4674_v54 = vcombine.low %v1305_v31, %v1309_v32  ;;  %v1386_v31 = vld [vmem:[#allocation19 + $0x550] sm:$0xff] }
 0x375   :  { %2855 = vmatpush2.bf16.msra.mxu0 %v4706_v14  ;;  %v1437_v39 = vld [vmem:[#allocation19 + $0x6e8] sm:$0xff]  ;;  %v1390_v32 = vld [vmem:[#allocation19 + $0x570] sm:$0xff] }
 0x376   :  { %2856 = vmatprep.subr.bf16.mxu0 %v4699_v23  ;;  %v1297_v15 = vld [vmem:[#allocation19 + $0x288] sm:$0xff]  ;;  %v4803_v51 = vcombine.high %v1433_v41, %v1437_v39  ;;  %v4802_v0 = vcombine.low %v1433_v41, %v1437_v39  ;;  %v1250_v41 = vld [vmem:[#allocation19 + $0x110] sm:$0xff] }
 0x377   :  { %2898 = vmatpush2.bf16.msra.mxu1 %v4834_v24  ;;  %v1301_v47 = vld [vmem:[#allocation19 + $0x2a8] sm:$0xff]  ;;  %v1254_v39 = vld [vmem:[#allocation19 + $0x130] sm:$0xff] }
 0x378   :  { %2899 = vmatprep.subr.bf16.mxu1 %v4827_v19  ;;  %v1425_v56 = vld [vmem:[#allocation19 + $0x688] sm:$0xff]  ;;  %v4667_v58 = vcombine.high %v1297_v15, %v1301_v47  ;;  %v4666_v3 = vcombine.low %v1297_v15, %v1301_v47  ;;  %v4645_v19 = vcombine.high %v1274_v34, %v1278_v16  ;;  %v1378_v15 = vld [vmem:[#allocation19 + $0x510] sm:$0xff] }
 0x379   :  { %2857 = vmatpush2.bf16.msra.mxu0 %v4698_v20  ;;  %v1429_v57 = vld [vmem:[#allocation19 + $0x6a8] sm:$0xff]  ;;  %v1382_v47 = vld [vmem:[#allocation19 + $0x530] sm:$0xff] }
 0x37a   :  { %2858 = vmatprep.subr.bf16.mxu0 %v4691_v25  ;;  %v1289_v63 = vld [vmem:[#allocation19 + $0x248] sm:$0xff]  ;;  %v4795_v2 = vcombine.high %v1425_v56, %v1429_v57  ;;  %v4794_v9 = vcombine.low %v1425_v56, %v1429_v57  ;;  %v4773_v25 = vcombine.high %v1402_v28, %v1406_v17  ;;  %v1242_v56 = vld [vmem:[#allocation19 + $0xd0] sm:$0xff] }
 0x37b   :  { %2900 = vmatpush2.bf16.msra.mxu1 %v4826_v27  ;;  %v1293_v1 = vld [vmem:[#allocation19 + $0x268] sm:$0xff]  ;;  %v4644_v27 = vcombine.low %v1274_v34, %v1278_v16  ;;  %v1246_v57 = vld [vmem:[#allocation19 + $0xf0] sm:$0xff] }
 0x37c   :  { %2901 = vmatprep.subr.bf16.mxu1 %v4819_v40  ;;  %v1417_v5 = vld [vmem:[#allocation19 + $0x648] sm:$0xff]  ;;  %v4659_v55 = vcombine.high %v1289_v63, %v1293_v1  ;;  %v4658_v35 = vcombine.low %v1289_v63, %v1293_v1  ;;  %v4637_v40 = vcombine.high %v1266_v21, %v1270_v22  ;;  %v1370_v63 = vld [vmem:[#allocation19 + $0x4d0] sm:$0xff] }
 0x37d   :  { %2859 = vmatpush2.bf16.msra.mxu0 %v4690_v6  ;;  %v1421_v8 = vld [vmem:[#allocation19 + $0x668] sm:$0xff]  ;;  %v4772_v6 = vcombine.low %v1402_v28, %v1406_v17  ;;  %v1374_v1 = vld [vmem:[#allocation19 + $0x4f0] sm:$0xff] }
 0x37e   :  { %2860 = vmatprep.subr.bf16.mxu0 %v4683_v61  ;;  %v1281_v10 = vld [vmem:[#allocation19 + $0x208] sm:$0xff]  ;;  %v4787_v33 = vcombine.high %v1417_v5, %v1421_v8  ;;  %v4786_v14 = vcombine.low %v1417_v5, %v1421_v8  ;;  %v4765_v61 = vcombine.high %v1394_v29, %v1398_v26  ;;  %v1234_v5 = vld [vmem:[#allocation19 + $0x90] sm:$0xff] }
 0x37f   :  { %2902 = vmatpush2.bf16.msra.mxu1 %v4818_v59  ;;  %v1285_v11 = vld [vmem:[#allocation19 + $0x228] sm:$0xff]  ;;  %v4636_v59 = vcombine.low %v1266_v21, %v1270_v22  ;;  %v1238_v8 = vld [vmem:[#allocation19 + $0xb0] sm:$0xff] }
 0x380   :  { %2903 = vmatprep.subr.bf16.mxu1 %v4811_v36  ;;  %v1409_v4 = vld [vmem:[#allocation19 + $0x608] sm:$0xff]  ;;  %v4651_v13 = vcombine.high %v1281_v10, %v1285_v11  ;;  %v4650_v24 = vcombine.low %v1281_v10, %v1285_v11  ;;  %v4629_v36 = vcombine.high %v1258_v38, %v1262_v30  ;;  %v1362_v10 = vld [vmem:[#allocation19 + $0x490] sm:$0xff] }
 0x381   :  { %2861 = vmatpush2.bf16.msra.mxu0 %v4682_v37  ;;  %v1413_v53 = vld [vmem:[#allocation19 + $0x628] sm:$0xff]  ;;  %v4764_v37 = vcombine.low %v1394_v29, %v1398_v26  ;;  %v1366_v11 = vld [vmem:[#allocation19 + $0x4b0] sm:$0xff] }
 0x382   :  { %2862 = vmatprep.subr.bf16.mxu0 %v4675_v44  ;;  %v4779_v23 = vcombine.high %v1409_v4, %v1413_v53  ;;  %v4778_v20 = vcombine.low %v1409_v4, %v1413_v53  ;;  %v4757_v44 = vcombine.high %v1386_v31, %v1390_v32  ;;  %v1226_v4 = vld [vmem:[#allocation19 + $0x50] sm:$0xff] }
 0x383   :  { %2904 = vmatpush2.bf16.msra.mxu1 %v4810_v62  ;;  %v4628_v62 = vcombine.low %v1258_v38, %v1262_v30  ;;  %v1230_v53 = vld [vmem:[#allocation19 + $0x70] sm:$0xff] }
 0x384   :  { %2905 = vmatprep.subr.bf16.mxu1 %v4803_v51  ;;  %v4621_v51 = vcombine.high %v1250_v41, %v1254_v39  ;;  %v1354_v34 = vld [vmem:[#allocation19 + $0x450] sm:$0xff] }
 0x385   :  { %2863 = vmatpush2.bf16.msra.mxu0 %v4674_v54  ;;  %v4756_v54 = vcombine.low %v1386_v31, %v1390_v32  ;;  %v1358_v16 = vld [vmem:[#allocation19 + $0x470] sm:$0xff] }
 0x386   :  { %2864 = vmatprep.subr.bf16.mxu0 %v4667_v58  ;;  %v4749_v58 = vcombine.high %v1378_v15, %v1382_v47  ;;  %v1218_v28 = vld [vmem:[#allocation19 + $0x10] sm:$0xff] }
 0x387   :  { %2906 = vmatpush2.bf16.msra.mxu1 %v4802_v0  ;;  %v4620_v0 = vcombine.low %v1250_v41, %v1254_v39  ;;  %v1222_v17 = vld [vmem:[#allocation19 + $0x30] sm:$0xff] }
 0x388   :  { %2907 = vmatprep.subr.bf16.mxu1 %v4795_v2  ;;  %v4613_v2 = vcombine.high %v1242_v56, %v1246_v57  ;;  %v1346_v21 = vld [vmem:[#allocation19 + $0x410] sm:$0xff] }
 0x389   :  { %2865 = vmatpush2.bf16.msra.mxu0 %v4666_v3  ;;  %v4748_v3 = vcombine.low %v1378_v15, %v1382_v47  ;;  %v1350_v22 = vld [vmem:[#allocation19 + $0x430] sm:$0xff] }
 0x38a   :  { %2866 = vmatprep.subr.bf16.mxu0 %v4659_v55  ;;  %v4741_v55 = vcombine.high %v1370_v63, %v1374_v1  ;;  %v1338_v29 = vld [vmem:[#allocation19 + $0x3d0] sm:$0xff] }
 0x38b   :  { %2908 = vmatpush2.bf16.msra.mxu1 %v4794_v9  ;;  %v4612_v9 = vcombine.low %v1242_v56, %v1246_v57  ;;  %v1342_v26 = vld [vmem:[#allocation19 + $0x3f0] sm:$0xff] }
 0x38c   :  { %2909 = vmatprep.subr.bf16.mxu1 %v4787_v33  ;;  %v4605_v33 = vcombine.high %v1234_v5, %v1238_v8  ;;  %v1466_v38 = vld [vmem:[#allocation19 + $0x7d0] sm:$0xff] }
 0x38d   :  { %2867 = vmatpush2.bf16.msra.mxu0 %v4658_v35  ;;  %v4740_v35 = vcombine.low %v1370_v63, %v1374_v1  ;;  %v1470_v30 = vld [vmem:[#allocation19 + $0x7f0] sm:$0xff] }
 0x38e   :  { %2868 = vmatprep.subr.bf16.mxu0 %v4651_v13  ;;  %v4733_v13 = vcombine.high %v1362_v10, %v1366_v11  ;;  %v1330_v31 = vld [vmem:[#allocation19 + $0x390] sm:$0xff] }
 0x38f   :  { %2910 = vmatpush2.bf16.msra.mxu1 %v4786_v14  ;;  %v4604_v14 = vcombine.low %v1234_v5, %v1238_v8  ;;  %v1334_v32 = vld [vmem:[#allocation19 + $0x3b0] sm:$0xff] }
 0x390   :  { %2911 = vmatprep.subr.bf16.mxu1 %v4779_v23  ;;  %v4597_v23 = vcombine.high %v1226_v4, %v1230_v53  ;;  %v1458_v41 = vld [vmem:[#allocation19 + $0x790] sm:$0xff] }
 0x391   :  { %2869 = vmatpush2.bf16.msra.mxu0 %v4650_v24  ;;  %v4732_v24 = vcombine.low %v1362_v10, %v1366_v11  ;;  %v1462_v39 = vld [vmem:[#allocation19 + $0x7b0] sm:$0xff] }
 0x392   :  { %2924 = vmatprep.subr.bf16.mxu0 %v4645_v19  ;;  %v4725_v19 = vcombine.high %v1354_v34, %v1358_v16  ;;  %v1322_v15 = vld [vmem:[#allocation19 + $0x350] sm:$0xff] }
 0x393   :  { %2912 = vmatpush2.bf16.msra.mxu1 %v4778_v20  ;;  %v4596_v20 = vcombine.low %v1226_v4, %v1230_v53  ;;  %v1326_v47 = vld [vmem:[#allocation19 + $0x370] sm:$0xff] }
 0x394   :  { %2871 = vmatmul.mubr.bf16.vlgmr.msra.gmra.mxu0 %v5954_v52  ;;  %2967 = vmatprep.subr.bf16.mxu1 %v4773_v25  ;;  %v4589_v25 = vcombine.high %v1218_v28, %v1222_v17  ;;  %v1450_v56 = vld [vmem:[#allocation19 + $0x750] sm:$0xff] }
 0x395   :  { %2925 = vmatpush1.bf16.msra.mxu0 %v4644_v27  ;;  %2956 = vmatprep.mubr.bf16.mxu0 %v5950_v60  ;;  %v4724_v27 = vcombine.low %v1354_v34, %v1358_v16  ;;  %v1454_v57 = vld [vmem:[#allocation19 + $0x770] sm:$0xff] }
 0x396   :  { %2914 = vmatmul.mubr.bf16.vlgmr.msra.gmra.mxu1 %v5960_v12  ;;  %2926 = vmatprep.subr.bf16.mxu0 %v4637_v40  ;;  %v4717_v40 = vcombine.high %v1346_v21, %v1350_v22  ;;  %v1314_v63 = vld [vmem:[#allocation19 + $0x310] sm:$0xff] }
 0x397   :  { %2968 = vmatpush1.bf16.msra.mxu1 %v4772_v6  ;;  %2999 = vmatprep.mubr.bf16.mxu1 %v5952_v7  ;;  %v4588_v6 = vcombine.low %v1218_v28, %v1222_v17  ;;  %v1318_v1 = vld [vmem:[#allocation19 + $0x330] sm:$0xff] }
 0x398   :  { %2969 = vmatprep.subr.bf16.mxu1 %v4765_v61  ;;  %v4709_v61 = vcombine.high %v1338_v29, %v1342_v26  ;;  %v1442_v5 = vld [vmem:[#allocation19 + $0x710] sm:$0xff] }
 0x399   :  { %2927 = vmatpush1.bf16.msra.mxu0 %v4636_v59  ;;  %v4716_v59 = vcombine.low %v1346_v21, %v1350_v22  ;;  %v1446_v8 = vld [vmem:[#allocation19 + $0x730] sm:$0xff] }
 0x39a   :  { %2928 = vmatprep.subr.bf16.mxu0 %v4629_v36  ;;  %v4837_v36 = vcombine.high %v1466_v38, %v1470_v30  ;;  %v1306_v10 = vld [vmem:[#allocation19 + $0x2d0] sm:$0xff] }
 0x39b   :  { %2970 = vmatpush1.bf16.msra.mxu1 %v4764_v37  ;;  %v4708_v37 = vcombine.low %v1338_v29, %v1342_v26  ;;  %v1310_v11 = vld [vmem:[#allocation19 + $0x2f0] sm:$0xff] }
 0x39c   :  { %2971 = vmatprep.subr.bf16.mxu1 %v4757_v44  ;;  %v4701_v44 = vcombine.high %v1330_v31, %v1334_v32  ;;  %v1434_v4 = vld [vmem:[#allocation19 + $0x6d0] sm:$0xff] }
 0x39d   :  { %2929 = vmatpush1.bf16.msra.mxu0 %v4628_v62  ;;  %v4836_v62 = vcombine.low %v1466_v38, %v1470_v30  ;;  %v1438_v53 = vld [vmem:[#allocation19 + $0x6f0] sm:$0xff] }
 0x39e   :  { %2930 = vmatprep.subr.bf16.mxu0 %v4621_v51  ;;  %v4829_v51 = vcombine.high %v1458_v41, %v1462_v39  ;;  %v1298_v34 = vld [vmem:[#allocation19 + $0x290] sm:$0xff] }
 0x39f   :  { %2972 = vmatpush1.bf16.msra.mxu1 %v4756_v54  ;;  %v4700_v54 = vcombine.low %v1330_v31, %v1334_v32  ;;  %v1302_v16 = vld [vmem:[#allocation19 + $0x2b0] sm:$0xff] }
 0x3a0   :  { %2973 = vmatprep.subr.bf16.mxu1 %v4749_v58  ;;  %v4693_v58 = vcombine.high %v1322_v15, %v1326_v47  ;;  %v1426_v28 = vld [vmem:[#allocation19 + $0x690] sm:$0xff] }
 0x3a1   :  { %2931 = vmatpush1.bf16.msra.mxu0 %v4620_v0  ;;  %v4828_v0 = vcombine.low %v1458_v41, %v1462_v39  ;;  %v1430_v17 = vld [vmem:[#allocation19 + $0x6b0] sm:$0xff]  ;;  %v1275_v41 = vld [vmem:[#allocation19 + $0x1d8] sm:$0xff] }
 0x3a2   :  { %2932 = vmatprep.subr.bf16.mxu0 %v4613_v2  ;;  %v4821_v2 = vcombine.high %v1450_v56, %v1454_v57  ;;  %v1290_v21 = vld [vmem:[#allocation19 + $0x250] sm:$0xff]  ;;  %v1279_v39 = vld [vmem:[#allocation19 + $0x1f8] sm:$0xff] }
 0x3a3   :  { %2974 = vmatpush1.bf16.msra.mxu1 %v4748_v3  ;;  %v4692_v3 = vcombine.low %v1322_v15, %v1326_v47  ;;  %v1294_v22 = vld [vmem:[#allocation19 + $0x270] sm:$0xff]  ;;  %v1403_v15 = vld [vmem:[#allocation19 + $0x5d8] sm:$0xff] }
 0x3a4   :  { %2975 = vmatprep.subr.bf16.mxu1 %v4741_v55  ;;  %v4685_v55 = vcombine.high %v1314_v63, %v1318_v1  ;;  %v1418_v29 = vld [vmem:[#allocation19 + $0x650] sm:$0xff]  ;;  %v1407_v47 = vld [vmem:[#allocation19 + $0x5f8] sm:$0xff] }
 0x3a5   :  { %2933 = vmatpush1.bf16.msra.mxu0 %v4612_v9  ;;  %v4820_v9 = vcombine.low %v1450_v56, %v1454_v57  ;;  %v1422_v26 = vld [vmem:[#allocation19 + $0x670] sm:$0xff]  ;;  %v1267_v56 = vld [vmem:[#allocation19 + $0x198] sm:$0xff] }
 0x3a6   :  { %2934 = vmatprep.subr.bf16.mxu0 %v4605_v33  ;;  %v4813_v33 = vcombine.high %v1442_v5, %v1446_v8  ;;  %v1282_v38 = vld [vmem:[#allocation19 + $0x210] sm:$0xff]  ;;  %v1271_v57 = vld [vmem:[#allocation19 + $0x1b8] sm:$0xff] }
 0x3a7   :  { %2976 = vmatpush1.bf16.msra.mxu1 %v4740_v35  ;;  %v4684_v35 = vcombine.low %v1314_v63, %v1318_v1  ;;  %v1286_v30 = vld [vmem:[#allocation19 + $0x230] sm:$0xff]  ;;  %v1395_v63 = vld [vmem:[#allocation19 + $0x598] sm:$0xff] }
 0x3a8   :  { %2977 = vmatprep.subr.bf16.mxu1 %v4733_v13  ;;  %v4677_v13 = vcombine.high %v1306_v10, %v1310_v11  ;;  %v1410_v31 = vld [vmem:[#allocation19 + $0x610] sm:$0xff]  ;;  %v1399_v1 = vld [vmem:[#allocation19 + $0x5b8] sm:$0xff] }
 0x3a9   :  { %2935 = vmatpush1.bf16.msra.mxu0 %v4604_v14  ;;  %v4812_v14 = vcombine.low %v1442_v5, %v1446_v8  ;;  %v1414_v32 = vld [vmem:[#allocation19 + $0x630] sm:$0xff]  ;;  %v1259_v5 = vld [vmem:[#allocation19 + $0x158] sm:$0xff] }
 0x3aa   :  { %2936 = vmatprep.subr.bf16.mxu0 %v4597_v23  ;;  %v4805_v23 = vcombine.high %v1434_v4, %v1438_v53  ;;  %v1263_v8 = vld [vmem:[#allocation19 + $0x178] sm:$0xff] }
 0x3ab   :  { %2978 = vmatpush1.bf16.msra.mxu1 %v4732_v24  ;;  %v4676_v24 = vcombine.low %v1306_v10, %v1310_v11  ;;  %v1387_v10 = vld [vmem:[#allocation19 + $0x558] sm:$0xff] }
 0x3ac   :  { %2979 = vmatprep.subr.bf16.mxu1 %v4725_v19  ;;  %v4669_v19 = vcombine.high %v1298_v34, %v1302_v16  ;;  %v1391_v11 = vld [vmem:[#allocation19 + $0x578] sm:$0xff] }
 0x3ad   :  { %2937 = vmatpush1.bf16.msra.mxu0 %v4596_v20  ;;  %v4804_v20 = vcombine.low %v1434_v4, %v1438_v53  ;;  %v1251_v4 = vld [vmem:[#allocation19 + $0x118] sm:$0xff] }
 0x3ae   :  { %2938 = vmatprep.subr.bf16.mxu0 %v4589_v25  ;;  %v4797_v25 = vcombine.high %v1426_v28, %v1430_v17  ;;  %v1255_v53 = vld [vmem:[#allocation19 + $0x138] sm:$0xff] }
 0x3af   :  { %2980 = vmatpush1.bf16.msra.mxu1 %v4724_v27  ;;  %v4668_v27 = vcombine.low %v1298_v34, %v1302_v16  ;;  %v1379_v34 = vld [vmem:[#allocation19 + $0x518] sm:$0xff] }
 0x3b0   :  { %2981 = vmatprep.subr.bf16.mxu1 %v4717_v40  ;;  %v4661_v40 = vcombine.high %v1290_v21, %v1294_v22  ;;  %v1383_v16 = vld [vmem:[#allocation19 + $0x538] sm:$0xff] }
 0x3b1   :  { %2939 = vmatpush1.bf16.msra.mxu0 %v4588_v6  ;;  %v4796_v6 = vcombine.low %v1426_v28, %v1430_v17  ;;  %v1247_v28 = vld [vmem:[#allocation19 + $0xf8] sm:$0xff]  ;;  %v4751_v17 = vcombine.high %v1379_v34, %v1383_v16 }
 0x3b2   :  { %2940 = vmatprep.subr.bf16.mxu0 %v4709_v61  ;;  %v4789_v61 = vcombine.high %v1418_v29, %v1422_v26 }
 0x3b3   :  { %2982 = vmatpush1.bf16.msra.mxu1 %v4716_v59  ;;  %v4660_v59 = vcombine.low %v1290_v21, %v1294_v22  ;;  %v4750_v22 = vcombine.low %v1379_v34, %v1383_v16 }
 0x3b4   :  { %2983 = vmatprep.subr.bf16.mxu1 %v4837_v36  ;;  %v4653_v36 = vcombine.high %v1282_v38, %v1286_v30 }
 0x3b5   :  { %2941 = vmatpush2.bf16.msra.mxu0 %v4708_v37  ;;  %v4788_v37 = vcombine.low %v1418_v29, %v1422_v26 }
 0x3b6   :  { %2942 = vmatprep.subr.bf16.mxu0 %v4701_v44  ;;  %v4781_v44 = vcombine.high %v1410_v31, %v1414_v32 }
 0x3b7   :  { %2984 = vmatpush2.bf16.msra.mxu1 %v4836_v62  ;;  %v4652_v62 = vcombine.low %v1282_v38, %v1286_v30 }
 0x3b8   :  { %2985 = vmatprep.subr.bf16.mxu1 %v4829_v51  ;;  %v4647_v51 = vcombine.high %v1275_v41, %v1279_v39 }
 0x3b9   :  { %2943 = vmatpush2.bf16.msra.mxu0 %v4700_v54  ;;  %v4780_v54 = vcombine.low %v1410_v31, %v1414_v32 }
 0x3ba   :  { %2944 = vmatprep.subr.bf16.mxu0 %v4693_v58  ;;  %v4775_v58 = vcombine.high %v1403_v15, %v1407_v47 }
 0x3bb   :  { %2986 = vmatpush2.bf16.msra.mxu1 %v4828_v0  ;;  %v4646_v0 = vcombine.low %v1275_v41, %v1279_v39 }
 0x3bc   :  { %2987 = vmatprep.subr.bf16.mxu1 %v4821_v2  ;;  %v4639_v2 = vcombine.high %v1267_v56, %v1271_v57 }
 0x3bd   :  { %2945 = vmatpush2.bf16.msra.mxu0 %v4692_v3  ;;  %v4774_v3 = vcombine.low %v1403_v15, %v1407_v47 }
 0x3be   :  { %2946 = vmatprep.subr.bf16.mxu0 %v4685_v55  ;;  %v4767_v55 = vcombine.high %v1395_v63, %v1399_v1 }
 0x3bf   :  { %2988 = vmatpush2.bf16.msra.mxu1 %v4820_v9  ;;  %v4638_v9 = vcombine.low %v1267_v56, %v1271_v57 }
 0x3c0   :  { %2989 = vmatprep.subr.bf16.mxu1 %v4813_v33  ;;  %v4631_v33 = vcombine.high %v1259_v5, %v1263_v8 }
 0x3c1   :  { %2947 = vmatpush2.bf16.msra.mxu0 %v4684_v35  ;;  %v4766_v35 = vcombine.low %v1395_v63, %v1399_v1 }
 0x3c2   :  { %2948 = vmatprep.subr.bf16.mxu0 %v4677_v13  ;;  %v4759_v13 = vcombine.high %v1387_v10, %v1391_v11 }
 0x3c3   :  { %2990 = vmatpush2.bf16.msra.mxu1 %v4812_v14  ;;  %v4630_v14 = vcombine.low %v1259_v5, %v1263_v8 }
 0x3c4   :  { %2991 = vmatprep.subr.bf16.mxu1 %v4805_v23  ;;  %v4758_v23 = vcombine.low %v1387_v10, %v1391_v11 }
 0x3c5   :  { %2949 = vmatpush2.bf16.msra.mxu0 %v4676_v24  ;;  %v1243_v24 = vld [vmem:[#allocation19 + $0xd8] sm:$0xff] }
 0x3c6   :  { %2950 = vmatprep.subr.bf16.mxu0 %v4669_v19  ;;  %v4622_v19 = vcombine.low %v1251_v4, %v1255_v53  ;;  %v4615_v21 = vcombine.high %v1243_v24, %v1247_v28  ;;  %v4614_v26 = vcombine.low %v1243_v24, %v1247_v28 }
 0x3c7   :  { %2992 = vmatpush2.bf16.msra.mxu1 %v4804_v20  ;;  %v1375_v20 = vld [vmem:[#allocation19 + $0x4f8] sm:$0xff] }
 0x3c8   :  { %2993 = vmatprep.subr.bf16.mxu1 %v4797_v25  ;;  %v1235_v25 = vld [vmem:[#allocation19 + $0x98] sm:$0xff] }
 0x3c9   :  { %2951 = vmatpush2.bf16.msra.mxu0 %v4668_v27  ;;  %v1239_v27 = vld [vmem:[#allocation19 + $0xb8] sm:$0xff] }
 0x3ca   :  { %2952 = vmatprep.subr.bf16.mxu0 %v4661_v40  ;;  %v1363_v40 = vld [vmem:[#allocation19 + $0x498] sm:$0xff]  ;;  %v4607_v38 = vcombine.high %v1235_v25, %v1239_v27  ;;  %v4606_v32 = vcombine.low %v1235_v25, %v1239_v27 }
 0x3cb   :  { %2994 = vmatpush2.bf16.msra.mxu1 %v4796_v6  ;;  %v1367_v6 = vld [vmem:[#allocation19 + $0x4b8] sm:$0xff] }
 0x3cc   :  { %2995 = vmatprep.subr.bf16.mxu1 %v4789_v61  ;;  %v1227_v61 = vld [vmem:[#allocation19 + $0x58] sm:$0xff]  ;;  %v4735_v31 = vcombine.high %v1363_v40, %v1367_v6  ;;  %v4734_v39 = vcombine.low %v1363_v40, %v1367_v6 }
 0x3cd   :  { %2953 = vmatpush2.bf16.msra.mxu0 %v4660_v59  ;;  %v1231_v59 = vld [vmem:[#allocation19 + $0x78] sm:$0xff] }
 0x3ce   :  { %2954 = vmatprep.subr.bf16.mxu0 %v4653_v36  ;;  %v1355_v36 = vld [vmem:[#allocation19 + $0x458] sm:$0xff]  ;;  %v4599_v41 = vcombine.high %v1227_v61, %v1231_v59  ;;  %v4598_v47 = vcombine.low %v1227_v61, %v1231_v59 }
 0x3cf   :  { %2996 = vmatpush2.bf16.msra.mxu1 %v4788_v37  ;;  %v1359_v37 = vld [vmem:[#allocation19 + $0x478] sm:$0xff] }
 0x3d0   :  { %2997 = vmatprep.subr.bf16.mxu1 %v4781_v44  ;;  %v1219_v44 = vld [vmem:[#allocation19 + $0x18] sm:$0xff]  ;;  %v4727_v15 = vcombine.high %v1355_v36, %v1359_v37  ;;  %v4726_v57 = vcombine.low %v1355_v36, %v1359_v37 }
 0x3d1   :  { %2955 = vmatpush2.bf16.msra.mxu0 %v4652_v62  ;;  %v1223_v62 = vld [vmem:[#allocation19 + $0x38] sm:$0xff] }
 0x3d2   :  { %3010 = vmatprep.subr.bf16.mxu0 %v4647_v51  ;;  %v1347_v51 = vld [vmem:[#allocation19 + $0x418] sm:$0xff]  ;;  %v4591_v56 = vcombine.high %v1219_v44, %v1223_v62  ;;  %v4590_v1 = vcombine.low %v1219_v44, %v1223_v62 }
 0x3d3   :  { %2998 = vmatpush2.bf16.msra.mxu1 %v4780_v54  ;;  %v1351_v54 = vld [vmem:[#allocation19 + $0x438] sm:$0xff] }
 0x3d4   :  { %2957 = vmatmul.mubr.bf16.vlgmr.msra.gmra.mxu0 %v5954_v52  ;;  %3053 = vmatprep.subr.bf16.mxu1 %v4775_v58  ;;  %v1339_v58 = vld [vmem:[#allocation19 + $0x3d8] sm:$0xff]  ;;  %v4719_v63 = vcombine.high %v1347_v51, %v1351_v54  ;;  %v4718_v8 = vcombine.low %v1347_v51, %v1351_v54 }
 0x3d5   :  { %3011 = vmatpush1.bf16.msra.mxu0 %v4646_v0  ;;  %3042 = vmatprep.mubr.bf16.mxu0 %v5950_v60  ;;  %v4623_v60 = vcombine.high %v1251_v4, %v1255_v53  ;;  %v1343_v0 = vld [vmem:[#allocation19 + $0x3f8] sm:$0xff] }
 0x3d6   :  { %3000 = vmatmul.mubr.bf16.vlgmr.msra.gmra.mxu1 %v5960_v12  ;;  %3012 = vmatprep.subr.bf16.mxu0 %v4639_v2  ;;  %v1467_v2 = vld [vmem:[#allocation19 + $0x7d8] sm:$0xff]  ;;  %v4711_v5 = vcombine.high %v1339_v58, %v1343_v0  ;;  %v4710_v11 = vcombine.low %v1339_v58, %v1343_v0 }
 0x3d7   :  { %3054 = vmatpush1.bf16.msra.mxu1 %v4774_v3  ;;  %3085 = vmatprep.mubr.bf16.mxu1 %v5952_v7  ;;  %v1371_v7 = vld [vmem:[#allocation19 + $0x4d8] sm:$0xff] }
 0x3d8   :  { %3055 = vmatprep.subr.bf16.mxu1 %v4767_v55  ;;  %v4743_v29 = vcombine.high %v1371_v7, %v1375_v20  ;;  %v4742_v30 = vcombine.low %v1371_v7, %v1375_v20  ;;  %v1471_v3 = vld [vmem:[#allocation19 + $0x7f8] sm:$0xff] }
 0x3d9   :  { %3013 = vmatpush1.bf16.msra.mxu0 %v4638_v9  ;;  %v1331_v55 = vld [vmem:[#allocation19 + $0x398] sm:$0xff]  ;;  %v4839_v10 = vcombine.high %v1467_v2, %v1471_v3  ;;  %v4838_v53 = vcombine.low %v1467_v2, %v1471_v3 }
 0x3da   :  { %3014 = vmatprep.subr.bf16.mxu0 %v4631_v33  ;;  %v1335_v9 = vld [vmem:[#allocation19 + $0x3b8] sm:$0xff] }
 0x3db   :  { %3056 = vmatpush1.bf16.msra.mxu1 %v4766_v35  ;;  %v1459_v33 = vld [vmem:[#allocation19 + $0x798] sm:$0xff]  ;;  %v4703_v4 = vcombine.high %v1331_v55, %v1335_v9  ;;  %v4702_v16 = vcombine.low %v1331_v55, %v1335_v9 }
 0x3dc   :  { %3057 = vmatprep.subr.bf16.mxu1 %v4759_v13  ;;  %v1463_v35 = vld [vmem:[#allocation19 + $0x7b8] sm:$0xff] }
 0x3dd   :  { %3015 = vmatpush1.bf16.msra.mxu0 %v4630_v14  ;;  %v1323_v13 = vld [vmem:[#allocation19 + $0x358] sm:$0xff]  ;;  %v4831_v34 = vcombine.high %v1459_v33, %v1463_v35  ;;  %v4830_v28 = vcombine.low %v1459_v33, %v1463_v35 }
 0x3de   :  { %3016 = vmatprep.subr.bf16.mxu0 %v4623_v60  ;;  %v1327_v14 = vld [vmem:[#allocation19 + $0x378] sm:$0xff] }
 0x3df   :  { %3058 = vmatpush1.bf16.msra.mxu1 %v4758_v23  ;;  %v1451_v60 = vld [vmem:[#allocation19 + $0x758] sm:$0xff]  ;;  %v4695_v24 = vcombine.high %v1323_v13, %v1327_v14  ;;  %v4694_v20 = vcombine.low %v1323_v13, %v1327_v14  ;;  %v5129_v13 = vld [vmem:[#allocation21 + $0x64] ss:$8 sps:$4 sm:$0xff]  }
 0x3e0   :  { %3059 = vmatprep.subr.bf16.mxu1 %v4751_v17  ;;  %v1455_v23 = vld [vmem:[#allocation19 + $0x778] sm:$0xff] }
 0x3e1   :  { %3017 = vmatpush1.bf16.msra.mxu0 %v4622_v19  ;;  %v1315_v17 = vld [vmem:[#allocation19 + $0x318] sm:$0xff]  ;;  %v4823_v7 = vcombine.high %v1451_v60, %v1455_v23  ;;  %v4822_v27 = vcombine.low %v1451_v60, %v1455_v23  ;;  %v5127_v60 = vld [vmem:[#allocation21 + $0x60] ss:$8 sps:$4 sm:$0xff]  }
 0x3e2   :  { %3018 = vmatprep.subr.bf16.mxu0 %v4615_v21  ;;  %v1319_v19 = vld [vmem:[#allocation19 + $0x338] sm:$0xff] }
 0x3e3   :  { %3060 = vmatpush1.bf16.msra.mxu1 %v4750_v22  ;;  %v1443_v21 = vld [vmem:[#allocation19 + $0x718] sm:$0xff]  ;;  %v4687_v25 = vcombine.high %v1315_v17, %v1319_v19  ;;  %v4686_v6 = vcombine.low %v1315_v17, %v1319_v19  ;;  %v5175_v19 = vld [vmem:[#allocation21 + $0x160] ss:$8 sps:$4 sm:$0xff]  }
 0x3e4   :  { %3061 = vmatprep.subr.bf16.mxu1 %v4743_v29  ;;  %v1447_v22 = vld [vmem:[#allocation19 + $0x738] sm:$0xff] }
 0x3e5   :  { %3019 = vmatpush1.bf16.msra.mxu0 %v4614_v26  ;;  %v1307_v29 = vld [vmem:[#allocation19 + $0x2d8] sm:$0xff]  ;;  %v4815_v40 = vcombine.high %v1443_v21, %v1447_v22  ;;  %v4814_v59 = vcombine.low %v1443_v21, %v1447_v22 }
 0x3e6   :  { %3020 = vmatprep.subr.bf16.mxu0 %v4607_v38  ;;  %v1311_v26 = vld [vmem:[#allocation19 + $0x2f8] sm:$0xff] }
 0x3e7   :  { %3062 = vmatpush1.bf16.msra.mxu1 %v4742_v30  ;;  %v1435_v38 = vld [vmem:[#allocation19 + $0x6d8] sm:$0xff]  ;;  %v4679_v61 = vcombine.high %v1307_v29, %v1311_v26  ;;  %v4678_v37 = vcombine.low %v1307_v29, %v1311_v26  ;;  %v5135_v29 = vld [vmem:[#allocation21 + $0x44] ss:$8 sps:$4 sm:$0xff]  }
 0x3e8   :  { %3063 = vmatprep.subr.bf16.mxu1 %v4735_v31  ;;  %v1439_v30 = vld [vmem:[#allocation19 + $0x6f8] sm:$0xff] }
 0x3e9   :  { %3021 = vmatpush1.bf16.msra.mxu0 %v4606_v32  ;;  %v1299_v31 = vld [vmem:[#allocation19 + $0x298] sm:$0xff]  ;;  %v4807_v36 = vcombine.high %v1435_v38, %v1439_v30  ;;  %v4806_v62 = vcombine.low %v1435_v38, %v1439_v30  ;;  %v5183_v30 = vld [vmem:[#allocation21 + $0x144] ss:$8 sps:$4 sm:$0xff]  }
 0x3ea   :  { %3022 = vmatprep.subr.bf16.mxu0 %v4599_v41  ;;  %v1303_v32 = vld [vmem:[#allocation19 + $0x2b8] sm:$0xff] }
 0x3eb   :  { %3064 = vmatpush1.bf16.msra.mxu1 %v4734_v39  ;;  %v1427_v41 = vld [vmem:[#allocation19 + $0x698] sm:$0xff]  ;;  %v4671_v44 = vcombine.high %v1299_v31, %v1303_v32  ;;  %v4670_v54 = vcombine.low %v1299_v31, %v1303_v32  ;;  %v5133_v31 = vld [vmem:[#allocation21 + $0x40] ss:$8 sps:$4 sm:$0xff]  }
 0x3ec   :  { %3065 = vmatprep.subr.bf16.mxu1 %v4727_v15  ;;  %v1431_v39 = vld [vmem:[#allocation19 + $0x6b8] sm:$0xff] }
 0x3ed   :  { %3023 = vmatpush1.bf16.msra.mxu0 %v4598_v47  ;;  %v1291_v15 = vld [vmem:[#allocation19 + $0x258] sm:$0xff]  ;;  %v4799_v51 = vcombine.high %v1427_v41, %v1431_v39  ;;  %v4798_v0 = vcombine.low %v1427_v41, %v1431_v39 }
 0x3ee   :  { %3024 = vmatprep.subr.bf16.mxu0 %v4591_v56  ;;  %v1295_v47 = vld [vmem:[#allocation19 + $0x278] sm:$0xff] }
 0x3ef   :  { %3066 = vmatpush1.bf16.msra.mxu1 %v4726_v57  ;;  %v1419_v56 = vld [vmem:[#allocation19 + $0x658] sm:$0xff]  ;;  %v4663_v58 = vcombine.high %v1291_v15, %v1295_v47  ;;  %v4662_v3 = vcombine.low %v1291_v15, %v1295_v47 }
 0x3f0   :  { %3067 = vmatprep.subr.bf16.mxu1 %v4719_v63  ;;  %v1423_v57 = vld [vmem:[#allocation19 + $0x678] sm:$0xff] }
 0x3f1   :  { %3025 = vmatpush1.bf16.msra.mxu0 %v4590_v1  ;;  %v1283_v63 = vld [vmem:[#allocation19 + $0x218] sm:$0xff]  ;;  %v4791_v2 = vcombine.high %v1419_v56, %v1423_v57  ;;  %v4790_v9 = vcombine.low %v1419_v56, %v1423_v57 }
 0x3f2   :  { %3026 = vmatprep.subr.bf16.mxu0 %v4711_v5  ;;  %v1287_v1 = vld [vmem:[#allocation19 + $0x238] sm:$0xff] }
 0x3f3   :  { %3068 = vmatpush1.bf16.msra.mxu1 %v4718_v8  ;;  %v1411_v5 = vld [vmem:[#allocation19 + $0x618] sm:$0xff]  ;;  %v4655_v55 = vcombine.high %v1283_v63, %v1287_v1 }
 0x3f4   :  { %3069 = vmatprep.subr.bf16.mxu1 %v4839_v10  ;;  %v1415_v8 = vld [vmem:[#allocation19 + $0x638] sm:$0xff] }
 0x3f5   :  { %3027 = vmatpush2.bf16.msra.mxu0 %v4710_v11  ;;  %v4783_v10 = vcombine.high %v1411_v5, %v1415_v8  ;;  %v4654_v11 = vcombine.low %v1283_v63, %v1287_v1  ;;  %v5126_v33 = vld [vmem:[#allocation21 + $0x74] ss:$8 sps:$4 sm:$0xff]   ;;  %v4782_v35 = vcombine.low %v1411_v5, %v1415_v8  ;;  %v5172_v14 = vld [vmem:[#allocation21 + $0x170] ss:$8 sps:$4 sm:$0xff]   ;;  %v5189_v5 = vld [vmem:[#allocation21 + $0x124] ss:$8 sps:$4 sm:$0xff]  }
 0x3f6   :  { %3028 = vmatprep.subr.bf16.mxu0 %v4703_v4  ;;  %v5174_v4 = vld [vmem:[#allocation21 + $0x174] ss:$8 sps:$4 sm:$0xff]   ;;  %v5136_v57 = vld [vmem:[#allocation21 + $0x30] ss:$8 sps:$4 sm:$0xff]  }
 0x3f7   :  { %3070 = vmatpush2.bf16.msra.mxu1 %v4838_v53  ;;  %v5124_v53 = vld [vmem:[#allocation21 + $0x70] ss:$8 sps:$4 sm:$0xff]   ;;  %v5180_v21 = vld [vmem:[#allocation21 + $0x154] ss:$8 sps:$4 sm:$0xff]  }
 0x3f8   :  { %3071 = vmatprep.subr.bf16.mxu1 %v4831_v34  ;;  %v5138_v32 = vld [vmem:[#allocation21 + $0x34] ss:$8 sps:$4 sm:$0xff]  }
 0x3f9   :  { %3029 = vmatpush2.bf16.msra.mxu0 %v4702_v16  ;;  %v5177_v16 = vld [vmem:[#allocation21 + $0x164] ss:$8 sps:$4 sm:$0xff]   ;;  %v5186_v15 = vld [vmem:[#allocation21 + $0x134] ss:$8 sps:$4 sm:$0xff]  }
 0x3fa   :  { %3030 = vmatprep.subr.bf16.mxu0 %v4695_v24 }
 0x3fb   :  { %3072 = vmatpush2.bf16.msra.mxu1 %v4830_v28  ;;  %v5132_v28 = vld [vmem:[#allocation21 + $0x54] ss:$8 sps:$4 sm:$0xff]  }
 0x3fc   :  { %3073 = vmatprep.subr.bf16.mxu1 %v4823_v7 }
 0x3fd   :  { %3031 = vmatpush2.bf16.msra.mxu0 %v4694_v20 }
 0x3fe   :  { %3032 = vmatprep.subr.bf16.mxu0 %v4687_v25 }
 0x3ff   :  { %3074 = vmatpush2.bf16.msra.mxu1 %v4822_v27 }
 0x400   :  { %3075 = vmatprep.subr.bf16.mxu1 %v4815_v40  ;;  %v5178_v40 = vld [vmem:[#allocation21 + $0x150] ss:$8 sps:$4 sm:$0xff]  }
 0x401   :  { %3033 = vmatpush2.bf16.msra.mxu0 %v4686_v6 }
 0x402   :  { %3034 = vmatprep.subr.bf16.mxu0 %v4679_v61 }
 0x403   :  { %3076 = vmatpush2.bf16.msra.mxu1 %v4814_v59 }
 0x404   :  { %3077 = vmatprep.subr.bf16.mxu1 %v4807_v36 }
 0x405   :  { %3035 = vmatpush2.bf16.msra.mxu0 %v4678_v37 }
 0x406   :  { %3036 = vmatprep.subr.bf16.mxu0 %v4671_v44  ;;  %v5181_v44 = vld [vmem:[#allocation21 + $0x140] ss:$8 sps:$4 sm:$0xff]  }
 0x407   :  { %3078 = vmatpush2.bf16.msra.mxu1 %v4806_v62 }
 0x408   :  { %3079 = vmatprep.subr.bf16.mxu1 %v4799_v51 }
 0x409   :  { %3037 = vmatpush2.bf16.msra.mxu0 %v4670_v54 }
 0x40a   :  { %3038 = vmatprep.subr.bf16.mxu0 %v4663_v58  ;;  %v5141_v58 = vld [vmem:[#allocation21 + $0x24] ss:$8 sps:$4 sm:$0xff]  }
 0x40b   :  { %3080 = vmatpush2.bf16.msra.mxu1 %v4798_v0 }
 0x40c   :  { %3081 = vmatprep.subr.bf16.mxu1 %v4791_v2 }
 0x40d   :  { %3039 = vmatpush2.bf16.msra.mxu0 %v4662_v3  ;;  %v5184_v3 = vld [vmem:[#allocation21 + $0x130] ss:$8 sps:$4 sm:$0xff]  }
 0x40e   :  { %3040 = vmatprep.subr.bf16.mxu0 %v4655_v55 }
 0x40f   :  { %3082 = vmatpush2.bf16.msra.mxu1 %v4790_v9 }
 0x410   :  { %3083 = vmatprep.subr.bf16.mxu1 %v4783_v10 }
 0x411   :  { %3041 = vmatpush2.bf16.msra.mxu0 %v4654_v11  ;;  %v5139_v11 = vld [vmem:[#allocation21 + $0x20] ss:$8 sps:$4 sm:$0xff]  }
 0x412   :  { %4296 = vmatprep.subr.bf16.mxu0 %v5126_v33  ;;  %v5144_v33 = vld [vmem:[#allocation21 + $0x14] ss:$8 sps:$4 sm:$0xff]  }
 0x413   :  { %3084 = vmatpush2.bf16.msra.mxu1 %v4782_v35 }
 0x414   :  { %3043 = vmatmul.mubr.bf16.vlgmr.msra.gmra.mxu0 %v5954_v52  ;;  %v2786_v34 = vpop.f32.mrf.mxu0  ;;  %4339 = vmatprep.subr.bf16.mxu1 %v5174_v4  ;;  %v5130_v52 = vld [vmem:[#allocation21 + $0x50] ss:$8 sps:$4 sm:$0xff]  }
 0x415   :  { %4297 = vmatpush1.bf16.msra.mxu0 %v5124_v53 }
 0x416   :  { %3086 = vmatmul.mubr.bf16.vlgmr.msra.gmra.mxu1 %v5960_v12  ;;  %v2829_v23 = vpop.f32.mrf.mxu1  ;;  %v2788_v24 = vpop.f32.mrf.mxu0  ;;  %4298 = vmatprep.subr.bf16.mxu0 %v5129_v13 }
 0x417   :  { %v2830_v17 = vadd.f32 %v2829_v23, %v2786_v34  ;;  %4340 = vmatpush1.bf16.msra.mxu1 %v5172_v14  ;;  %v5187_v14 = vld [vmem:[#allocation21 + $0x120] ss:$8 sps:$4 sm:$0xff]   ;;  %v5192_v34 = vld [vmem:[#allocation21 + $0x114] ss:$8 sps:$4 sm:$0xff]  }
 0x418   :  { %v2831_v7 = vpop.f32.mrf.mxu1  ;;  %v2790_v20 = vpop.f32.mrf.mxu0  ;;  %4341 = vmatprep.subr.bf16.mxu1 %v5177_v16 }
 0x419   :  { %v2832_v22 = vadd.f32 %v2831_v7, %v2788_v24  ;;  %4299 = vmatpush1.bf16.msra.mxu0 %v5127_v60  ;;  %v5982_v12 = vmul.f32 %v5786_v48, %v2830_v17  ;;  %v5147_v17 = vld [vmem:[#allocation21 + $0x4] ss:$8 sps:$4 sm:$0xff]  }
 0x41a   :  { %v2833_v25 = vpop.f32.mrf.mxu1  ;;  %v2792_v27 = vpop.f32.mrf.mxu0  ;;  %4300 = vmatprep.subr.bf16.mxu0 %v5132_v28  ;;  %v5142_v28 = vld [vmem:[#allocation21 + $0x10] ss:$8 sps:$4 sm:$0xff]  }
 0x41b   :  { %v2834_v26 = vadd.f32 %v2833_v25, %v2790_v20  ;;  %4342 = vmatpush1.bf16.msra.mxu1 %v5175_v19  ;;  %v5985_v6 = vmul.f32 %v5786_v48, %v2832_v22  ;;  %v3176_v36 = vmul.f32 %v5982_v12, %v5982_v12  ;;  %v5190_v22 = vld [vmem:[#allocation21 + $0x110] ss:$8 sps:$4 sm:$0xff]  }
 0x41c   :  { %v2835_v38 = vpop.f32.mrf.mxu1  ;;  %4343 = vmatprep.subr.bf16.mxu1 %v5180_v21 }
 0x41d   :  { %v5988_v61 = vmul.f32 %v5789_v50, %v2834_v26  ;;  %v2836_v59 = vadd.f32 %v2835_v38, %v2792_v27  ;;  %4301 = vmatpush1.bf16.msra.mxu0 %v5130_v52  ;;  %v3177_v62 = vmul.f32 %v5985_v6, %v5985_v6  ;;  %v5195_v52 = vld [vmem:[#allocation21 + $0x104] ss:$8 sps:$4 sm:$0xff]   ;;  %v5150_v38 = vld [vmem:[#allocation21 + $0xf4] ss:$8 sps:$4 sm:$0xff]  }
 0x41e   :  { %4302 = vmatprep.subr.bf16.mxu0 %v5135_v29 }
 0x41f   :  { %v3112_v37 = vadd.f32 %v5988_v61, %v5982_v12  ;;  %v3184_v41 = vmul.f32 %v5988_v61, %v5988_v61  ;;  %v5997_v39 = vmul.f32 %v5789_v50, %v2836_v59  ;;  %4344 = vmatpush1.bf16.msra.mxu1 %v5178_v40  ;;  %v5145_v40 = vld [vmem:[#allocation21] ss:$8 sps:$4 sm:$0xff]  }
 0x420   :  { %4345 = vmatprep.subr.bf16.mxu1 %v5183_v30 }
 0x421   :  { %v3113_v47 = vrot.slane %v3112_v37, 4  ;;  %v3192_v51 = vadd.f32 %v3184_v41, %v3176_v36  ;;  %v3119_v54 = vadd.f32 %v5997_v39, %v5985_v6  ;;  %v3185_v56 = vmul.f32 %v5997_v39, %v5997_v39  ;;  %4303 = vmatpush1.bf16.msra.mxu0 %v5133_v31  ;;  %v5193_v31 = vld [vmem:[#allocation21 + $0x100] ss:$8 sps:$4 sm:$0xff]  }
 0x422   :  { %4304 = vmatprep.subr.bf16.mxu0 %v5138_v32 }
 0x423   :  { %v3114_v0 = vadd.f32 %v3113_v47, %v3112_v37  ;;  %v3193_v63 = vrot.slane %v3192_v51, 4  ;;  %v3120_v1 = vrot.slane %v3119_v54, 4  ;;  %v3199_v2 = vadd.f32 %v3185_v56, %v3177_v62  ;;  %4346 = vmatpush1.bf16.msra.mxu1 %v5181_v44  ;;  %v5198_v37 = vld [vmem:[#allocation21 + $0x1f4] ss:$8 sps:$4 sm:$0xff]   ;;  %v5148_v44 = vld [vmem:[#allocation21 + $0xf0] ss:$8 sps:$4 sm:$0xff]  }
 0x424   :  { %4347 = vmatprep.subr.bf16.mxu1 %v5186_v15  ;;  %v5153_v47 = vld [vmem:[#allocation21 + $0xe4] ss:$8 sps:$4 sm:$0xff]  }
 0x425   :  { %v3115_v8 = vrot.slane %v3114_v0, 2  ;;  %v3194_v55 = vadd.f32 %v3193_v63, %v3192_v51  ;;  %v3121_v9 = vadd.f32 %v3120_v1, %v3119_v54  ;;  %v3200_v10 = vrot.slane %v3199_v2, 4  ;;  %4305 = vmatpush1.bf16.msra.mxu0 %v5136_v57  ;;  %v5196_v54 = vld [vmem:[#allocation21 + $0x1f0] ss:$8 sps:$4 sm:$0xff]   ;;  %v5201_v57 = vld [vmem:[#allocation21 + $0x1e4] ss:$8 sps:$4 sm:$0xff]  }
 0x426   :  { %4306 = vmatprep.subr.bf16.mxu0 %v5141_v58  ;;  %v5151_v58 = vld [vmem:[#allocation21 + $0xe0] ss:$8 sps:$4 sm:$0xff]   ;;  %v5156_v63 = vld [vmem:[#allocation21 + $0xd4] ss:$8 sps:$4 sm:$0xff]  }
 0x427   :  { %v3116_v35 = vadd.f32 %v3115_v8, %v3114_v0  ;;  %v3195_v4 = vrot.slane %v3194_v55, 2  ;;  %v3122_v53 = vrot.slane %v3121_v9, 2  ;;  %v3201_v13 = vadd.f32 %v3200_v10, %v3199_v2  ;;  %4348 = vmatpush1.bf16.msra.mxu1 %v5184_v3  ;;  %v5199_v1 = vld [vmem:[#allocation21 + $0x1e0] ss:$8 sps:$4 sm:$0xff]   ;;  %v5204_v2 = vld [vmem:[#allocation21 + $0x1d4] ss:$8 sps:$4 sm:$0xff]  }
 0x428   :  { %4349 = vmatprep.subr.bf16.mxu1 %v5189_v5  ;;  %v5154_v3 = vld [vmem:[#allocation21 + $0xd0] ss:$8 sps:$4 sm:$0xff]   ;;  %v5159_v5 = vld [vmem:[#allocation21 + $0xc4] ss:$8 sps:$4 sm:$0xff]   ;;  %v5157_v10 = vld [vmem:[#allocation21 + $0xc0] ss:$8 sps:$4 sm:$0xff]  }
 0x429   :  { %v3117_v16 = vrot.slane %v3116_v35, 1  ;;  %v3196_v60 = vadd.f32 %v3195_v4, %v3194_v55  ;;  %v3123_v23 = vadd.f32 %v3122_v53, %v3121_v9  ;;  %v3202_v24 = vrot.slane %v3201_v13, 2  ;;  %4307 = vmatpush1.bf16.msra.mxu0 %v5139_v11  ;;  %v5202_v8 = vld [vmem:[#allocation21 + $0x1d0] ss:$8 sps:$4 sm:$0xff]   ;;  %v5207_v9 = vld [vmem:[#allocation21 + $0x1c4] ss:$8 sps:$4 sm:$0xff]  }
 0x42a   :  { %4308 = vmatprep.subr.bf16.mxu0 %v5144_v33  ;;  %v6020_v55 = vld [vmem:[%s6184_s12] sm:$0xff] }
 0x42b   :  { %v3118_v19 = vadd.f32 %v3117_v16, %v3116_v35  ;;  %v3197_v7 = vrot.slane %v3196_v60, 1  ;;  %v3124_v20 = vrot.slane %v3123_v23, 1  ;;  %v3203_v21 = vadd.f32 %v3202_v24, %v3201_v13  ;;  %4350 = vmatpush1.bf16.msra.mxu1 %v5187_v14  ;;  %v5162_v11 = vld [vmem:[#allocation21 + $0xb4] ss:$8 sps:$4 sm:$0xff]   ;;  %v5205_v35 = vld [vmem:[#allocation21 + $0x1c0] ss:$8 sps:$4 sm:$0xff]  }
 0x42c   :  { %4351 = vmatprep.subr.bf16.mxu1 %v5192_v34  ;;  %v3293_v33 = vrot.slane %v6020_v55, %v5825_v43  ;;  %v5210_v4 = vld [vmem:[#allocation21 + $0x1b4] ss:$8 sps:$4 sm:$0xff]   ;;  %v5160_v53 = vld [vmem:[#allocation21 + $0xb0] ss:$8 sps:$4 sm:$0xff]   ;;  %v3297_v34 = vrot.slane %v6020_v55, %v5828_v46  ;;  %v5165_v16 = vld [vmem:[#allocation21 + $0xa4] ss:$8 sps:$4 sm:$0xff]  }
 0x42d   :  { %v6006_v25 = vmul.f32 %v3118_v19, %v5818_v18  ;;  %v3198_v27 = vadd.f32 %v3197_v7, %v3196_v60  ;;  %v3125_v29 = vadd.f32 %v3124_v20, %v3123_v23  ;;  %v3204_v26 = vrot.slane %v3203_v21, 1  ;;  %4309 = vmatpush1.bf16.msra.mxu0 %v5142_v28  ;;  %v6027_v14 = vld [vmem:[%s6185_s13] sm:$0xff]  ;;  %v5213_v24 = vld [vmem:[#allocation21 + $0x1a4] ss:$8 sps:$4 sm:$0xff]  }
 0x42e   :  { %4310 = vmatprep.subr.bf16.mxu0 %v5147_v17  ;;  %v5208_v23 = vld [vmem:[#allocation21 + $0x1b0] ss:$8 sps:$4 sm:$0xff]   ;;  %v3407_v20 = vrot.slane %v6027_v14, %v5825_v43 }
 0x42f   :  { %v3248_v30 = vmul.f32 %v3198_v27, %v5818_v18  ;;  %v3256_v59 = vmul.f32 %v6006_v25, %v6006_v25  ;;  %4352 = vmatpush1.bf16.msra.mxu1 %v5190_v22  ;;  %v6012_v32 = vmul.f32 %v3125_v29, %v5818_v18  ;;  %v3205_v36 = vadd.f32 %v3204_v26, %v3203_v21  ;;  %v5163_v21 = vld [vmem:[#allocation21 + $0xa0] ss:$8 sps:$4 sm:$0xff]  }
 0x430   :  { %4353 = vmatprep.subr.bf16.mxu1 %v5195_v52  ;;  %v3338_v17 = vsub.f32 %v5982_v12, %v6006_v25  ;;  %v3346_v19 = vsub.f32 %v5988_v61, %v6006_v25  ;;  %v5168_v52 = vld [vmem:[#allocation21 + $0x94] ss:$8 sps:$4 sm:$0xff]   ;;  %v5211_v26 = vld [vmem:[#allocation21 + $0x1a0] ss:$8 sps:$4 sm:$0xff]   ;;  %v3411_v25 = vrot.slane %v6027_v14, %v5828_v46 }
 0x431   :  { %v3264_v41 = vsub.f32 %v3248_v30, %v3256_v59  ;;  %4311 = vmatpush1.bf16.msra.mxu0 %v5145_v40  ;;  %v3249_v62 = vmul.f32 %v3205_v36, %v5818_v18  ;;  %v3257_v15 = vmul.f32 %v6012_v32, %v6012_v32  ;;  %v3347_v12 = vsub.f32 %v5997_v39, %v6012_v32  ;;  %v5166_v59 = vld [vmem:[#allocation21 + $0x90] ss:$8 sps:$4 sm:$0xff]  }
 0x432   :  { %4312 = vmatprep.subr.bf16.mxu0 %v5150_v38  ;;  %v3339_v61 = vsub.f32 %v5985_v6, %v6012_v32  ;;  %v5216_v38 = vld [vmem:[#allocation21 + $0x194] ss:$8 sps:$4 sm:$0xff]   ;;  %v5219_v6 = vld [vmem:[#allocation21 + $0x184] ss:$8 sps:$4 sm:$0xff]   ;;  %v5169_v32 = vld [vmem:[#allocation21 + $0x80] ss:$8 sps:$4 sm:$0xff]  }
 0x433   :  { %v3272_v51 = vadd.f32 0.8, %v3264_v41  ;;  %4354 = vmatpush1.bf16.msra.mxu1 %v5193_v31  ;;  %v3265_v56 = vsub.f32 %v3249_v62, %v3257_v15  ;;  %v5214_v62 = vld [vmem:[#allocation21 + $0x190] ss:$8 sps:$4 sm:$0xff]  }
 0x434   :  { %4355 = vmatprep.subr.bf16.mxu1 %v5198_v37  ;;  %v5171_v37 = vld [vmem:[#allocation21 + $0x84] ss:$8 sps:$4 sm:$0xff]  }
 0x435   :  { %5328 = vrsqrt.f32 %v3272_v51  ;;  %4313 = vmatpush2.bf16.msra.mxu0 %v5148_v44  ;;  %v3273_v0 = vadd.f32 0.8, %v3265_v56  ;;  %v5222_v51 = vld [vmem:[#allocation21 + $0x274] ss:$8 sps:$4 sm:$0xff]  }
 0x436   :  { %4314 = vmatprep.subr.bf16.mxu0 %v5153_v47 }
 0x437   :  { %4356 = vmatpush2.bf16.msra.mxu1 %v5196_v54  ;;  %5330 = vrsqrt.f32 %v3273_v0  ;;  %v5217_v0 = vld [vmem:[#allocation21 + $0x180] ss:$8 sps:$4 sm:$0xff]  }
 0x438   :  { %4357 = vmatprep.subr.bf16.mxu1 %v5201_v57 }
 0x439   :  { %4315 = vmatpush2.bf16.msra.mxu0 %v5151_v58 }
 0x43a   :  { %4316 = vmatprep.subr.bf16.mxu0 %v5156_v63 }
 0x43b   :  { %4358 = vmatpush2.bf16.msra.mxu1 %v5199_v1 }
 0x43c   :  { %4359 = vmatprep.subr.bf16.mxu1 %v5204_v2 }
 0x43d   :  { %4317 = vmatpush2.bf16.msra.mxu0 %v5154_v3  ;;  %v5220_v3 = vld [vmem:[#allocation21 + $0x270] ss:$8 sps:$4 sm:$0xff]  }
 0x43e   :  { %4318 = vmatprep.subr.bf16.mxu0 %v5159_v5 }
 0x43f   :  { %4360 = vmatpush2.bf16.msra.mxu1 %v5202_v8  ;;  %v5225_v8 = vld [vmem:[#allocation21 + $0x264] ss:$8 sps:$4 sm:$0xff]  }
 0x440   :  { %4361 = vmatprep.subr.bf16.mxu1 %v5207_v9  ;;  %v5270_v9 = vld [vmem:[#allocation21 + $0x374] ss:$8 sps:$4 sm:$0xff]  }
 0x441   :  { %4319 = vmatpush2.bf16.msra.mxu0 %v5157_v10 }
 0x442   :  { %v5329_v13 = vpop.eup %5328  ;;  %4320 = vmatprep.subr.bf16.mxu0 %v5162_v11  ;;  %v5223_v11 = vld [vmem:[#allocation21 + $0x260] ss:$8 sps:$4 sm:$0xff]  }
 0x443   :  { %v3330_v60 = vmul.f32 %v5329_v13, %v3293_v33  ;;  %4362 = vmatpush2.bf16.msra.mxu1 %v5205_v35 }
 0x444   :  { %4363 = vmatprep.subr.bf16.mxu1 %v5210_v4  ;;  %v5331_v28 = vpop.eup %5330  ;;  %v5228_v4 = vld [vmem:[#allocation21 + $0x254] ss:$8 sps:$4 sm:$0xff]  }
 0x445   :  { %v3357_v7 = vrot.slane %v3330_v60, %v5825_v43  ;;  %4321 = vmatpush2.bf16.msra.mxu0 %v5160_v53  ;;  %v3331_v22 = vmul.f32 %v5331_v28, %v3297_v34  ;;  %v5226_v60 = vld [vmem:[#allocation21 + $0x250] ss:$8 sps:$4 sm:$0xff]   ;;  %v5231_v28 = vld [vmem:[#allocation21 + $0x244] ss:$8 sps:$4 sm:$0xff]  }
 0x446   :  { %4322 = vmatprep.subr.bf16.mxu0 %v5165_v16 }
 0x447   :  { %v3386_v27 = vmul.f32 %v3357_v7, %v3338_v17  ;;  %v3394_v29 = vmul.f32 %v3357_v7, %v3346_v19  ;;  %4364 = vmatpush2.bf16.msra.mxu1 %v5208_v23  ;;  %v3361_v40 = vrot.slane %v3331_v22, %v5825_v43 }
 0x448   :  { %4365 = vmatprep.subr.bf16.mxu1 %v5213_v24 }
 0x449   :  { %v3452_v30 = vadd.f32 %v3407_v20, %v3394_v29  ;;  %4323 = vmatpush2.bf16.msra.mxu0 %v5163_v21  ;;  %v3444_v31 = vadd.f32 %v3407_v20, %v3386_v27  ;;  %v3395_v36 = vmul.f32 %v3361_v40, %v3347_v12  ;;  %v3387_v41 = vmul.f32 %v3361_v40, %v3339_v61  ;;  %v5234_v27 = vld [vmem:[#allocation21 + $0x234] ss:$8 sps:$4 sm:$0xff]  }
 0x44a   :  { %4324 = vmatprep.subr.bf16.mxu0 %v5168_v52  ;;  %v5229_v52 = vld [vmem:[#allocation21 + $0x240] ss:$8 sps:$4 sm:$0xff]  }
 0x44b   :  { %v3476_v44 = vmul.f32 0.2, %v3444_v31  ;;  %v3484_v39 = vmul.f32 0.2, %v3452_v30  ;;  %4366 = vmatpush2.bf16.msra.mxu1 %v5211_v26  ;;  %v3445_v15 = vadd.f32 %v3411_v25, %v3387_v41  ;;  %v3453_v47 = vadd.f32 %v3411_v25, %v3395_v36  ;;  %v5237_v36 = vld [vmem:[#allocation21 + $0x224] ss:$8 sps:$4 sm:$0xff]  }
 0x44c   :  { %vm3460_vm2 = vcmp.gt.f32.partialorder %v3444_v31, 0.0  ;;  %vm3468_vm3 = vcmp.gt.f32.partialorder %v3452_v30, 0.0  ;;  %4367 = vmatprep.subr.bf16.mxu1 %v5216_v38 }
 0x44d   :  { %4325 = vmatpush2.bf16.msra.mxu0 %v5166_v59  ;;  %vm3461_vm4 = vcmp.gt.f32.partialorder %v3445_v15, 0.0  ;;  %vm3469_vm5 = vcmp.gt.f32.partialorder %v3453_v47, 0.0  ;;  %v3477_v54 = vmul.f32 0.2, %v3445_v15  ;;  %v3485_v56 = vmul.f32 0.2, %v3453_v47 }
 0x44e   :  { %4326 = vmatprep.subr.bf16.mxu0 %v5171_v37  ;;  %v3492_v57 = vsel %vm3460_vm2, %v3444_v31, %v3476_v44  ;;  %v3500_v58 = vsel %vm3468_vm3, %v3452_v30, %v3484_v39  ;;  %v5232_v31 = vld [vmem:[#allocation21 + $0x230] ss:$8 sps:$4 sm:$0xff]  }
 0x44f   :  { %4368 = vmatpush2.bf16.msra.mxu1 %v5214_v62  ;;  %v3493_v63 = vsel %vm3461_vm4, %v3445_v15, %v3477_v54  ;;  %v3501_v1 = vsel %vm3469_vm5, %v3453_v47, %v3485_v56  ;;  %v3508_v5 = vpack.c.bf16 %v3500_v58, %v3492_v57 }
 0x450   :  { %4369 = vmatprep.subr.bf16.mxu1 %v5219_v6  ;;  %v3509_v2 = vpack.c.bf16 %v3501_v1, %v3493_v63 }
 0x451   :  { %4327 = vmatpush2.bf16.msra.mxu0 %v5169_v32  ;;  %v5235_v32 = vld [vmem:[#allocation21 + $0x220] ss:$8 sps:$4 sm:$0xff]  }
 0x452   :  { %4382 = vmatprep.subr.bf16.mxu0 %v5222_v51  ;;  %4328 = vmatprep.mubr.bf16.mxu0 %v3509_v2  ;;  %v5240_v51 = vld [vmem:[#allocation21 + $0x214] ss:$8 sps:$4 sm:$0xff]  }
 0x453   :  { %4370 = vmatpush2.bf16.msra.mxu1 %v5217_v0 }
 0x454   :  { %v2872_v10 = vpop.f32.mrf.mxu0  ;;  %4329 = vmatmul.mubr.bf16.vlgmr.msra.gmra.mxu0 %v3508_v5  ;;  %4425 = vmatprep.subr.bf16.mxu1 %v5270_v9  ;;  %v5243_v5 = vld [vmem:[#allocation21 + $0x204] ss:$8 sps:$4 sm:$0xff]  }
 0x455   :  { %4383 = vmatpush1.bf16.msra.mxu0 %v5220_v3  ;;  %v5238_v3 = vld [vmem:[#allocation21 + $0x210] ss:$8 sps:$4 sm:$0xff]  }
 0x456   :  { %v2915_v33 = vpop.f32.mrf.mxu1  ;;  %v2874_v35 = vpop.f32.mrf.mxu0  ;;  %4384 = vmatprep.subr.bf16.mxu0 %v5225_v8 }
 0x457   :  { %v2916_v53 = vadd.f32 %v2915_v33, %v2872_v10 }
 0x458   :  { %v2917_v13 = vpop.f32.mrf.mxu1  ;;  %v2876_v34 = vpop.f32.mrf.mxu0 }
 0x459   :  { %v2918_v16 = vadd.f32 %v2917_v13, %v2874_v35  ;;  %4385 = vmatpush1.bf16.msra.mxu0 %v5223_v11  ;;  %v6046_v17 = vmul.f32 %v5786_v48, %v2916_v53  ;;  %v5241_v13 = vld [vmem:[#allocation21 + $0x200] ss:$8 sps:$4 sm:$0xff]  }
 0x45a   :  { %v2919_v23 = vpop.f32.mrf.mxu1  ;;  %v2878_v24 = vpop.f32.mrf.mxu0  ;;  %4386 = vmatprep.subr.bf16.mxu0 %v5228_v4 }
 0x45b   :  { %v2920_v19 = vadd.f32 %v2919_v23, %v2876_v34  ;;  %v6049_v7 = vmul.f32 %v5786_v48, %v2918_v16  ;;  %v3178_v29 = vmul.f32 %v6046_v17, %v6046_v17  ;;  %v5246_v34 = vld [vmem:[#allocation21 + $0x2f4] ss:$8 sps:$4 sm:$0xff]  }
 0x45c   :  { %v2921_v20 = vpop.f32.mrf.mxu1 }
 0x45d   :  { %v6052_v21 = vmul.f32 %v5789_v50, %v2920_v19  ;;  %v2922_v22 = vadd.f32 %v2921_v20, %v2878_v24  ;;  %4387 = vmatpush1.bf16.msra.mxu0 %v5226_v60  ;;  %v3179_v61 = vmul.f32 %v6049_v7, %v6049_v7  ;;  %v5244_v19 = vld [vmem:[#allocation21 + $0x2f0] ss:$8 sps:$4 sm:$0xff]  }
 0x45e   :  { %4388 = vmatprep.subr.bf16.mxu0 %v5231_v28 }
 0x45f   :  { %v3126_v26 = vadd.f32 %v6052_v21, %v6046_v17  ;;  %v3186_v12 = vmul.f32 %v6052_v21, %v6052_v21  ;;  %v6061_v40 = vmul.f32 %v5789_v50, %v2922_v22 }
 0x461   :  { %v3127_v25 = vrot.slane %v3126_v26, 4  ;;  %v3206_v38 = vadd.f32 %v3186_v12, %v3178_v29  ;;  %v3133_v30 = vadd.f32 %v6061_v40, %v6049_v7  ;;  %v3187_v59 = vmul.f32 %v6061_v40, %v6061_v40  ;;  %4389 = vmatpush1.bf16.msra.mxu0 %v5229_v52  ;;  %v5249_v52 = vld [vmem:[#allocation21 + $0x2e4] ss:$8 sps:$4 sm:$0xff]  }
 0x462   :  { %4390 = vmatprep.subr.bf16.mxu0 %v5234_v27 }
 0x463   :  { %v3128_v37 = vadd.f32 %v3127_v25, %v3126_v26  ;;  %v3207_v41 = vrot.slane %v3206_v38, 4  ;;  %v3134_v44 = vrot.slane %v3133_v30, 4  ;;  %v3213_v39 = vadd.f32 %v3187_v59, %v3179_v61  ;;  %v5247_v26 = vld [vmem:[#allocation21 + $0x2e0] ss:$8 sps:$4 sm:$0xff]   ;;  %v5252_v61 = vld [vmem:[#allocation21 + $0x2d4] ss:$8 sps:$4 sm:$0xff]  }
 0x464   :  { %v5250_v25 = vld [vmem:[#allocation21 + $0x2d0] ss:$8 sps:$4 sm:$0xff]   ;;  %v5258_v59 = vld [vmem:[#allocation21 + $0x2b4] ss:$8 sps:$4 sm:$0xff]  }
 0x465   :  { %v3129_v62 = vrot.slane %v3128_v37, 2  ;;  %v3208_v15 = vadd.f32 %v3207_v41, %v3206_v38  ;;  %v3135_v47 = vadd.f32 %v3134_v44, %v3133_v30  ;;  %v3214_v6 = vrot.slane %v3213_v39, 4  ;;  %4391 = vmatpush1.bf16.msra.mxu0 %v5232_v31  ;;  %v5255_v38 = vld [vmem:[#allocation21 + $0x2c4] ss:$8 sps:$4 sm:$0xff]   ;;  %v5253_v30 = vld [vmem:[#allocation21 + $0x2c0] ss:$8 sps:$4 sm:$0xff]  }
 0x466   :  { %4392 = vmatprep.subr.bf16.mxu0 %v5237_v36  ;;  %v3301_v31 = vrot.slane %v6020_v55, %v5923_v42  ;;  %v5256_v36 = vld [vmem:[#allocation21 + $0x2b0] ss:$8 sps:$4 sm:$0xff]   ;;  %v3305_v41 = vrot.slane %v6020_v55, %v5928_v49  ;;  %v5261_v44 = vld [vmem:[#allocation21 + $0x2a4] ss:$8 sps:$4 sm:$0xff]  }
 0x467   :  { %v3130_v54 = vadd.f32 %v3129_v62, %v3128_v37  ;;  %v3209_v56 = vrot.slane %v3208_v15, 2  ;;  %v3136_v57 = vrot.slane %v3135_v47, 2  ;;  %v3215_v58 = vadd.f32 %v3214_v6, %v3213_v39 }
 0x469   :  { %v3131_v0 = vrot.slane %v3130_v54, 1  ;;  %v3210_v63 = vadd.f32 %v3209_v56, %v3208_v15  ;;  %v3137_v1 = vadd.f32 %v3136_v57, %v3135_v47  ;;  %v3216_v2 = vrot.slane %v3215_v58, 2  ;;  %4393 = vmatpush1.bf16.msra.mxu0 %v5235_v32  ;;  %v5264_v56 = vld [vmem:[#allocation21 + $0x294] ss:$8 sps:$4 sm:$0xff]  }
 0x46a   :  { %4394 = vmatprep.subr.bf16.mxu0 %v5240_v51  ;;  %v3415_v32 = vrot.slane %v6027_v14, %v5923_v42  ;;  %v5259_v51 = vld [vmem:[#allocation21 + $0x2a0] ss:$8 sps:$4 sm:$0xff]   ;;  %v5262_v42 = vld [vmem:[#allocation21 + $0x290] ss:$8 sps:$4 sm:$0xff]  }
 0x46b   :  { %v3132_v8 = vadd.f32 %v3131_v0, %v3130_v54  ;;  %v3211_v9 = vrot.slane %v3210_v63, 1  ;;  %v3138_v10 = vrot.slane %v3137_v1, 1  ;;  %v3217_v11 = vadd.f32 %v3216_v2, %v3215_v58 }
 0x46d   :  { %v3170_v33 = vmul.f32 %v3132_v8, %v5818_v18  ;;  %v3212_v35 = vadd.f32 %v3211_v9, %v3210_v63  ;;  %v3139_v4 = vadd.f32 %v3138_v10, %v3137_v1  ;;  %v3218_v53 = vrot.slane %v3217_v11, 1  ;;  %4395 = vmatpush1.bf16.msra.mxu0 %v5238_v3  ;;  %v5267_v8 = vld [vmem:[#allocation21 + $0x284] ss:$8 sps:$4 sm:$0xff]  }
 0x46e   :  { %4396 = vmatprep.subr.bf16.mxu0 %v5243_v5 }
 0x46f   :  { %v3250_v16 = vmul.f32 %v3212_v35, %v5818_v18  ;;  %v3258_v60 = vmul.f32 %v3170_v33, %v3170_v33  ;;  %v3171_v23 = vmul.f32 %v3139_v4, %v5818_v18  ;;  %v3219_v24 = vadd.f32 %v3218_v53, %v3217_v11 }
 0x470   :  { %v3340_v15 = vsub.f32 %v6046_v17, %v3170_v33  ;;  %v3348_v47 = vsub.f32 %v6052_v21, %v3170_v33  ;;  %v3419_v21 = vrot.slane %v6027_v14, %v5928_v49 }
 0x471   :  { %v3266_v28 = vsub.f32 %v3250_v16, %v3258_v60  ;;  %4397 = vmatpush1.bf16.msra.mxu0 %v5241_v13  ;;  %v3251_v20 = vmul.f32 %v3219_v24, %v5818_v18  ;;  %v3259_v22 = vmul.f32 %v3171_v23, %v3171_v23  ;;  %v3349_v0 = vsub.f32 %v6061_v40, %v3171_v23  ;;  %v5265_v40 = vld [vmem:[#allocation21 + $0x280] ss:$8 sps:$4 sm:$0xff]   ;;  %v5268_v16 = vld [vmem:[#allocation21 + $0x370] ss:$8 sps:$4 sm:$0xff]  }
 0x472   :  { %4398 = vmatprep.subr.bf16.mxu0 %v5246_v34  ;;  %v3341_v17 = vsub.f32 %v6049_v7, %v3171_v23  ;;  %v5273_v23 = vld [vmem:[#allocation21 + $0x364] ss:$8 sps:$4 sm:$0xff]  }
 0x473   :  { %v3274_v27 = vadd.f32 0.8, %v3266_v28  ;;  %v3267_v29 = vsub.f32 %v3251_v20, %v3259_v22  ;;  %v5271_v28 = vld [vmem:[#allocation21 + $0x360] ss:$8 sps:$4 sm:$0xff]   ;;  %v5276_v22 = vld [vmem:[#allocation21 + $0x354] ss:$8 sps:$4 sm:$0xff]  }
 0x475   :  { %5332 = vrsqrt.f32 %v3274_v27  ;;  %4399 = vmatpush2.bf16.msra.mxu0 %v5244_v19  ;;  %v3275_v12 = vadd.f32 0.8, %v3267_v29 }
 0x476   :  { %4400 = vmatprep.subr.bf16.mxu0 %v5249_v52 }
 0x477   :  { %5334 = vrsqrt.f32 %v3275_v12  ;;  %v5274_v12 = vld [vmem:[#allocation21 + $0x350] ss:$8 sps:$4 sm:$0xff]  }
 0x479   :  { %4401 = vmatpush2.bf16.msra.mxu0 %v5247_v26 }
 0x47a   :  { %4402 = vmatprep.subr.bf16.mxu0 %v5252_v61 }
 0x47d   :  { %4403 = vmatpush2.bf16.msra.mxu0 %v5250_v25 }
 0x47e   :  { %4404 = vmatprep.subr.bf16.mxu0 %v5255_v38  ;;  %v5279_v38 = vld [vmem:[#allocation21 + $0x344] ss:$8 sps:$4 sm:$0xff]  }
 0x481   :  { %4405 = vmatpush2.bf16.msra.mxu0 %v5253_v30 }
 0x482   :  { %v5333_v37 = vpop.eup %5332  ;;  %4406 = vmatprep.subr.bf16.mxu0 %v5258_v59 }
 0x483   :  { %v3332_v39 = vmul.f32 %v5333_v37, %v3301_v31 }
 0x484   :  { %v5335_v62 = vpop.eup %5334 }
 0x485   :  { %v3365_v6 = vrot.slane %v3332_v39, %v5825_v43  ;;  %4407 = vmatpush2.bf16.msra.mxu0 %v5256_v36  ;;  %v3333_v54 = vmul.f32 %v5335_v62, %v3305_v41  ;;  %v5282_v39 = vld [vmem:[#allocation21 + $0x334] ss:$8 sps:$4 sm:$0xff]  }
 0x486   :  { %4408 = vmatprep.subr.bf16.mxu0 %v5261_v44  ;;  %v5277_v44 = vld [vmem:[#allocation21 + $0x340] ss:$8 sps:$4 sm:$0xff]  }
 0x487   :  { %v3388_v57 = vmul.f32 %v3365_v6, %v3340_v15  ;;  %v3396_v58 = vmul.f32 %v3365_v6, %v3348_v47  ;;  %v3369_v63 = vrot.slane %v3333_v54, %v5825_v43 }
 0x489   :  { %v3454_v1 = vadd.f32 %v3415_v32, %v3396_v58  ;;  %v3446_v2 = vadd.f32 %v3415_v32, %v3388_v57  ;;  %4409 = vmatpush2.bf16.msra.mxu0 %v5259_v51  ;;  %v3397_v3 = vmul.f32 %v3369_v63, %v3349_v0  ;;  %v3389_v5 = vmul.f32 %v3369_v63, %v3341_v17  ;;  %v5280_v58 = vld [vmem:[#allocation21 + $0x330] ss:$8 sps:$4 sm:$0xff]   ;;  %v5285_v0 = vld [vmem:[#allocation21 + $0x324] ss:$8 sps:$4 sm:$0xff]  }
 0x48a   :  { %4410 = vmatprep.subr.bf16.mxu0 %v5264_v56 }
 0x48b   :  { %v3478_v9 = vmul.f32 0.2, %v3446_v2  ;;  %v3486_v10 = vmul.f32 0.2, %v3454_v1  ;;  %v3447_v11 = vadd.f32 %v3419_v21, %v3389_v5  ;;  %v3455_v33 = vadd.f32 %v3419_v21, %v3397_v3 }
 0x48c   :  { %vm3462_vm6 = vcmp.gt.f32.partialorder %v3446_v2, 0.0  ;;  %vm3470_vm7 = vcmp.gt.f32.partialorder %v3454_v1, 0.0 }
 0x48d   :  { %4411 = vmatpush2.bf16.msra.mxu0 %v5262_v42  ;;  %vm3463_vm8 = vcmp.gt.f32.partialorder %v3447_v11, 0.0  ;;  %vm3471_vm9 = vcmp.gt.f32.partialorder %v3455_v33, 0.0  ;;  %v3479_v7 = vmul.f32 0.2, %v3447_v11  ;;  %v3487_v49 = vmul.f32 0.2, %v3455_v33 }
 0x48e   :  { %4412 = vmatprep.subr.bf16.mxu0 %v5267_v8  ;;  %v3494_v35 = vsel %vm3462_vm6, %v3446_v2, %v3478_v9  ;;  %v3502_v4 = vsel %vm3470_vm7, %v3454_v1, %v3486_v10  ;;  %v5283_v8 = vld [vmem:[#allocation21 + $0x320] ss:$8 sps:$4 sm:$0xff]   ;;  %v5288_v9 = vld [vmem:[#allocation21 + $0x314] ss:$8 sps:$4 sm:$0xff]  }
 0x48f   :  { %v3495_v53 = vsel %vm3463_vm8, %v3447_v11, %v3479_v7  ;;  %v3503_v13 = vsel %vm3471_vm9, %v3455_v33, %v3487_v49  ;;  %v3510_v60 = vpack.c.bf16 %v3502_v4, %v3494_v35 }
 0x490   :  { %v3511_v34 = vpack.c.bf16 %v3503_v13, %v3495_v53  ;;  %v5286_v53 = vld [vmem:[#allocation21 + $0x310] ss:$8 sps:$4 sm:$0xff]   ;;  %v5291_v13 = vld [vmem:[#allocation21 + $0x304] ss:$8 sps:$4 sm:$0xff]  }
 0x491   :  { %4413 = vmatpush2.bf16.msra.mxu0 %v5265_v40 }
 0x492   :  { %4371 = vmatprep.mubr.bf16.mxu1 %v3511_v34 }
 0x493   :  { %4372 = vmatmul.mubr.bf16.vlgmr.msra.gmra.mxu1 %v3510_v60 }
 0x494   :  { %v2958_v24 = vpop.f32.mrf.mxu0  ;;  %4426 = vmatpush1.bf16.msra.mxu1 %v5268_v16 }
 0x495   :  { %4427 = vmatprep.subr.bf16.mxu1 %v5273_v23 }
 0x496   :  { %v3001_v19 = vpop.f32.mrf.mxu1  ;;  %v2960_v20 = vpop.f32.mrf.mxu0 }
 0x497   :  { %v3002_v52 = vadd.f32 %v3001_v19, %v2958_v24 }
 0x498   :  { %v3003_v27 = vpop.f32.mrf.mxu1  ;;  %v2962_v29 = vpop.f32.mrf.mxu0  ;;  %4428 = vmatpush1.bf16.msra.mxu1 %v5271_v28 }
 0x499   :  { %v3004_v26 = vadd.f32 %v3003_v27, %v2960_v20  ;;  %4429 = vmatprep.subr.bf16.mxu1 %v5276_v22  ;;  %v6088_v30 = vmul.f32 %v5786_v48, %v3002_v52  ;;  %v5289_v22 = vld [vmem:[#allocation21 + $0x300] ss:$8 sps:$4 sm:$0xff]   ;;  %v5294_v52 = vld [vmem:[#allocation21 + $0x3f4] ss:$8 sps:$4 sm:$0xff]  }
 0x49a   :  { %v3005_v61 = vpop.f32.mrf.mxu1  ;;  %v2964_v25 = vpop.f32.mrf.mxu0 }
 0x49b   :  { %v3006_v59 = vadd.f32 %v3005_v61, %v2962_v29  ;;  %v6091_v31 = vmul.f32 %v5786_v48, %v3004_v26  ;;  %v3180_v62 = vmul.f32 %v6088_v30, %v6088_v30 }
 0x49c   :  { %v3007_v36 = vpop.f32.mrf.mxu1  ;;  %4430 = vmatpush1.bf16.msra.mxu1 %v5274_v12 }
 0x49d   :  { %v6094_v37 = vmul.f32 %v5789_v50, %v3006_v59  ;;  %v3008_v41 = vadd.f32 %v3007_v36, %v2964_v25  ;;  %4431 = vmatprep.subr.bf16.mxu1 %v5279_v38  ;;  %v3181_v32 = vmul.f32 %v6091_v31, %v6091_v31  ;;  %v5292_v25 = vld [vmem:[#allocation21 + $0x3f0] ss:$8 sps:$4 sm:$0xff]   ;;  %v5297_v36 = vld [vmem:[#allocation21 + $0x3e4] ss:$8 sps:$4 sm:$0xff]  }
 0x49f   :  { %v3140_v15 = vadd.f32 %v6094_v37, %v6088_v30  ;;  %v3188_v47 = vmul.f32 %v6094_v37, %v6094_v37  ;;  %v6103_v6 = vmul.f32 %v5789_v50, %v3008_v41 }
 0x4a0   :  { %4432 = vmatpush1.bf16.msra.mxu1 %v5277_v44 }
 0x4a1   :  { %v3141_v51 = vrot.slane %v3140_v15, 4  ;;  %v3220_v54 = vadd.f32 %v3188_v47, %v3180_v62  ;;  %v3147_v56 = vadd.f32 %v6103_v6, %v6091_v31  ;;  %v3189_v57 = vmul.f32 %v6103_v6, %v6103_v6  ;;  %4433 = vmatprep.subr.bf16.mxu1 %v5282_v39  ;;  %v5295_v39 = vld [vmem:[#allocation21 + $0x3e0] ss:$8 sps:$4 sm:$0xff]   ;;  %v5298_v47 = vld [vmem:[#allocation21 + $0x3d0] ss:$8 sps:$4 sm:$0xff]  }
 0x4a3   :  { %v3142_v63 = vadd.f32 %v3141_v51, %v3140_v15  ;;  %v3221_v17 = vrot.slane %v3220_v54, 4  ;;  %v3148_v21 = vrot.slane %v3147_v56, 4  ;;  %v3227_v1 = vadd.f32 %v3189_v57, %v3181_v32  ;;  %v5300_v15 = vld [vmem:[#allocation21 + $0x3d4] ss:$8 sps:$4 sm:$0xff]   ;;  %v5303_v32 = vld [vmem:[#allocation21 + $0x3c4] ss:$8 sps:$4 sm:$0xff]  }
 0x4a4   :  { %4434 = vmatpush1.bf16.msra.mxu1 %v5280_v58  ;;  %v3308_v51 = vsub.s32 4, %v5778_v45  ;;  %v5306_v57 = vld [vmem:[#allocation21 + $0x3b4] ss:$8 sps:$4 sm:$0xff]  }
 0x4a5   :  { %v3143_v2 = vrot.slane %v3142_v63, 2  ;;  %v3222_v42 = vadd.f32 %v3221_v17, %v3220_v54  ;;  %v3149_v3 = vadd.f32 %v3148_v21, %v3147_v56  ;;  %v3228_v5 = vrot.slane %v3227_v1, 4  ;;  %4435 = vmatprep.subr.bf16.mxu1 %v5285_v0  ;;  %v5301_v54 = vld [vmem:[#allocation21 + $0x3c0] ss:$8 sps:$4 sm:$0xff]   ;;  %v5304_v0 = vld [vmem:[#allocation21 + $0x3b0] ss:$8 sps:$4 sm:$0xff]  }
 0x4a6   :  { %v3312_v56 = vsub.s32 5, %v5778_v45  ;;  %v3309_v58 = vrot.slane %v6020_v55, %v3308_v51  ;;  %v5309_v21 = vld [vmem:[#allocation21 + $0x3a4] ss:$8 sps:$4 sm:$0xff]  }
 0x4a7   :  { %v3144_v10 = vadd.f32 %v3143_v2, %v3142_v63  ;;  %v3223_v11 = vrot.slane %v3222_v42, 2  ;;  %v3150_v33 = vrot.slane %v3149_v3, 2  ;;  %v3229_v40 = vadd.f32 %v3228_v5, %v3227_v1 }
 0x4a8   :  { %4436 = vmatpush1.bf16.msra.mxu1 %v5283_v8  ;;  %v3313_v17 = vrot.slane %v6020_v55, %v3312_v56  ;;  %v3423_v8 = vrot.slane %v6027_v14, %v3308_v51 }
 0x4a9   :  { %v3145_v7 = vrot.slane %v3144_v10, 1  ;;  %v3224_v49 = vadd.f32 %v3223_v11, %v3222_v42  ;;  %v3151_v35 = vadd.f32 %v3150_v33, %v3149_v3  ;;  %v3230_v4 = vrot.slane %v3229_v40, 2  ;;  %4437 = vmatprep.subr.bf16.mxu1 %v5288_v9  ;;  %v5307_v9 = vld [vmem:[#allocation21 + $0x3a0] ss:$8 sps:$4 sm:$0xff]   ;;  %v5312_v11 = vld [vmem:[#allocation21 + $0x394] ss:$8 sps:$4 sm:$0xff]  }
 0x4ab   :  { %v3146_v34 = vadd.f32 %v3145_v7, %v3144_v10  ;;  %v3225_v16 = vrot.slane %v3224_v49, 1  ;;  %v3152_v60 = vrot.slane %v3151_v35, 1  ;;  %v3231_v23 = vadd.f32 %v3230_v4, %v3229_v40 }
 0x4ac   :  { %4438 = vmatpush1.bf16.msra.mxu1 %v5286_v53  ;;  %v5310_v53 = vld [vmem:[#allocation21 + $0x390] ss:$8 sps:$4 sm:$0xff]  }
 0x4ad   :  { %v3172_v24 = vmul.f32 %v3146_v34, %v5818_v18  ;;  %v3226_v28 = vadd.f32 %v3225_v16, %v3224_v49  ;;  %v3153_v19 = vadd.f32 %v3152_v60, %v3151_v35  ;;  %v3232_v20 = vrot.slane %v3231_v23, 1  ;;  %4439 = vmatprep.subr.bf16.mxu1 %v5291_v13  ;;  %v5315_v16 = vld [vmem:[#allocation21 + $0x384] ss:$8 sps:$4 sm:$0xff]  }
 0x4af   :  { %v3252_v27 = vmul.f32 %v3226_v28, %v5818_v18  ;;  %v3260_v29 = vmul.f32 %v3172_v24, %v3172_v24  ;;  %v3173_v26 = vmul.f32 %v3153_v19, %v5818_v18  ;;  %v3233_v12 = vadd.f32 %v3232_v20, %v3231_v23 }
 0x4b0   :  { %4440 = vmatpush1.bf16.msra.mxu1 %v5289_v22  ;;  %v3342_v42 = vsub.f32 %v6088_v30, %v3172_v24  ;;  %v3350_v3 = vsub.f32 %v6094_v37, %v3172_v24  ;;  %v3427_v30 = vrot.slane %v6027_v14, %v3312_v56 }
 0x4b1   :  { %v3268_v61 = vsub.f32 %v3252_v27, %v3260_v29  ;;  %v3253_v38 = vmul.f32 %v3233_v12, %v5818_v18  ;;  %v3261_v59 = vmul.f32 %v3173_v26, %v3173_v26  ;;  %4441 = vmatprep.subr.bf16.mxu1 %v5294_v52  ;;  %v3351_v7 = vsub.f32 %v6103_v6, %v3173_v26  ;;  %v5313_v6 = vld [vmem:[#allocation21 + $0x380] ss:$8 sps:$4 sm:$0xff]  }
 0x4b2   :  { %v3343_v35 = vsub.f32 %v6091_v31, %v3173_v26 }
 0x4b3   :  { %v3276_v41 = vadd.f32 0.8, %v3268_v61  ;;  %v3269_v44 = vsub.f32 %v3253_v38, %v3261_v59 }
 0x4b4   :  { %4442 = vmatpush2.bf16.msra.mxu1 %v5292_v25 }
 0x4b5   :  { %5336 = vrsqrt.f32 %v3276_v41  ;;  %v3277_v62 = vadd.f32 0.8, %v3269_v44  ;;  %4443 = vmatprep.subr.bf16.mxu1 %v5297_v36 }
 0x4b7   :  { %5338 = vrsqrt.f32 %v3277_v62 }
 0x4b8   :  { %4444 = vmatpush2.bf16.msra.mxu1 %v5295_v39 }
 0x4b9   :  { %4445 = vmatprep.subr.bf16.mxu1 %v5300_v15 }
 0x4bc   :  { %4446 = vmatpush2.bf16.msra.mxu1 %v5298_v47 }
 0x4bd   :  { %4447 = vmatprep.subr.bf16.mxu1 %v5303_v32 }
 0x4c0   :  { %4448 = vmatpush2.bf16.msra.mxu1 %v5301_v54 }
 0x4c1   :  { %4449 = vmatprep.subr.bf16.mxu1 %v5306_v57 }
 0x4c2   :  { %v5337_v63 = vpop.eup %5336 }
 0x4c3   :  { %v3334_v1 = vmul.f32 %v5337_v63, %v3309_v58 }
 0x4c4   :  { %v5339_v2 = vpop.eup %5338  ;;  %4450 = vmatpush2.bf16.msra.mxu1 %v5304_v0 }
 0x4c5   :  { %v3373_v5 = vrot.slane %v3334_v1, %v5825_v43  ;;  %v3335_v10 = vmul.f32 %v5339_v2, %v3313_v17  ;;  %4451 = vmatprep.subr.bf16.mxu1 %v5309_v21 }
 0x4c7   :  { %v3390_v33 = vmul.f32 %v3373_v5, %v3342_v42  ;;  %v3398_v40 = vmul.f32 %v3373_v5, %v3350_v3  ;;  %v3377_v49 = vrot.slane %v3335_v10, %v5825_v43 }
 0x4c8   :  { %4452 = vmatpush2.bf16.msra.mxu1 %v5307_v9 }
 0x4c9   :  { %v3456_v37 = vadd.f32 %v3423_v8, %v3398_v40  ;;  %v3448_v4 = vadd.f32 %v3423_v8, %v3390_v33  ;;  %v3399_v13 = vmul.f32 %v3377_v49, %v3351_v7  ;;  %v3391_v34 = vmul.f32 %v3377_v49, %v3343_v35  ;;  %4453 = vmatprep.subr.bf16.mxu1 %v5312_v11 }
 0x4cb   :  { %v3480_v60 = vmul.f32 0.2, %v3448_v4  ;;  %v3488_v23 = vmul.f32 0.2, %v3456_v37  ;;  %v3449_v24 = vadd.f32 %v3427_v30, %v3391_v34  ;;  %v3457_v28 = vadd.f32 %v3427_v30, %v3399_v13 }
 0x4cc   :  { %vm3464_vm10 = vcmp.gt.f32.partialorder %v3448_v4, 0.0  ;;  %vm3472_vm11 = vcmp.gt.f32.partialorder %v3456_v37, 0.0  ;;  %4454 = vmatpush2.bf16.msra.mxu1 %v5310_v53 }
 0x4cd   :  { %vm3465_vm12 = vcmp.gt.f32.partialorder %v3449_v24, 0.0  ;;  %vm3473_vm13 = vcmp.gt.f32.partialorder %v3457_v28, 0.0  ;;  %v3481_v31 = vmul.f32 0.2, %v3449_v24  ;;  %v3489_v19 = vmul.f32 0.2, %v3457_v28  ;;  %4455 = vmatprep.subr.bf16.mxu1 %v5315_v16 }
 0x4ce   :  { %v3496_v20 = vsel %vm3464_vm10, %v3448_v4, %v3480_v60  ;;  %v3504_v22 = vsel %vm3472_vm11, %v3456_v37, %v3488_v23 }
 0x4cf   :  { %v3497_v52 = vsel %vm3465_vm12, %v3449_v24, %v3481_v31  ;;  %v3505_v27 = vsel %vm3473_vm13, %v3457_v28, %v3489_v19  ;;  %v3512_v26 = vpack.c.bf16 %v3504_v22, %v3496_v20 }
 0x4d0   :  { %v3513_v29 = vpack.c.bf16 %v3505_v27, %v3497_v52  ;;  %4456 = vmatpush2.bf16.msra.mxu1 %v5313_v6 }
 0x4d2   :  { %4414 = vmatprep.mubr.bf16.mxu0 %v3513_v29 }
 0x4d3   :  { %4415 = vmatmul.mubr.bf16.vlgmr.msra.gmra.mxu0 %v3512_v26 }
 0x4d4   :  { %v3044_v12 = vpop.f32.mrf.mxu0 }
 0x4d6   :  { %v3087_v61 = vpop.f32.mrf.mxu1  ;;  %v3046_v25 = vpop.f32.mrf.mxu0 }
 0x4d7   :  { %v3088_v38 = vadd.f32 %v3087_v61, %v3044_v12  ;;  %v3316_v12 = vsub.s32 6, %v5778_v45  ;;  %v3320_v61 = vsub.s32 7, %v5778_v45 }
 0x4d8   :  { %v3089_v59 = vpop.f32.mrf.mxu1  ;;  %v3048_v36 = vpop.f32.mrf.mxu0 }
 0x4d9   :  { %v3090_v41 = vadd.f32 %v3089_v59, %v3046_v25  ;;  %v6128_v62 = vmul.f32 %v5786_v48, %v3088_v38  ;;  %v3317_v25 = vrot.slane %v6020_v55, %v3316_v12  ;;  %v3321_v59 = vrot.slane %v6020_v55, %v3320_v61 }
 0x4da   :  { %v3091_v44 = vpop.f32.mrf.mxu1  ;;  %v3050_v39 = vpop.f32.mrf.mxu0  ;;  %v3435_v55 = vrot.slane %v6027_v14, %v3320_v61 }
 0x4db   :  { %v3092_v15 = vadd.f32 %v3091_v44, %v3048_v36  ;;  %v6131_v47 = vmul.f32 %v5786_v48, %v3090_v41  ;;  %v3182_v56 = vmul.f32 %v6128_v62, %v6128_v62 }
 0x4dc   :  { %v3093_v32 = vpop.f32.mrf.mxu1 }
 0x4dd   :  { %v3110_v51 = vmul.f32 %v5789_v50, %v3092_v15  ;;  %v3094_v54 = vadd.f32 %v3093_v32, %v3050_v39  ;;  %v3183_v63 = vmul.f32 %v6131_v47, %v6131_v47  ;;  %v3431_v15 = vrot.slane %v6027_v14, %v3316_v12 }
 0x4df   :  { %v3154_v57 = vadd.f32 %v3110_v51, %v6128_v62  ;;  %v3190_v58 = vmul.f32 %v3110_v51, %v3110_v51  ;;  %v6138_v0 = vmul.f32 %v5789_v50, %v3094_v54 }
 0x4e1   :  { %v3155_v17 = vrot.slane %v3154_v57, 4  ;;  %v3234_v21 = vadd.f32 %v3190_v58, %v3182_v56  ;;  %v3161_v48 = vadd.f32 %v6138_v0, %v6131_v47  ;;  %v3191_v1 = vmul.f32 %v6138_v0, %v6138_v0 }
 0x4e3   :  { %v3156_v2 = vadd.f32 %v3155_v17, %v3154_v57  ;;  %v3235_v42 = vrot.slane %v3234_v21, 4  ;;  %v3162_v3 = vrot.slane %v3161_v48, 4  ;;  %v3241_v5 = vadd.f32 %v3191_v1, %v3183_v63 }
 0x4e5   :  { %v3157_v8 = vrot.slane %v3156_v2, 2  ;;  %v3236_v9 = vadd.f32 %v3235_v42, %v3234_v21  ;;  %v3163_v10 = vadd.f32 %v3162_v3, %v3161_v48  ;;  %v3242_v50 = vrot.slane %v3241_v5, 4 }
 0x4e7   :  { %v3158_v11 = vadd.f32 %v3157_v8, %v3156_v2  ;;  %v3237_v33 = vrot.slane %v3236_v9, 2  ;;  %v3164_v40 = vrot.slane %v3163_v10, 2  ;;  %v3243_v7 = vadd.f32 %v3242_v50, %v3241_v5 }
 0x4e9   :  { %v3159_v49 = vrot.slane %v3158_v11, 1  ;;  %v3238_v35 = vadd.f32 %v3237_v33, %v3236_v9  ;;  %v3165_v30 = vadd.f32 %v3164_v40, %v3163_v10  ;;  %v3244_v37 = vrot.slane %v3243_v7, 2  ;;  %v3644_v40 = vld [vmem:[%s6187_s15] sm:$0x3]  ;;  %s5628_s15 = smov [#allocation22]  }
 0x4ea   :  { %s4481_s0 = sshll.u32 %s5628_s15, 4  ;;  %s4482_s0 = int_to_ptr.vmem [resolvable:$true] %s4481_s0 }
 0x4eb   :  { %v3160_v4 = vadd.f32 %v3159_v49, %v3158_v11  ;;  %v3239_v53 = vrot.slane %v3238_v35, 1  ;;  %v3166_v13 = vrot.slane %v3165_v30, 1  ;;  %v3245_v34 = vadd.f32 %v3244_v37, %v3243_v7  ;;  %s5572_s2 = scalar_lea.vmem %s4482_s0, 512  ;;  %p5577_p0 = scmp.lt.s32.totalorder %s4482_s0, %s4482_s0 }
 0x4ec   :  { %v3653_v37 = vrot.slane %v3644_v40, %v5828_v46  ;;  %p5573_p13 = scmp.ne.s32.totalorder %s4482_s0, %s5572_s2  ;;  %p5578_p1 = scmp.lt.s32.totalorder %s5572_s2, %s5572_s2 }
 0x4ed   :  { %v3174_v16 = vmul.f32 %v3160_v4, %v5818_v18  ;;  %v3240_v60 = vadd.f32 %v3239_v53, %v3238_v35  ;;  %v3167_v23 = vadd.f32 %v3166_v13, %v3165_v30  ;;  %v3246_v24 = vrot.slane %v3245_v34, 1 }
 0x4ee   :  { %v3649_v30 = vrot.slane %v3644_v40, %v5825_v43  ;;  %p5579_p2 = por %p5578_p1, %p5577_p0 }
 0x4ef   :  { %v3254_v28 = vmul.f32 %v3240_v60, %v5818_v18  ;;  %v3262_v6 = vmul.f32 %v3174_v16, %v3174_v16  ;;  %v3175_v31 = vmul.f32 %v3167_v23, %v5818_v18  ;;  %v3247_v19 = vadd.f32 %v3246_v24, %v3245_v34 }
 0x4f0   :  { %v3344_v44 = vsub.f32 %v6128_v62, %v3174_v16  ;;  %p5580_p3 = pnand %p5579_p2, %p5573_p13 }
 0x4f1   :  { %v3270_v20 = vsub.f32 %v3254_v28, %v3262_v6  ;;  %v3255_v22 = vmul.f32 %v3247_v19, %v5818_v18  ;;  %v3263_v52 = vmul.f32 %v3175_v31, %v3175_v31  ;;  %v3352_v18 = vsub.f32 %v3110_v51, %v3174_v16 }
 0x4f2   :  { %v3353_v57 = vsub.f32 %v6138_v0, %v3175_v31  ;;  %v3345_v58 = vsub.f32 %v6131_v47, %v3175_v31 }
 0x4f3   :  { %v3278_v27 = vadd.f32 0.8, %v3270_v20  ;;  %v3271_v29 = vsub.f32 %v3255_v22, %v3263_v52 }
 0x4f5   :  { %5340 = vrsqrt.f32 %v3278_v27  ;;  %v3279_v26 = vadd.f32 0.8, %v3271_v29 }
 0x4f7   :  { %5342 = vrsqrt.f32 %v3279_v26 }
 0x502   :  { %v5341_v38 = vpop.eup %5340 }
 0x503   :  { %v3336_v36 = vmul.f32 %v5341_v38, %v3317_v25 }
 0x504   :  { %v5343_v41 = vpop.eup %5342 }
 0x505   :  { %v3381_v39 = vrot.slane %v3336_v36, %v5825_v43  ;;  %v3337_v32 = vmul.f32 %v5343_v41, %v3321_v59 }
 0x507   :  { %v3392_v54 = vmul.f32 %v3381_v39, %v3344_v44  ;;  %v3400_v56 = vmul.f32 %v3381_v39, %v3352_v18  ;;  %v3385_v45 = vrot.slane %v3337_v32, %v5825_v43 }
 0x509   :  { %v3458_v63 = vadd.f32 %v3431_v15, %v3400_v56  ;;  %v3450_v17 = vadd.f32 %v3431_v15, %v3392_v54  ;;  %v3401_v21 = vmul.f32 %v3385_v45, %v3353_v57  ;;  %v3393_v62 = vmul.f32 %v3385_v45, %v3345_v58 }
 0x50b   :  { %v3482_v51 = vmul.f32 0.2, %v3450_v17  ;;  %v3490_v48 = vmul.f32 0.2, %v3458_v63  ;;  %v3451_v1 = vadd.f32 %v3435_v55, %v3393_v62  ;;  %v3459_v2 = vadd.f32 %v3435_v55, %v3401_v21 }
 0x50c   :  { %vm3466_vm14 = vcmp.gt.f32.partialorder %v3450_v17, 0.0  ;;  %vm3474_vm15 = vcmp.gt.f32.partialorder %v3458_v63, 0.0 }
 0x50d   :  { %vm3467_vm0 = vcmp.gt.f32.partialorder %v3451_v1, 0.0  ;;  %vm3475_vm1 = vcmp.gt.f32.partialorder %v3459_v2, 0.0  ;;  %v3483_v42 = vmul.f32 0.2, %v3451_v1  ;;  %v3491_v0 = vmul.f32 0.2, %v3459_v2 }
 0x50e   :  { %v3498_v3 = vsel %vm3466_vm14, %v3450_v17, %v3482_v51  ;;  %v3506_v5 = vsel %vm3474_vm15, %v3458_v63, %v3490_v48 }
 0x50f   :  { %v3499_v8 = vsel %vm3467_vm0, %v3451_v1, %v3483_v42  ;;  %v3507_v47 = vsel %vm3475_vm1, %v3459_v2, %v3491_v0  ;;  %v3514_v14 = vpack.c.bf16 %v3506_v5, %v3498_v3 }
 0x510   :  { %v3515_v9 = vpack.c.bf16 %v3507_v47, %v3499_v8 }
 0x512   :  { %4457 = vmatprep.mubr.bf16.mxu1 %v3515_v9 }
 0x513   :  { %4458 = vmatmul.mubr.bf16.vlgmr.msra.gmra.mxu1 %v3514_v14 }
 0x514   :  { %v4330_v10 = vpop.f32.mrf.mxu0 }
 0x515   :  { %v4331_v13 = vadd.f32 %v4330_v10, %v3649_v30 }
 0x516   :  { %v4332_v50 = vpop.f32.mrf.mxu0 }
 0x517   :  { %v4333_v34 = vadd.f32 %v4332_v50, %v3653_v37 }
 0x518   :  { %v4334_v11 = vpop.f32.mrf.mxu0 }
 0x519   :  { %v4335_v24 = vadd.f32 %v4334_v11, %v3649_v30 }
 0x51a   :  { %v4336_v7 = vpop.f32.mrf.mxu0 }
 0x51b   :  { %v4337_v19 = vadd.f32 %v4336_v7, %v3653_v37 }
 0x553   :  { %v4373_v33 = vpop.f32.mrf.mxu1 }
 0x554   :  { %v4374_v16 = vadd.f32 %v4373_v33, %v4331_v13 }
 0x555   :  { %v4375_v49 = vpop.f32.mrf.mxu1 }
 0x556   :  { %v4376_v28 = vadd.f32 %v4375_v49, %v4333_v34 }
 0x557   :  { %v4377_v4 = vpop.f32.mrf.mxu1 }
 0x558   :  { %v4378_v20 = vadd.f32 %v4377_v4, %v4335_v24 }
 0x559   :  { %v4379_v60 = vpop.f32.mrf.mxu1 }
 0x55a   :  { %v4380_v43 = vadd.f32 %v4379_v60, %v4337_v19 }
 0x593   :  { %v4416_v35 = vpop.f32.mrf.mxu0 }
 0x594   :  { %v4417_v6 = vadd.f32 %v4416_v35, %v4374_v16 }
 0x595   :  { %v4418_v53 = vpop.f32.mrf.mxu0 }
 0x596   :  { %v4419_v22 = vadd.f32 %v4418_v53, %v4376_v28 }
 0x597   :  { %v4420_v23 = vpop.f32.mrf.mxu0 }
 0x598   :  { %v4421_v26 = vadd.f32 %v4420_v23, %v4378_v20 }
 0x599   :  { %v4422_v27 = vpop.f32.mrf.mxu0 }
 0x59a   :  { %v4423_v61 = vadd.f32 %v4422_v27, %v4380_v43 }
 0x5d3   :  { %v4459_v31 = vpop.f32.mrf.mxu1 }
 0x5d4   :  { %v4460_v52 = vadd.f32 %v4459_v31, %v4417_v6 }
 0x5d5   :  { %v4461_v29 = vpop.f32.mrf.mxu1 }
 0x5d6   :  { %5344 = vtanh.f32 %v4460_v52  ;;  %v4462_v46 = vadd.f32 %v4461_v29, %v4419_v22 }
 0x5d7   :  { %v4463_v12 = vpop.f32.mrf.mxu1 }
 0x5d8   :  { %5346 = vtanh.f32 %v4462_v46  ;;  %v4464_v25 = vadd.f32 %v4463_v12, %v4421_v26 }
 0x5d9   :  { %v4465_v38 = vpop.f32.mrf.mxu1 }
 0x5da   :  { %5348 = vtanh.f32 %v4464_v25  ;;  %v4466_v59 = vadd.f32 %v4465_v38, %v4423_v61 }
 0x5dc   :  { %5350 = vtanh.f32 %v4466_v59 }
 0x5e3   :  { %v5345_v36 = vpop.eup %5344 }
 0x5e4   :  { %4472 = vst [vmem:[#allocation22] sm:$0xff] %v5345_v36 }
 0x5e5   :  { %v5347_v41 = vpop.eup %5346 }
 0x5e6   :  { %4473 = vst [vmem:[#allocation22 + $0x8] sm:$0xff] %v5347_v41 }
 0x5e7   :  { %v5349_v44 = vpop.eup %5348 }
 0x5e8   :  { %4474 = vst [vmem:[#allocation22 + $0x10] sm:$0xff] %v5349_v44 }
 0x5e9   :  { %v5351_v18 = vpop.eup %5350 }
 0x5ea   :  { %4475 = vst [vmem:[#allocation22 + $0x18] sm:$0xff] %v5351_v18 }
 0x5eb   :  { %5583 = shalt.err (!%p5580_p3)
}
 0x5ec   :  { %4487 = dma.vmem_to_hbm [thread:$0]  %s4482_s0, 512, %s6188_s16, [#allocation6], %s5621_s4, %s5621_s4, %s5622_s21  }
 0x5ed   :  { %5604 = dma.done.wait [#allocation6], 512  }
 0x5ee   :  { %5605 = vsyncadd [#allocation6], 4294966784 }
 0x5ef   :  { %4491 = vsyncpa [#allocation5], 1 }
 0x5f0   :  { %4492 = vsyncpa [#allocation8], 1 }
 0x5f1   :  { %4493 = vsyncpa [#allocation11], 1 }
 0x5f2   :  { %4494 = vsyncpa [#allocation14], 1 }
 0x5f3   :  { %4495 = vsyncpa [#allocation17], 1 }
 0x5f4   :  { %4496 = vsyncpa [#allocation20], 1 }
 0x5f5   :  { %4497 = vsyncpa [#allocation6], 1 }

</bundles_post_ra>
